<compile_context>
chip_gen: v7x
topology: tpu7x:2x2x1
jax: 0.10.0
libtpu: 0.0.40
codegen_flags: <defaults>
</compile_context>

<pallas_src>
import math
import jax
import jax.numpy as jnp
from jax import lax
from jax.experimental import pallas as pl
from jax.experimental.pallas import tpu as pltpu


def _round_up(x, m):
    return ((x + m - 1) // m) * m


# ------------------- fused multi-layer LSTM + Linear kernel -------------------
def _make_fused_kernel(T, Bp, H, n_layers, unroll_time):
    """Kernel body.  Everything is 2-D (rows = t*Bp + b): no in-kernel
    reshapes/transposes.  H here is the (lane-aligned) padded hidden dim."""

    def kernel(z_ref, *refs):
        # refs = [(wihT, whhT, b) * n_layers, wT, b_lin, out, gbuf, hbuf0, hbuf1]
        w_refs = refs[: 3 * n_layers]
        wT_ref = refs[3 * n_layers]
        bl_ref = refs[3 * n_layers + 1]
        out_ref = refs[3 * n_layers + 2]
        gbuf = refs[3 * n_layers + 3]                      # (T*Bp, 4H) scratch
        hbufs = refs[3 * n_layers + 4: 3 * n_layers + 6]   # 2 x (T*Bp, H)

        x2d = z_ref[...]                                   # (T*Bp, D) layer-0 input

        for l in range(n_layers):
            wihT = w_refs[3 * l + 0][...]                  # (D_in, 4H)
            whhT = w_refs[3 * l + 1][...]                  # (H,    4H)
            b = w_refs[3 * l + 2][...]                     # (1,    4H) = b_ih + b_hh
            hbuf = hbufs[l % 2]                            # ping-pong layer output

            # Hoisted input projection: ONE time-batched matmul for all steps.
            gbuf[...] = jnp.dot(x2d, wihT,
                                preferred_element_type=jnp.float32) + b

            def step(row_start, h, c, whhT=whhT, hbuf=hbuf):
                rows = pl.ds(row_start, Bp)
                gates = gbuf[rows, :] + jnp.dot(
                    h, whhT, preferred_element_type=jnp.float32)   # (Bp, 4H)
                # Lane-aligned gate slices (H is a multiple of 128).
                i_g = jax.nn.sigmoid(gates[:, 0 * H:1 * H])
                f_g = jax.nn.sigmoid(gates[:, 1 * H:2 * H])
                g_g = jnp.tanh(gates[:, 2 * H:3 * H])
                o_g = jax.nn.sigmoid(gates[:, 3 * H:4 * H])
                c_new = f_g * c + i_g * g_g
                h_new = o_g * jnp.tanh(c_new)
                hbuf[rows, :] = h_new                      # lane-dense store
                return h_new, c_new

            h = jnp.zeros((Bp, H), jnp.float32)
            c = jnp.zeros((Bp, H), jnp.float32)
            if unroll_time:
                for t in range(T):                         # straight-line recurrence
                    h, c = step(t * Bp, h, c)
            else:
                def body(t, hc, step=step):
                    row_start = pl.multiple_of(t * Bp, Bp)
                    return step(row_start, hc[0], hc[1])
                h, c = lax.fori_loop(0, T, body, (h, c))

            x2d = hbuf[...]                                # (T*Bp, H) next input

        # Final Linear: one matmul; Op is a multiple of 128 -> lane-dense store.
        out_ref[...] = (jnp.dot(x2d, wT_ref[...],
                                preferred_element_type=jnp.float32)
                        + bl_ref[...]).astype(out_ref.dtype)

    return kernel


def fused_lstm_linear(z2d, lstm_params, wT, b_lin, T, Bp):
    """z2d: (T*Bp, D) time-major flattened input.  lstm_params/wT/b_lin must
    already be hidden-dim / output-dim padded.  Returns (T*Bp, Op) f32."""
    D = z2d.shape[1]
    H = lstm_params[0]["whhT"].shape[0]        # padded hidden dim (mult of 128)
    n_layers = len(lstm_params)
    Op = wT.shape[1]

    inputs = [z2d]
    in_specs = [pl.BlockSpec((T * Bp, D), lambda i: (0, 0))]
    for lp in lstm_params:
        d_in = lp["wihT"].shape[0]
        inputs += [lp["wihT"], lp["whhT"], lp["b"]]
        in_specs += [
            pl.BlockSpec((d_in, 4 * H), lambda i: (0, 0)),
            pl.BlockSpec((H, 4 * H), lambda i: (0, 0)),
            pl.BlockSpec((1, 4 * H), lambda i: (0, 0)),
        ]
    inputs += [wT, b_lin]
    in_specs += [pl.BlockSpec((H, Op), lambda i: (0, 0)),
                 pl.BlockSpec((1, Op), lambda i: (0, 0))]

    kernel = _make_fused_kernel(T, Bp, H, n_layers, unroll_time=(T <= 32))

    return pl.pallas_call(
        kernel,
        out_shape=jax.ShapeDtypeStruct((T * Bp, Op), jnp.float32),
        grid=(1,),
        in_specs=in_specs,
        out_specs=pl.BlockSpec((T * Bp, Op), lambda i: (0, 0)),
        scratch_shapes=[
            pltpu.VMEM((T * Bp, 4 * H), jnp.float32),   # hoisted gate projections
            pltpu.VMEM((T * Bp, H), jnp.float32),       # layer output (ping)
            pltpu.VMEM((T * Bp, H), jnp.float32),       # layer output (pong)
        ],
        compiler_params=pltpu.CompilerParams(
            dimension_semantics=("arbitrary",)),
        # TODO(synk): for very long sequences / large batch, tile T*Bp over a
        # grid axis (and on v7x mark it "parallel" over batch) instead of
        # holding the whole sequence in VMEM; unnecessary at these shapes.
    )(*inputs)


# ---------------------------- hidden-dim padding ------------------------------
def _pad_gate_cols(w, H, Hp):
    """(..., 4*H) -> (..., 4*Hp): zero-pad each of the 4 gate blocks to Hp."""
    if Hp == H:
        return w
    lead = w.shape[:-1]
    w4 = w.reshape(lead + (4, H))
    w4 = jnp.pad(w4, [(0, 0)] * len(lead) + [(0, 0), (0, Hp - H)])
    return w4.reshape(lead + (4 * Hp,))


def _pad_rows(w, H, Hp):
    if Hp == H:
        return w
    return jnp.pad(w, ((0, Hp - H),) + ((0, 0),) * (w.ndim - 1))


def _pad_params_for_kernel(params, output_dim):
    H = params["lstm"][0]["whhT"].shape[0]
    Hp = _round_up(H, 128)
    Op = _round_up(output_dim, 128)

    lstm_p = []
    for l, lp in enumerate(params["lstm"]):
        wihT = _pad_gate_cols(lp["wihT"], H, Hp)
        if l > 0:
            wihT = _pad_rows(wihT, H, Hp)
        whhT = _pad_rows(_pad_gate_cols(lp["whhT"], H, Hp), H, Hp)
        b = _pad_gate_cols(lp["b"], H, Hp)
        lstm_p.append({"wihT": wihT, "whhT": whhT, "b": b})

    wT = _pad_rows(params["linear"]["wT"], H, Hp)
    bl = params["linear"]["b"]
    if Op != output_dim:
        wT = jnp.pad(wT, ((0, 0), (0, Op - output_dim)))
        bl = jnp.pad(bl, ((0, 0), (0, Op - output_dim)))
    return lstm_p, wT, bl, Op


# ------------------------- parameter init (deterministic) --------------------
def init_params(key, input_dim, output_dim, hidden_dim, n_layers):
    k = 1.0 / math.sqrt(hidden_dim)
    keys = jax.random.split(key, 4 * n_layers + 2)
    idx = 0
    lstm = []
    for layer in range(n_layers):
        in_d = input_dim if layer == 0 else hidden_dim
        w_ih = jax.random.uniform(keys[idx], (4 * hidden_dim, in_d),
                                  minval=-k, maxval=k, dtype=jnp.float32); idx += 1
        w_hh = jax.random.uniform(keys[idx], (4 * hidden_dim, hidden_dim),
                                  minval=-k, maxval=k, dtype=jnp.float32); idx += 1
        b_ih = jax.random.uniform(keys[idx], (4 * hidden_dim,),
                                  minval=-k, maxval=k, dtype=jnp.float32); idx += 1
        b_hh = jax.random.uniform(keys[idx], (4 * hidden_dim,),
                                  minval=-k, maxval=k, dtype=jnp.float32); idx += 1
        lstm.append({"wihT": w_ih.T, "whhT": w_hh.T,
                     "b": (b_ih + b_hh).reshape(1, -1)})
    w = jax.random.uniform(keys[idx], (output_dim, hidden_dim),
                           minval=-k, maxval=k, dtype=jnp.float32); idx += 1
    b = jax.random.uniform(keys[idx], (output_dim,),
                           minval=-k, maxval=k, dtype=jnp.float32)
    return {"lstm": lstm, "linear": {"wT": w.T, "b": b.reshape(1, -1)}}


# ------------------------------- forward pass --------------------------------
def _build_z(batch_size, condition, n_lags, noise_key, input_dim):
    cond_dim = condition.shape[-1]
    noise_dim = input_dim - cond_dim
    z = 0.1 * jax.random.normal(noise_key, (batch_size, n_lags, noise_dim),
                                dtype=jnp.float32)
    z = z.at[:, 0, :].set(0.0)
    z = jnp.cumsum(z, axis=1)
    cond_rep = jnp.broadcast_to(condition[:, None, :],
                                (batch_size, n_lags, cond_dim))
    return jnp.concatenate([z, cond_rep], axis=2)          # (B, T, input_dim)


def generator_forward(params, batch_size, condition, n_lags, noise_key,
                      input_dim, output_dim):
    B, T = batch_size, n_lags
    z = _build_z(B, condition, T, noise_key, input_dim)     # (B, T, D), glue

    # Time-major, pad batch to a sublane multiple (8).
    Bp = _round_up(max(B, 1), 8)
    z_tm = jnp.transpose(z, (1, 0, 2))                      # (T, B, D)
    if Bp != B:
        z_tm = jnp.pad(z_tm, ((0, 0), (0, Bp - B), (0, 0)))
    z2d = z_tm.reshape(T * Bp, input_dim)                   # rows = t*Bp + b

    # Pad hidden dim to a lane multiple (128) -> aligned gate slices & dense
    # stores; pad Linear output dim to a lane multiple -> lane-dense out store.
    lstm_p, wT, bl, Op = _pad_params_for_kernel(params, output_dim)

    out2d = fused_lstm_linear(z2d, lstm_p, wT, bl, T, Bp)   # (T*Bp, Op)
    out = out2d.reshape(T, Bp, Op)[:, :B, :output_dim]
    return jnp.transpose(out, (1, 0, 2))                    # (B, T, output_dim)


# -------------------------- pure-JAX reference (check) ------------------------
def reference_forward(params, z):
    hp = jax.lax.Precision.HIGHEST
    x = z
    B = z.shape[0]
    for lp in params["lstm"]:
        H = lp["whhT"].shape[0]

        def cell(carry, x_t, lp=lp, H=H):
            h, c = carry
            gates = (jnp.dot(x_t, lp["wihT"], precision=hp)
                     + jnp.dot(h, lp["whhT"], precision=hp) + lp["b"])
            i = jax.nn.sigmoid(gates[:, :H])
            f = jax.nn.sigmoid(gates[:, H:2 * H])
            g = jnp.tanh(gates[:, 2 * H:3 * H])
            o = jax.nn.sigmoid(gates[:, 3 * H:])
            c = f * c + i * g
            h = o * jnp.tanh(c)
            return (h, c), h

        h0 = jnp.zeros((B, H), jnp.float32)
        _, hs = lax.scan(cell, (h0, h0), jnp.transpose(x, (1, 0, 2)))
        x = jnp.transpose(hs, (1, 0, 2))
    return jnp.dot(x, params["linear"]["wT"], precision=hp) + params["linear"]["b"]


if __name__ == "__main__":
    input_dim, output_dim, hidden_dim, n_layers = 5, 3, 32, 2
    batch_size, n_lags, cond_dim = 4, 8, 3

    key = jax.random.PRNGKey(0)
    pkey, ckey, nkey = jax.random.split(key, 3)

    params = init_params(pkey, input_dim, output_dim, hidden_dim, n_layers)
    condition = jax.random.normal(ckey, (batch_size, cond_dim), dtype=jnp.float32)

    x = generator_forward(params, batch_size, condition, n_lags, nkey,
                          input_dim, output_dim)
    x = jax.block_until_ready(x)
    assert x.shape == (batch_size, n_lags, output_dim), x.shape
    assert bool(jnp.all(jnp.isfinite(x)))

    # Numerical check vs. a pure-JAX reference on the identical z.
    z = _build_z(batch_size, condition, n_lags, nkey, input_dim)
    ref = jax.block_until_ready(reference_forward(params, z))
    assert bool(jnp.allclose(x, ref, atol=5e-3, rtol=5e-3)), (
        float(jnp.max(jnp.abs(x - ref))))

    print("KERNEL_OK")
</pallas_src>

<mosaic_0001>
module attributes {stable_mosaic.version = 11 : i64} {
  func.func @kernel(%arg0: i32, %arg1: memref<64x5xf32, #tpu.memory_space<vmem>>, %arg2: memref<5x512xf32, #tpu.memory_space<vmem>>, %arg3: memref<128x512xf32, #tpu.memory_space<vmem>>, %arg4: memref<1x512xf32, #tpu.memory_space<vmem>>, %arg5: memref<128x512xf32, #tpu.memory_space<vmem>>, %arg6: memref<128x512xf32, #tpu.memory_space<vmem>>, %arg7: memref<1x512xf32, #tpu.memory_space<vmem>>, %arg8: memref<128x128xf32, #tpu.memory_space<vmem>>, %arg9: memref<1x128xf32, #tpu.memory_space<vmem>>, %arg10: memref<64x128xf32, #tpu.memory_space<vmem>>, %arg11: memref<64x512xf32, #tpu.memory_space<vmem>>, %arg12: memref<64x128xf32, #tpu.memory_space<vmem>>, %arg13: memref<64x128xf32, #tpu.memory_space<vmem>>) attributes {dimension_semantics = [#tpu.dimension_semantics<arbitrary>], iteration_bounds = array<i64: 1>, scalar_prefetch = 0 : i64, scratch_operands = 3 : i64, tpu.core_type = #tpu.core_type<tc>, window_params = [{pipeline_mode = #tpu.pipeline_mode<synchronous>, transform_indices = @transform_0, window_bounds = array<i64: 64, 5>}, {pipeline_mode = #tpu.pipeline_mode<synchronous>, transform_indices = @transform_1, window_bounds = array<i64: 5, 512>}, {pipeline_mode = #tpu.pipeline_mode<synchronous>, transform_indices = @transform_2, window_bounds = array<i64: 128, 512>}, {pipeline_mode = #tpu.pipeline_mode<synchronous>, transform_indices = @transform_3, window_bounds = array<i64: 1, 512>}, {pipeline_mode = #tpu.pipeline_mode<synchronous>, transform_indices = @transform_4, window_bounds = array<i64: 128, 512>}, {pipeline_mode = #tpu.pipeline_mode<synchronous>, transform_indices = @transform_5, window_bounds = array<i64: 128, 512>}, {pipeline_mode = #tpu.pipeline_mode<synchronous>, transform_indices = @transform_6, window_bounds = array<i64: 1, 512>}, {pipeline_mode = #tpu.pipeline_mode<synchronous>, transform_indices = @transform_7, window_bounds = array<i64: 128, 128>}, {pipeline_mode = #tpu.pipeline_mode<synchronous>, transform_indices = @transform_8, window_bounds = array<i64: 1, 128>}, {pipeline_mode = #tpu.pipeline_mode<synchronous>, transform_indices = @transform_9, window_bounds = array<i64: 64, 128>}]} {
    %c0 = arith.constant 0 : index
    %c0_0 = arith.constant 0 : index
    %0 = vector.load %arg1[%c0, %c0_0] : memref<64x5xf32, #tpu.memory_space<vmem>>, vector<64x5xf32>
    %c0_1 = arith.constant 0 : index
    %c0_2 = arith.constant 0 : index
    %1 = vector.load %arg2[%c0_1, %c0_2] : memref<5x512xf32, #tpu.memory_space<vmem>>, vector<5x512xf32>
    %c0_3 = arith.constant 0 : index
    %c0_4 = arith.constant 0 : index
    %2 = vector.load %arg3[%c0_3, %c0_4] : memref<128x512xf32, #tpu.memory_space<vmem>>, vector<128x512xf32>
    %c0_5 = arith.constant 0 : index
    %c0_6 = arith.constant 0 : index
    %3 = vector.load %arg4[%c0_5, %c0_6] : memref<1x512xf32, #tpu.memory_space<vmem>>, vector<1x512xf32>
    %cst = arith.constant dense<0.000000e+00> : vector<64x512xf32>
    %4 = tpu.matmul %0, %1, %cst {dimension_numbers = #tpu.dot_dimension_numbers<[1], [0], [0], [1], [0, 0, 1, 1], [], []>} : vector<64x5xf32>, vector<5x512xf32>, vector<64x512xf32> -> vector<64x512xf32>
    %5 = vector.broadcast %3 : vector<1x512xf32> to vector<64x512xf32>
    %6 = arith.addf %4, %5 : vector<64x512xf32>
    %c0_7 = arith.constant 0 : index
    %c0_8 = arith.constant 0 : index
    %7 = vector.load %arg11[%c0_7, %c0_8] : memref<64x512xf32, #tpu.memory_space<vmem>>, vector<64x512xf32>
    tpu.vector_store %arg11[%c0_7, %c0_8], %6 {strides = array<i32>} : memref<64x512xf32, #tpu.memory_space<vmem>>, vector<64x512xf32>,
    %cst_9 = arith.constant 0.000000e+00 : f32
    %8 = vector.broadcast %cst_9 : f32 to vector<8x128xf32>
    %cst_10 = arith.constant 0.000000e+00 : f32
    %9 = vector.broadcast %cst_10 : f32 to vector<8x128xf32>
    %c0_11 = arith.constant 0 : index
    %c0_12 = arith.constant 0 : index
    %10 = vector.load %arg11[%c0_11, %c0_12] : memref<64x512xf32, #tpu.memory_space<vmem>>, vector<8x512xf32>
    %cst_13 = arith.constant dense<0.000000e+00> : vector<8x512xf32>
    %11 = tpu.matmul %8, %2, %cst_13 {dimension_numbers = #tpu.dot_dimension_numbers<[1], [0], [0], [1], [0, 0, 1, 1], [], []>} : vector<8x128xf32>, vector<128x512xf32>, vector<8x512xf32> -> vector<8x512xf32>
    %12 = arith.addf %10, %11 : vector<8x512xf32>
    %13 = vector.extract_strided_slice %12 {offsets = [0, 0], sizes = [8, 128], strides = [1, 1]} : vector<8x512xf32> to vector<8x128xf32>
    %14 = arith.negf %13 : vector<8x128xf32>
    %15 = math.exp %14 : vector<8x128xf32>
    %cst_14 = arith.constant 1.000000e+00 : f32
    %16 = vector.broadcast %cst_14 : f32 to vector<8x128xf32>
    %17 = arith.addf %16, %15 : vector<8x128xf32>
    %18 = arith.divf %16, %17 : vector<8x128xf32>
    %19 = vector.extract_strided_slice %12 {offsets = [0, 128], sizes = [8, 128], strides = [1, 1]} : vector<8x512xf32> to vector<8x128xf32>
    %20 = arith.negf %19 : vector<8x128xf32>
    %21 = math.exp %20 : vector<8x128xf32>
    %cst_15 = arith.constant 1.000000e+00 : f32
    %22 = vector.broadcast %cst_15 : f32 to vector<8x128xf32>
    %23 = arith.addf %22, %21 : vector<8x128xf32>
    %24 = arith.divf %22, %23 : vector<8x128xf32>
    %25 = vector.extract_strided_slice %12 {offsets = [0, 256], sizes = [8, 128], strides = [1, 1]} : vector<8x512xf32> to vector<8x128xf32>
    %26 = math.tanh %25 : vector<8x128xf32>
    %27 = vector.extract_strided_slice %12 {offsets = [0, 384], sizes = [8, 128], strides = [1, 1]} : vector<8x512xf32> to vector<8x128xf32>
    %28 = arith.negf %27 : vector<8x128xf32>
    %29 = math.exp %28 : vector<8x128xf32>
    %cst_16 = arith.constant 1.000000e+00 : f32
    %30 = vector.broadcast %cst_16 : f32 to vector<8x128xf32>
    %31 = arith.addf %30, %29 : vector<8x128xf32>
    %32 = arith.divf %30, %31 : vector<8x128xf32>
    %33 = arith.mulf %24, %9 : vector<8x128xf32>
    %34 = arith.mulf %18, %26 : vector<8x128xf32>
    %35 = arith.addf %33, %34 : vector<8x128xf32>
    %36 = math.tanh %35 : vector<8x128xf32>
    %37 = arith.mulf %32, %36 : vector<8x128xf32>
    %c0_17 = arith.constant 0 : index
    %c0_18 = arith.constant 0 : index
    %38 = vector.load %arg12[%c0_17, %c0_18] : memref<64x128xf32, #tpu.memory_space<vmem>>, vector<8x128xf32>
    tpu.vector_store %arg12[%c0_17, %c0_18], %37 {strides = array<i32>} : memref<64x128xf32, #tpu.memory_space<vmem>>, vector<8x128xf32>,
    %c8 = arith.constant 8 : index
    %c0_19 = arith.constant 0 : index
    %39 = vector.load %arg11[%c8, %c0_19] : memref<64x512xf32, #tpu.memory_space<vmem>>, vector<8x512xf32>
    %cst_20 = arith.constant dense<0.000000e+00> : vector<8x512xf32>
    %40 = tpu.matmul %37, %2, %cst_20 {dimension_numbers = #tpu.dot_dimension_numbers<[1], [0], [0], [1], [0, 0, 1, 1], [], []>} : vector<8x128xf32>, vector<128x512xf32>, vector<8x512xf32> -> vector<8x512xf32>
    %41 = arith.addf %39, %40 : vector<8x512xf32>
    %42 = vector.extract_strided_slice %41 {offsets = [0, 0], sizes = [8, 128], strides = [1, 1]} : vector<8x512xf32> to vector<8x128xf32>
    %43 = arith.negf %42 : vector<8x128xf32>
    %44 = math.exp %43 : vector<8x128xf32>
    %cst_21 = arith.constant 1.000000e+00 : f32
    %45 = vector.broadcast %cst_21 : f32 to vector<8x128xf32>
    %46 = arith.addf %45, %44 : vector<8x128xf32>
    %47 = arith.divf %45, %46 : vector<8x128xf32>
    %48 = vector.extract_strided_slice %41 {offsets = [0, 128], sizes = [8, 128], strides = [1, 1]} : vector<8x512xf32> to vector<8x128xf32>
    %49 = arith.negf %48 : vector<8x128xf32>
    %50 = math.exp %49 : vector<8x128xf32>
    %cst_22 = arith.constant 1.000000e+00 : f32
    %51 = vector.broadcast %cst_22 : f32 to vector<8x128xf32>
    %52 = arith.addf %51, %50 : vector<8x128xf32>
    %53 = arith.divf %51, %52 : vector<8x128xf32>
    %54 = vector.extract_strided_slice %41 {offsets = [0, 256], sizes = [8, 128], strides = [1, 1]} : vector<8x512xf32> to vector<8x128xf32>
    %55 = math.tanh %54 : vector<8x128xf32>
    %56 = vector.extract_strided_slice %41 {offsets = [0, 384], sizes = [8, 128], strides = [1, 1]} : vector<8x512xf32> to vector<8x128xf32>
    %57 = arith.negf %56 : vector<8x128xf32>
    %58 = math.exp %57 : vector<8x128xf32>
    %cst_23 = arith.constant 1.000000e+00 : f32
    %59 = vector.broadcast %cst_23 : f32 to vector<8x128xf32>
    %60 = arith.addf %59, %58 : vector<8x128xf32>
    %61 = arith.divf %59, %60 : vector<8x128xf32>
    %62 = arith.mulf %53, %35 : vector<8x128xf32>
    %63 = arith.mulf %47, %55 : vector<8x128xf32>
    %64 = arith.addf %62, %63 : vector<8x128xf32>
    %65 = math.tanh %64 : vector<8x128xf32>
    %66 = arith.mulf %61, %65 : vector<8x128xf32>
    %c8_24 = arith.constant 8 : index
    %c0_25 = arith.constant 0 : index
    %67 = vector.load %arg12[%c8_24, %c0_25] : memref<64x128xf32, #tpu.memory_space<vmem>>, vector<8x128xf32>
    tpu.vector_store %arg12[%c8_24, %c0_25], %66 {strides = array<i32>} : memref<64x128xf32, #tpu.memory_space<vmem>>, vector<8x128xf32>,
    %c16 = arith.constant 16 : index
    %c0_26 = arith.constant 0 : index
    %68 = vector.load %arg11[%c16, %c0_26] : memref<64x512xf32, #tpu.memory_space<vmem>>, vector<8x512xf32>
    %cst_27 = arith.constant dense<0.000000e+00> : vector<8x512xf32>
    %69 = tpu.matmul %66, %2, %cst_27 {dimension_numbers = #tpu.dot_dimension_numbers<[1], [0], [0], [1], [0, 0, 1, 1], [], []>} : vector<8x128xf32>, vector<128x512xf32>, vector<8x512xf32> -> vector<8x512xf32>
    %70 = arith.addf %68, %69 : vector<8x512xf32>
    %71 = vector.extract_strided_slice %70 {offsets = [0, 0], sizes = [8, 128], strides = [1, 1]} : vector<8x512xf32> to vector<8x128xf32>
    %72 = arith.negf %71 : vector<8x128xf32>
    %73 = math.exp %72 : vector<8x128xf32>
    %cst_28 = arith.constant 1.000000e+00 : f32
    %74 = vector.broadcast %cst_28 : f32 to vector<8x128xf32>
    %75 = arith.addf %74, %73 : vector<8x128xf32>
    %76 = arith.divf %74, %75 : vector<8x128xf32>
    %77 = vector.extract_strided_slice %70 {offsets = [0, 128], sizes = [8, 128], strides = [1, 1]} : vector<8x512xf32> to vector<8x128xf32>
    %78 = arith.negf %77 : vector<8x128xf32>
    %79 = math.exp %78 : vector<8x128xf32>
    %cst_29 = arith.constant 1.000000e+00 : f32
    %80 = vector.broadcast %cst_29 : f32 to vector<8x128xf32>
    %81 = arith.addf %80, %79 : vector<8x128xf32>
    %82 = arith.divf %80, %81 : vector<8x128xf32>
    %83 = vector.extract_strided_slice %70 {offsets = [0, 256], sizes = [8, 128], strides = [1, 1]} : vector<8x512xf32> to vector<8x128xf32>
    %84 = math.tanh %83 : vector<8x128xf32>
    %85 = vector.extract_strided_slice %70 {offsets = [0, 384], sizes = [8, 128], strides = [1, 1]} : vector<8x512xf32> to vector<8x128xf32>
    %86 = arith.negf %85 : vector<8x128xf32>
    %87 = math.exp %86 : vector<8x128xf32>
    %cst_30 = arith.constant 1.000000e+00 : f32
    %88 = vector.broadcast %cst_30 : f32 to vector<8x128xf32>
    %89 = arith.addf %88, %87 : vector<8x128xf32>
    %90 = arith.divf %88, %89 : vector<8x128xf32>
    %91 = arith.mulf %82, %64 : vector<8x128xf32>
    %92 = arith.mulf %76, %84 : vector<8x128xf32>
    %93 = arith.addf %91, %92 : vector<8x128xf32>
    %94 = math.tanh %93 : vector<8x128xf32>
    %95 = arith.mulf %90, %94 : vector<8x128xf32>
    %c16_31 = arith.constant 16 : index
    %c0_32 = arith.constant 0 : index
    %96 = vector.load %arg12[%c16_31, %c0_32] : memref<64x128xf32, #tpu.memory_space<vmem>>, vector<8x128xf32>
    tpu.vector_store %arg12[%c16_31, %c0_32], %95 {strides = array<i32>} : memref<64x128xf32, #tpu.memory_space<vmem>>, vector<8x128xf32>,
    %c24 = arith.constant 24 : index
    %c0_33 = arith.constant 0 : index
    %97 = vector.load %arg11[%c24, %c0_33] : memref<64x512xf32, #tpu.memory_space<vmem>>, vector<8x512xf32>
    %cst_34 = arith.constant dense<0.000000e+00> : vector<8x512xf32>
    %98 = tpu.matmul %95, %2, %cst_34 {dimension_numbers = #tpu.dot_dimension_numbers<[1], [0], [0], [1], [0, 0, 1, 1], [], []>} : vector<8x128xf32>, vector<128x512xf32>, vector<8x512xf32> -> vector<8x512xf32>
    %99 = arith.addf %97, %98 : vector<8x512xf32>
    %100 = vector.extract_strided_slice %99 {offsets = [0, 0], sizes = [8, 128], strides = [1, 1]} : vector<8x512xf32> to vector<8x128xf32>
    %101 = arith.negf %100 : vector<8x128xf32>
    %102 = math.exp %101 : vector<8x128xf32>
    %cst_35 = arith.constant 1.000000e+00 : f32
    %103 = vector.broadcast %cst_35 : f32 to vector<8x128xf32>
    %104 = arith.addf %103, %102 : vector<8x128xf32>
    %105 = arith.divf %103, %104 : vector<8x128xf32>
    %106 = vector.extract_strided_slice %99 {offsets = [0, 128], sizes = [8, 128], strides = [1, 1]} : vector<8x512xf32> to vector<8x128xf32>
    %107 = arith.negf %106 : vector<8x128xf32>
    %108 = math.exp %107 : vector<8x128xf32>
    %cst_36 = arith.constant 1.000000e+00 : f32
    %109 = vector.broadcast %cst_36 : f32 to vector<8x128xf32>
    %110 = arith.addf %109, %108 : vector<8x128xf32>
    %111 = arith.divf %109, %110 : vector<8x128xf32>
    %112 = vector.extract_strided_slice %99 {offsets = [0, 256], sizes = [8, 128], strides = [1, 1]} : vector<8x512xf32> to vector<8x128xf32>
    %113 = math.tanh %112 : vector<8x128xf32>
    %114 = vector.extract_strided_slice %99 {offsets = [0, 384], sizes = [8, 128], strides = [1, 1]} : vector<8x512xf32> to vector<8x128xf32>
    %115 = arith.negf %114 : vector<8x128xf32>
    %116 = math.exp %115 : vector<8x128xf32>
    %cst_37 = arith.constant 1.000000e+00 : f32
    %117 = vector.broadcast %cst_37 : f32 to vector<8x128xf32>
    %118 = arith.addf %117, %116 : vector<8x128xf32>
    %119 = arith.divf %117, %118 : vector<8x128xf32>
    %120 = arith.mulf %111, %93 : vector<8x128xf32>
    %121 = arith.mulf %105, %113 : vector<8x128xf32>
    %122 = arith.addf %120, %121 : vector<8x128xf32>
    %123 = math.tanh %122 : vector<8x128xf32>
    %124 = arith.mulf %119, %123 : vector<8x128xf32>
    %c24_38 = arith.constant 24 : index
    %c0_39 = arith.constant 0 : index
    %125 = vector.load %arg12[%c24_38, %c0_39] : memref<64x128xf32, #tpu.memory_space<vmem>>, vector<8x128xf32>
    tpu.vector_store %arg12[%c24_38, %c0_39], %124 {strides = array<i32>} : memref<64x128xf32, #tpu.memory_space<vmem>>, vector<8x128xf32>,
    %c32 = arith.constant 32 : index
    %c0_40 = arith.constant 0 : index
    %126 = vector.load %arg11[%c32, %c0_40] : memref<64x512xf32, #tpu.memory_space<vmem>>, vector<8x512xf32>
    %cst_41 = arith.constant dense<0.000000e+00> : vector<8x512xf32>
    %127 = tpu.matmul %124, %2, %cst_41 {dimension_numbers = #tpu.dot_dimension_numbers<[1], [0], [0], [1], [0, 0, 1, 1], [], []>} : vector<8x128xf32>, vector<128x512xf32>, vector<8x512xf32> -> vector<8x512xf32>
    %128 = arith.addf %126, %127 : vector<8x512xf32>
    %129 = vector.extract_strided_slice %128 {offsets = [0, 0], sizes = [8, 128], strides = [1, 1]} : vector<8x512xf32> to vector<8x128xf32>
    %130 = arith.negf %129 : vector<8x128xf32>
    %131 = math.exp %130 : vector<8x128xf32>
    %cst_42 = arith.constant 1.000000e+00 : f32
    %132 = vector.broadcast %cst_42 : f32 to vector<8x128xf32>
    %133 = arith.addf %132, %131 : vector<8x128xf32>
    %134 = arith.divf %132, %133 : vector<8x128xf32>
    %135 = vector.extract_strided_slice %128 {offsets = [0, 128], sizes = [8, 128], strides = [1, 1]} : vector<8x512xf32> to vector<8x128xf32>
    %136 = arith.negf %135 : vector<8x128xf32>
    %137 = math.exp %136 : vector<8x128xf32>
    %cst_43 = arith.constant 1.000000e+00 : f32
    %138 = vector.broadcast %cst_43 : f32 to vector<8x128xf32>
    %139 = arith.addf %138, %137 : vector<8x128xf32>
    %140 = arith.divf %138, %139 : vector<8x128xf32>
    %141 = vector.extract_strided_slice %128 {offsets = [0, 256], sizes = [8, 128], strides = [1, 1]} : vector<8x512xf32> to vector<8x128xf32>
    %142 = math.tanh %141 : vector<8x128xf32>
    %143 = vector.extract_strided_slice %128 {offsets = [0, 384], sizes = [8, 128], strides = [1, 1]} : vector<8x512xf32> to vector<8x128xf32>
    %144 = arith.negf %143 : vector<8x128xf32>
    %145 = math.exp %144 : vector<8x128xf32>
    %cst_44 = arith.constant 1.000000e+00 : f32
    %146 = vector.broadcast %cst_44 : f32 to vector<8x128xf32>
    %147 = arith.addf %146, %145 : vector<8x128xf32>
    %148 = arith.divf %146, %147 : vector<8x128xf32>
    %149 = arith.mulf %140, %122 : vector<8x128xf32>
    %150 = arith.mulf %134, %142 : vector<8x128xf32>
    %151 = arith.addf %149, %150 : vector<8x128xf32>
    %152 = math.tanh %151 : vector<8x128xf32>
    %153 = arith.mulf %148, %152 : vector<8x128xf32>
    %c32_45 = arith.constant 32 : index
    %c0_46 = arith.constant 0 : index
    %154 = vector.load %arg12[%c32_45, %c0_46] : memref<64x128xf32, #tpu.memory_space<vmem>>, vector<8x128xf32>
    tpu.vector_store %arg12[%c32_45, %c0_46], %153 {strides = array<i32>} : memref<64x128xf32, #tpu.memory_space<vmem>>, vector<8x128xf32>,
    %c40 = arith.constant 40 : index
    %c0_47 = arith.constant 0 : index
    %155 = vector.load %arg11[%c40, %c0_47] : memref<64x512xf32, #tpu.memory_space<vmem>>, vector<8x512xf32>
    %cst_48 = arith.constant dense<0.000000e+00> : vector<8x512xf32>
    %156 = tpu.matmul %153, %2, %cst_48 {dimension_numbers = #tpu.dot_dimension_numbers<[1], [0], [0], [1], [0, 0, 1, 1], [], []>} : vector<8x128xf32>, vector<128x512xf32>, vector<8x512xf32> -> vector<8x512xf32>
    %157 = arith.addf %155, %156 : vector<8x512xf32>
    %158 = vector.extract_strided_slice %157 {offsets = [0, 0], sizes = [8, 128], strides = [1, 1]} : vector<8x512xf32> to vector<8x128xf32>
    %159 = arith.negf %158 : vector<8x128xf32>
    %160 = math.exp %159 : vector<8x128xf32>
    %cst_49 = arith.constant 1.000000e+00 : f32
    %161 = vector.broadcast %cst_49 : f32 to vector<8x128xf32>
    %162 = arith.addf %161, %160 : vector<8x128xf32>
    %163 = arith.divf %161, %162 : vector<8x128xf32>
    %164 = vector.extract_strided_slice %157 {offsets = [0, 128], sizes = [8, 128], strides = [1, 1]} : vector<8x512xf32> to vector<8x128xf32>
    %165 = arith.negf %164 : vector<8x128xf32>
    %166 = math.exp %165 : vector<8x128xf32>
    %cst_50 = arith.constant 1.000000e+00 : f32
    %167 = vector.broadcast %cst_50 : f32 to vector<8x128xf32>
    %168 = arith.addf %167, %166 : vector<8x128xf32>
    %169 = arith.divf %167, %168 : vector<8x128xf32>
    %170 = vector.extract_strided_slice %157 {offsets = [0, 256], sizes = [8, 128], strides = [1, 1]} : vector<8x512xf32> to vector<8x128xf32>
    %171 = math.tanh %170 : vector<8x128xf32>
    %172 = vector.extract_strided_slice %157 {offsets = [0, 384], sizes = [8, 128], strides = [1, 1]} : vector<8x512xf32> to vector<8x128xf32>
    %173 = arith.negf %172 : vector<8x128xf32>
    %174 = math.exp %173 : vector<8x128xf32>
    %cst_51 = arith.constant 1.000000e+00 : f32
    %175 = vector.broadcast %cst_51 : f32 to vector<8x128xf32>
    %176 = arith.addf %175, %174 : vector<8x128xf32>
    %177 = arith.divf %175, %176 : vector<8x128xf32>
    %178 = arith.mulf %169, %151 : vector<8x128xf32>
    %179 = arith.mulf %163, %171 : vector<8x128xf32>
    %180 = arith.addf %178, %179 : vector<8x128xf32>
    %181 = math.tanh %180 : vector<8x128xf32>
    %182 = arith.mulf %177, %181 : vector<8x128xf32>
    %c40_52 = arith.constant 40 : index
    %c0_53 = arith.constant 0 : index
    %183 = vector.load %arg12[%c40_52, %c0_53] : memref<64x128xf32, #tpu.memory_space<vmem>>, vector<8x128xf32>
    tpu.vector_store %arg12[%c40_52, %c0_53], %182 {strides = array<i32>} : memref<64x128xf32, #tpu.memory_space<vmem>>, vector<8x128xf32>,
    %c48 = arith.constant 48 : index
    %c0_54 = arith.constant 0 : index
    %184 = vector.load %arg11[%c48, %c0_54] : memref<64x512xf32, #tpu.memory_space<vmem>>, vector<8x512xf32>
    %cst_55 = arith.constant dense<0.000000e+00> : vector<8x512xf32>
    %185 = tpu.matmul %182, %2, %cst_55 {dimension_numbers = #tpu.dot_dimension_numbers<[1], [0], [0], [1], [0, 0, 1, 1], [], []>} : vector<8x128xf32>, vector<128x512xf32>, vector<8x512xf32> -> vector<8x512xf32>
    %186 = arith.addf %184, %185 : vector<8x512xf32>
    %187 = vector.extract_strided_slice %186 {offsets = [0, 0], sizes = [8, 128], strides = [1, 1]} : vector<8x512xf32> to vector<8x128xf32>
    %188 = arith.negf %187 : vector<8x128xf32>
    %189 = math.exp %188 : vector<8x128xf32>
    %cst_56 = arith.constant 1.000000e+00 : f32
    %190 = vector.broadcast %cst_56 : f32 to vector<8x128xf32>
    %191 = arith.addf %190, %189 : vector<8x128xf32>
    %192 = arith.divf %190, %191 : vector<8x128xf32>
    %193 = vector.extract_strided_slice %186 {offsets = [0, 128], sizes = [8, 128], strides = [1, 1]} : vector<8x512xf32> to vector<8x128xf32>
    %194 = arith.negf %193 : vector<8x128xf32>
    %195 = math.exp %194 : vector<8x128xf32>
    %cst_57 = arith.constant 1.000000e+00 : f32
    %196 = vector.broadcast %cst_57 : f32 to vector<8x128xf32>
    %197 = arith.addf %196, %195 : vector<8x128xf32>
    %198 = arith.divf %196, %197 : vector<8x128xf32>
    %199 = vector.extract_strided_slice %186 {offsets = [0, 256], sizes = [8, 128], strides = [1, 1]} : vector<8x512xf32> to vector<8x128xf32>
    %200 = math.tanh %199 : vector<8x128xf32>
    %201 = vector.extract_strided_slice %186 {offsets = [0, 384], sizes = [8, 128], strides = [1, 1]} : vector<8x512xf32> to vector<8x128xf32>
    %202 = arith.negf %201 : vector<8x128xf32>
    %203 = math.exp %202 : vector<8x128xf32>
    %cst_58 = arith.constant 1.000000e+00 : f32
    %204 = vector.broadcast %cst_58 : f32 to vector<8x128xf32>
    %205 = arith.addf %204, %203 : vector<8x128xf32>
    %206 = arith.divf %204, %205 : vector<8x128xf32>
    %207 = arith.mulf %198, %180 : vector<8x128xf32>
    %208 = arith.mulf %192, %200 : vector<8x128xf32>
    %209 = arith.addf %207, %208 : vector<8x128xf32>
    %210 = math.tanh %209 : vector<8x128xf32>
    %211 = arith.mulf %206, %210 : vector<8x128xf32>
    %c48_59 = arith.constant 48 : index
    %c0_60 = arith.constant 0 : index
    %212 = vector.load %arg12[%c48_59, %c0_60] : memref<64x128xf32, #tpu.memory_space<vmem>>, vector<8x128xf32>
    tpu.vector_store %arg12[%c48_59, %c0_60], %211 {strides = array<i32>} : memref<64x128xf32, #tpu.memory_space<vmem>>, vector<8x128xf32>,
    %c56 = arith.constant 56 : index
    %c0_61 = arith.constant 0 : index
    %213 = vector.load %arg11[%c56, %c0_61] : memref<64x512xf32, #tpu.memory_space<vmem>>, vector<8x512xf32>
    %cst_62 = arith.constant dense<0.000000e+00> : vector<8x512xf32>
    %214 = tpu.matmul %211, %2, %cst_62 {dimension_numbers = #tpu.dot_dimension_numbers<[1], [0], [0], [1], [0, 0, 1, 1], [], []>} : vector<8x128xf32>, vector<128x512xf32>, vector<8x512xf32> -> vector<8x512xf32>
    %215 = arith.addf %213, %214 : vector<8x512xf32>
    %216 = vector.extract_strided_slice %215 {offsets = [0, 0], sizes = [8, 128], strides = [1, 1]} : vector<8x512xf32> to vector<8x128xf32>
    %217 = arith.negf %216 : vector<8x128xf32>
    %218 = math.exp %217 : vector<8x128xf32>
    %cst_63 = arith.constant 1.000000e+00 : f32
    %219 = vector.broadcast %cst_63 : f32 to vector<8x128xf32>
    %220 = arith.addf %219, %218 : vector<8x128xf32>
    %221 = arith.divf %219, %220 : vector<8x128xf32>
    %222 = vector.extract_strided_slice %215 {offsets = [0, 128], sizes = [8, 128], strides = [1, 1]} : vector<8x512xf32> to vector<8x128xf32>
    %223 = arith.negf %222 : vector<8x128xf32>
    %224 = math.exp %223 : vector<8x128xf32>
    %cst_64 = arith.constant 1.000000e+00 : f32
    %225 = vector.broadcast %cst_64 : f32 to vector<8x128xf32>
    %226 = arith.addf %225, %224 : vector<8x128xf32>
    %227 = arith.divf %225, %226 : vector<8x128xf32>
    %228 = vector.extract_strided_slice %215 {offsets = [0, 256], sizes = [8, 128], strides = [1, 1]} : vector<8x512xf32> to vector<8x128xf32>
    %229 = math.tanh %228 : vector<8x128xf32>
    %230 = vector.extract_strided_slice %215 {offsets = [0, 384], sizes = [8, 128], strides = [1, 1]} : vector<8x512xf32> to vector<8x128xf32>
    %231 = arith.negf %230 : vector<8x128xf32>
    %232 = math.exp %231 : vector<8x128xf32>
    %cst_65 = arith.constant 1.000000e+00 : f32
    %233 = vector.broadcast %cst_65 : f32 to vector<8x128xf32>
    %234 = arith.addf %233, %232 : vector<8x128xf32>
    %235 = arith.divf %233, %234 : vector<8x128xf32>
    %236 = arith.mulf %227, %209 : vector<8x128xf32>
    %237 = arith.mulf %221, %229 : vector<8x128xf32>
    %238 = arith.addf %236, %237 : vector<8x128xf32>
    %239 = math.tanh %238 : vector<8x128xf32>
    %240 = arith.mulf %235, %239 : vector<8x128xf32>
    %c56_66 = arith.constant 56 : index
    %c0_67 = arith.constant 0 : index
    %241 = vector.load %arg12[%c56_66, %c0_67] : memref<64x128xf32, #tpu.memory_space<vmem>>, vector<8x128xf32>
    tpu.vector_store %arg12[%c56_66, %c0_67], %240 {strides = array<i32>} : memref<64x128xf32, #tpu.memory_space<vmem>>, vector<8x128xf32>,
    %c0_68 = arith.constant 0 : index
    %c0_69 = arith.constant 0 : index
    %242 = vector.load %arg12[%c0_68, %c0_69] : memref<64x128xf32, #tpu.memory_space<vmem>>, vector<64x128xf32>
    %c0_70 = arith.constant 0 : index
    %c0_71 = arith.constant 0 : index
    %243 = vector.load %arg5[%c0_70, %c0_71] : memref<128x512xf32, #tpu.memory_space<vmem>>, vector<128x512xf32>
    %c0_72 = arith.constant 0 : index
    %c0_73 = arith.constant 0 : index
    %244 = vector.load %arg6[%c0_72, %c0_73] : memref<128x512xf32, #tpu.memory_space<vmem>>, vector<128x512xf32>
    %c0_74 = arith.constant 0 : index
    %c0_75 = arith.constant 0 : index
    %245 = vector.load %arg7[%c0_74, %c0_75] : memref<1x512xf32, #tpu.memory_space<vmem>>, vector<1x512xf32>
    %cst_76 = arith.constant dense<0.000000e+00> : vector<64x512xf32>
    %246 = tpu.matmul %242, %243, %cst_76 {dimension_numbers = #tpu.dot_dimension_numbers<[1], [0], [0], [1], [0, 0, 1, 1], [], []>} : vector<64x128xf32>, vector<128x512xf32>, vector<64x512xf32> -> vector<64x512xf32>
    %247 = vector.broadcast %245 : vector<1x512xf32> to vector<64x512xf32>
    %248 = arith.addf %246, %247 : vector<64x512xf32>
    %c0_77 = arith.constant 0 : index
    %c0_78 = arith.constant 0 : index
    %249 = vector.load %arg11[%c0_77, %c0_78] : memref<64x512xf32, #tpu.memory_space<vmem>>, vector<64x512xf32>
    tpu.vector_store %arg11[%c0_77, %c0_78], %248 {strides = array<i32>} : memref<64x512xf32, #tpu.memory_space<vmem>>, vector<64x512xf32>,
    %cst_79 = arith.constant 0.000000e+00 : f32
    %250 = vector.broadcast %cst_79 : f32 to vector<8x128xf32>
    %cst_80 = arith.constant 0.000000e+00 : f32
    %251 = vector.broadcast %cst_80 : f32 to vector<8x128xf32>
    %c0_81 = arith.constant 0 : index
    %c0_82 = arith.constant 0 : index
    %252 = vector.load %arg11[%c0_81, %c0_82] : memref<64x512xf32, #tpu.memory_space<vmem>>, vector<8x512xf32>
    %cst_83 = arith.constant dense<0.000000e+00> : vector<8x512xf32>
    %253 = tpu.matmul %250, %244, %cst_83 {dimension_numbers = #tpu.dot_dimension_numbers<[1], [0], [0], [1], [0, 0, 1, 1], [], []>} : vector<8x128xf32>, vector<128x512xf32>, vector<8x512xf32> -> vector<8x512xf32>
    %254 = arith.addf %252, %253 : vector<8x512xf32>
    %255 = vector.extract_strided_slice %254 {offsets = [0, 0], sizes = [8, 128], strides = [1, 1]} : vector<8x512xf32> to vector<8x128xf32>
    %256 = arith.negf %255 : vector<8x128xf32>
    %257 = math.exp %256 : vector<8x128xf32>
    %cst_84 = arith.constant 1.000000e+00 : f32
    %258 = vector.broadcast %cst_84 : f32 to vector<8x128xf32>
    %259 = arith.addf %258, %257 : vector<8x128xf32>
    %260 = arith.divf %258, %259 : vector<8x128xf32>
    %261 = vector.extract_strided_slice %254 {offsets = [0, 128], sizes = [8, 128], strides = [1, 1]} : vector<8x512xf32> to vector<8x128xf32>
    %262 = arith.negf %261 : vector<8x128xf32>
    %263 = math.exp %262 : vector<8x128xf32>
    %cst_85 = arith.constant 1.000000e+00 : f32
    %264 = vector.broadcast %cst_85 : f32 to vector<8x128xf32>
    %265 = arith.addf %264, %263 : vector<8x128xf32>
    %266 = arith.divf %264, %265 : vector<8x128xf32>
    %267 = vector.extract_strided_slice %254 {offsets = [0, 256], sizes = [8, 128], strides = [1, 1]} : vector<8x512xf32> to vector<8x128xf32>
    %268 = math.tanh %267 : vector<8x128xf32>
    %269 = vector.extract_strided_slice %254 {offsets = [0, 384], sizes = [8, 128], strides = [1, 1]} : vector<8x512xf32> to vector<8x128xf32>
    %270 = arith.negf %269 : vector<8x128xf32>
    %271 = math.exp %270 : vector<8x128xf32>
    %cst_86 = arith.constant 1.000000e+00 : f32
    %272 = vector.broadcast %cst_86 : f32 to vector<8x128xf32>
    %273 = arith.addf %272, %271 : vector<8x128xf32>
    %274 = arith.divf %272, %273 : vector<8x128xf32>
    %275 = arith.mulf %266, %251 : vector<8x128xf32>
    %276 = arith.mulf %260, %268 : vector<8x128xf32>
    %277 = arith.addf %275, %276 : vector<8x128xf32>
    %278 = math.tanh %277 : vector<8x128xf32>
    %279 = arith.mulf %274, %278 : vector<8x128xf32>
    %c0_87 = arith.constant 0 : index
    %c0_88 = arith.constant 0 : index
    %280 = vector.load %arg13[%c0_87, %c0_88] : memref<64x128xf32, #tpu.memory_space<vmem>>, vector<8x128xf32>
    tpu.vector_store %arg13[%c0_87, %c0_88], %279 {strides = array<i32>} : memref<64x128xf32, #tpu.memory_space<vmem>>, vector<8x128xf32>,
    %c8_89 = arith.constant 8 : index
    %c0_90 = arith.constant 0 : index
    %281 = vector.load %arg11[%c8_89, %c0_90] : memref<64x512xf32, #tpu.memory_space<vmem>>, vector<8x512xf32>
    %cst_91 = arith.constant dense<0.000000e+00> : vector<8x512xf32>
    %282 = tpu.matmul %279, %244, %cst_91 {dimension_numbers = #tpu.dot_dimension_numbers<[1], [0], [0], [1], [0, 0, 1, 1], [], []>} : vector<8x128xf32>, vector<128x512xf32>, vector<8x512xf32> -> vector<8x512xf32>
    %283 = arith.addf %281, %282 : vector<8x512xf32>
    %284 = vector.extract_strided_slice %283 {offsets = [0, 0], sizes = [8, 128], strides = [1, 1]} : vector<8x512xf32> to vector<8x128xf32>
    %285 = arith.negf %284 : vector<8x128xf32>
    %286 = math.exp %285 : vector<8x128xf32>
    %cst_92 = arith.constant 1.000000e+00 : f32
    %287 = vector.broadcast %cst_92 : f32 to vector<8x128xf32>
    %288 = arith.addf %287, %286 : vector<8x128xf32>
    %289 = arith.divf %287, %288 : vector<8x128xf32>
    %290 = vector.extract_strided_slice %283 {offsets = [0, 128], sizes = [8, 128], strides = [1, 1]} : vector<8x512xf32> to vector<8x128xf32>
    %291 = arith.negf %290 : vector<8x128xf32>
    %292 = math.exp %291 : vector<8x128xf32>
    %cst_93 = arith.constant 1.000000e+00 : f32
    %293 = vector.broadcast %cst_93 : f32 to vector<8x128xf32>
    %294 = arith.addf %293, %292 : vector<8x128xf32>
    %295 = arith.divf %293, %294 : vector<8x128xf32>
    %296 = vector.extract_strided_slice %283 {offsets = [0, 256], sizes = [8, 128], strides = [1, 1]} : vector<8x512xf32> to vector<8x128xf32>
    %297 = math.tanh %296 : vector<8x128xf32>
    %298 = vector.extract_strided_slice %283 {offsets = [0, 384], sizes = [8, 128], strides = [1, 1]} : vector<8x512xf32> to vector<8x128xf32>
    %299 = arith.negf %298 : vector<8x128xf32>
    %300 = math.exp %299 : vector<8x128xf32>
    %cst_94 = arith.constant 1.000000e+00 : f32
    %301 = vector.broadcast %cst_94 : f32 to vector<8x128xf32>
    %302 = arith.addf %301, %300 : vector<8x128xf32>
    %303 = arith.divf %301, %302 : vector<8x128xf32>
    %304 = arith.mulf %295, %277 : vector<8x128xf32>
    %305 = arith.mulf %289, %297 : vector<8x128xf32>
    %306 = arith.addf %304, %305 : vector<8x128xf32>
    %307 = math.tanh %306 : vector<8x128xf32>
    %308 = arith.mulf %303, %307 : vector<8x128xf32>
    %c8_95 = arith.constant 8 : index
    %c0_96 = arith.constant 0 : index
    %309 = vector.load %arg13[%c8_95, %c0_96] : memref<64x128xf32, #tpu.memory_space<vmem>>, vector<8x128xf32>
    tpu.vector_store %arg13[%c8_95, %c0_96], %308 {strides = array<i32>} : memref<64x128xf32, #tpu.memory_space<vmem>>, vector<8x128xf32>,
    %c16_97 = arith.constant 16 : index
    %c0_98 = arith.constant 0 : index
    %310 = vector.load %arg11[%c16_97, %c0_98] : memref<64x512xf32, #tpu.memory_space<vmem>>, vector<8x512xf32>
    %cst_99 = arith.constant dense<0.000000e+00> : vector<8x512xf32>
    %311 = tpu.matmul %308, %244, %cst_99 {dimension_numbers = #tpu.dot_dimension_numbers<[1], [0], [0], [1], [0, 0, 1, 1], [], []>} : vector<8x128xf32>, vector<128x512xf32>, vector<8x512xf32> -> vector<8x512xf32>
    %312 = arith.addf %310, %311 : vector<8x512xf32>
    %313 = vector.extract_strided_slice %312 {offsets = [0, 0], sizes = [8, 128], strides = [1, 1]} : vector<8x512xf32> to vector<8x128xf32>
    %314 = arith.negf %313 : vector<8x128xf32>
    %315 = math.exp %314 : vector<8x128xf32>
    %cst_100 = arith.constant 1.000000e+00 : f32
    %316 = vector.broadcast %cst_100 : f32 to vector<8x128xf32>
    %317 = arith.addf %316, %315 : vector<8x128xf32>
    %318 = arith.divf %316, %317 : vector<8x128xf32>
    %319 = vector.extract_strided_slice %312 {offsets = [0, 128], sizes = [8, 128], strides = [1, 1]} : vector<8x512xf32> to vector<8x128xf32>
    %320 = arith.negf %319 : vector<8x128xf32>
    %321 = math.exp %320 : vector<8x128xf32>
    %cst_101 = arith.constant 1.000000e+00 : f32
    %322 = vector.broadcast %cst_101 : f32 to vector<8x128xf32>
    %323 = arith.addf %322, %321 : vector<8x128xf32>
    %324 = arith.divf %322, %323 : vector<8x128xf32>
    %325 = vector.extract_strided_slice %312 {offsets = [0, 256], sizes = [8, 128], strides = [1, 1]} : vector<8x512xf32> to vector<8x128xf32>
    %326 = math.tanh %325 : vector<8x128xf32>
    %327 = vector.extract_strided_slice %312 {offsets = [0, 384], sizes = [8, 128], strides = [1, 1]} : vector<8x512xf32> to vector<8x128xf32>
    %328 = arith.negf %327 : vector<8x128xf32>
    %329 = math.exp %328 : vector<8x128xf32>
    %cst_102 = arith.constant 1.000000e+00 : f32
    %330 = vector.broadcast %cst_102 : f32 to vector<8x128xf32>
    %331 = arith.addf %330, %329 : vector<8x128xf32>
    %332 = arith.divf %330, %331 : vector<8x128xf32>
    %333 = arith.mulf %324, %306 : vector<8x128xf32>
    %334 = arith.mulf %318, %326 : vector<8x128xf32>
    %335 = arith.addf %333, %334 : vector<8x128xf32>
    %336 = math.tanh %335 : vector<8x128xf32>
    %337 = arith.mulf %332, %336 : vector<8x128xf32>
    %c16_103 = arith.constant 16 : index
    %c0_104 = arith.constant 0 : index
    %338 = vector.load %arg13[%c16_103, %c0_104] : memref<64x128xf32, #tpu.memory_space<vmem>>, vector<8x128xf32>
    tpu.vector_store %arg13[%c16_103, %c0_104], %337 {strides = array<i32>} : memref<64x128xf32, #tpu.memory_space<vmem>>, vector<8x128xf32>,
    %c24_105 = arith.constant 24 : index
    %c0_106 = arith.constant 0 : index
    %339 = vector.load %arg11[%c24_105, %c0_106] : memref<64x512xf32, #tpu.memory_space<vmem>>, vector<8x512xf32>
    %cst_107 = arith.constant dense<0.000000e+00> : vector<8x512xf32>
    %340 = tpu.matmul %337, %244, %cst_107 {dimension_numbers = #tpu.dot_dimension_numbers<[1], [0], [0], [1], [0, 0, 1, 1], [], []>} : vector<8x128xf32>, vector<128x512xf32>, vector<8x512xf32> -> vector<8x512xf32>
    %341 = arith.addf %339, %340 : vector<8x512xf32>
    %342 = vector.extract_strided_slice %341 {offsets = [0, 0], sizes = [8, 128], strides = [1, 1]} : vector<8x512xf32> to vector<8x128xf32>
    %343 = arith.negf %342 : vector<8x128xf32>
    %344 = math.exp %343 : vector<8x128xf32>
    %cst_108 = arith.constant 1.000000e+00 : f32
    %345 = vector.broadcast %cst_108 : f32 to vector<8x128xf32>
    %346 = arith.addf %345, %344 : vector<8x128xf32>
    %347 = arith.divf %345, %346 : vector<8x128xf32>
    %348 = vector.extract_strided_slice %341 {offsets = [0, 128], sizes = [8, 128], strides = [1, 1]} : vector<8x512xf32> to vector<8x128xf32>
    %349 = arith.negf %348 : vector<8x128xf32>
    %350 = math.exp %349 : vector<8x128xf32>
    %cst_109 = arith.constant 1.000000e+00 : f32
    %351 = vector.broadcast %cst_109 : f32 to vector<8x128xf32>
    %352 = arith.addf %351, %350 : vector<8x128xf32>
    %353 = arith.divf %351, %352 : vector<8x128xf32>
    %354 = vector.extract_strided_slice %341 {offsets = [0, 256], sizes = [8, 128], strides = [1, 1]} : vector<8x512xf32> to vector<8x128xf32>
    %355 = math.tanh %354 : vector<8x128xf32>
    %356 = vector.extract_strided_slice %341 {offsets = [0, 384], sizes = [8, 128], strides = [1, 1]} : vector<8x512xf32> to vector<8x128xf32>
    %357 = arith.negf %356 : vector<8x128xf32>
    %358 = math.exp %357 : vector<8x128xf32>
    %cst_110 = arith.constant 1.000000e+00 : f32
    %359 = vector.broadcast %cst_110 : f32 to vector<8x128xf32>
    %360 = arith.addf %359, %358 : vector<8x128xf32>
    %361 = arith.divf %359, %360 : vector<8x128xf32>
    %362 = arith.mulf %353, %335 : vector<8x128xf32>
    %363 = arith.mulf %347, %355 : vector<8x128xf32>
    %364 = arith.addf %362, %363 : vector<8x128xf32>
    %365 = math.tanh %364 : vector<8x128xf32>
    %366 = arith.mulf %361, %365 : vector<8x128xf32>
    %c24_111 = arith.constant 24 : index
    %c0_112 = arith.constant 0 : index
    %367 = vector.load %arg13[%c24_111, %c0_112] : memref<64x128xf32, #tpu.memory_space<vmem>>, vector<8x128xf32>
    tpu.vector_store %arg13[%c24_111, %c0_112], %366 {strides = array<i32>} : memref<64x128xf32, #tpu.memory_space<vmem>>, vector<8x128xf32>,
    %c32_113 = arith.constant 32 : index
    %c0_114 = arith.constant 0 : index
    %368 = vector.load %arg11[%c32_113, %c0_114] : memref<64x512xf32, #tpu.memory_space<vmem>>, vector<8x512xf32>
    %cst_115 = arith.constant dense<0.000000e+00> : vector<8x512xf32>
    %369 = tpu.matmul %366, %244, %cst_115 {dimension_numbers = #tpu.dot_dimension_numbers<[1], [0], [0], [1], [0, 0, 1, 1], [], []>} : vector<8x128xf32>, vector<128x512xf32>, vector<8x512xf32> -> vector<8x512xf32>
    %370 = arith.addf %368, %369 : vector<8x512xf32>
    %371 = vector.extract_strided_slice %370 {offsets = [0, 0], sizes = [8, 128], strides = [1, 1]} : vector<8x512xf32> to vector<8x128xf32>
    %372 = arith.negf %371 : vector<8x128xf32>
    %373 = math.exp %372 : vector<8x128xf32>
    %cst_116 = arith.constant 1.000000e+00 : f32
    %374 = vector.broadcast %cst_116 : f32 to vector<8x128xf32>
    %375 = arith.addf %374, %373 : vector<8x128xf32>
    %376 = arith.divf %374, %375 : vector<8x128xf32>
    %377 = vector.extract_strided_slice %370 {offsets = [0, 128], sizes = [8, 128], strides = [1, 1]} : vector<8x512xf32> to vector<8x128xf32>
    %378 = arith.negf %377 : vector<8x128xf32>
    %379 = math.exp %378 : vector<8x128xf32>
    %cst_117 = arith.constant 1.000000e+00 : f32
    %380 = vector.broadcast %cst_117 : f32 to vector<8x128xf32>
    %381 = arith.addf %380, %379 : vector<8x128xf32>
    %382 = arith.divf %380, %381 : vector<8x128xf32>
    %383 = vector.extract_strided_slice %370 {offsets = [0, 256], sizes = [8, 128], strides = [1, 1]} : vector<8x512xf32> to vector<8x128xf32>
    %384 = math.tanh %383 : vector<8x128xf32>
    %385 = vector.extract_strided_slice %370 {offsets = [0, 384], sizes = [8, 128], strides = [1, 1]} : vector<8x512xf32> to vector<8x128xf32>
    %386 = arith.negf %385 : vector<8x128xf32>
    %387 = math.exp %386 : vector<8x128xf32>
    %cst_118 = arith.constant 1.000000e+00 : f32
    %388 = vector.broadcast %cst_118 : f32 to vector<8x128xf32>
    %389 = arith.addf %388, %387 : vector<8x128xf32>
    %390 = arith.divf %388, %389 : vector<8x128xf32>
    %391 = arith.mulf %382, %364 : vector<8x128xf32>
    %392 = arith.mulf %376, %384 : vector<8x128xf32>
    %393 = arith.addf %391, %392 : vector<8x128xf32>
    %394 = math.tanh %393 : vector<8x128xf32>
    %395 = arith.mulf %390, %394 : vector<8x128xf32>
    %c32_119 = arith.constant 32 : index
    %c0_120 = arith.constant 0 : index
    %396 = vector.load %arg13[%c32_119, %c0_120] : memref<64x128xf32, #tpu.memory_space<vmem>>, vector<8x128xf32>
    tpu.vector_store %arg13[%c32_119, %c0_120], %395 {strides = array<i32>} : memref<64x128xf32, #tpu.memory_space<vmem>>, vector<8x128xf32>,
    %c40_121 = arith.constant 40 : index
    %c0_122 = arith.constant 0 : index
    %397 = vector.load %arg11[%c40_121, %c0_122] : memref<64x512xf32, #tpu.memory_space<vmem>>, vector<8x512xf32>
    %cst_123 = arith.constant dense<0.000000e+00> : vector<8x512xf32>
    %398 = tpu.matmul %395, %244, %cst_123 {dimension_numbers = #tpu.dot_dimension_numbers<[1], [0], [0], [1], [0, 0, 1, 1], [], []>} : vector<8x128xf32>, vector<128x512xf32>, vector<8x512xf32> -> vector<8x512xf32>
    %399 = arith.addf %397, %398 : vector<8x512xf32>
    %400 = vector.extract_strided_slice %399 {offsets = [0, 0], sizes = [8, 128], strides = [1, 1]} : vector<8x512xf32> to vector<8x128xf32>
    %401 = arith.negf %400 : vector<8x128xf32>
    %402 = math.exp %401 : vector<8x128xf32>
    %cst_124 = arith.constant 1.000000e+00 : f32
    %403 = vector.broadcast %cst_124 : f32 to vector<8x128xf32>
    %404 = arith.addf %403, %402 : vector<8x128xf32>
    %405 = arith.divf %403, %404 : vector<8x128xf32>
    %406 = vector.extract_strided_slice %399 {offsets = [0, 128], sizes = [8, 128], strides = [1, 1]} : vector<8x512xf32> to vector<8x128xf32>
    %407 = arith.negf %406 : vector<8x128xf32>
    %408 = math.exp %407 : vector<8x128xf32>
    %cst_125 = arith.constant 1.000000e+00 : f32
    %409 = vector.broadcast %cst_125 : f32 to vector<8x128xf32>
    %410 = arith.addf %409, %408 : vector<8x128xf32>
    %411 = arith.divf %409, %410 : vector<8x128xf32>
    %412 = vector.extract_strided_slice %399 {offsets = [0, 256], sizes = [8, 128], strides = [1, 1]} : vector<8x512xf32> to vector<8x128xf32>
    %413 = math.tanh %412 : vector<8x128xf32>
    %414 = vector.extract_strided_slice %399 {offsets = [0, 384], sizes = [8, 128], strides = [1, 1]} : vector<8x512xf32> to vector<8x128xf32>
    %415 = arith.negf %414 : vector<8x128xf32>
    %416 = math.exp %415 : vector<8x128xf32>
    %cst_126 = arith.constant 1.000000e+00 : f32
    %417 = vector.broadcast %cst_126 : f32 to vector<8x128xf32>
    %418 = arith.addf %417, %416 : vector<8x128xf32>
    %419 = arith.divf %417, %418 : vector<8x128xf32>
    %420 = arith.mulf %411, %393 : vector<8x128xf32>
    %421 = arith.mulf %405, %413 : vector<8x128xf32>
    %422 = arith.addf %420, %421 : vector<8x128xf32>
    %423 = math.tanh %422 : vector<8x128xf32>
    %424 = arith.mulf %419, %423 : vector<8x128xf32>
    %c40_127 = arith.constant 40 : index
    %c0_128 = arith.constant 0 : index
    %425 = vector.load %arg13[%c40_127, %c0_128] : memref<64x128xf32, #tpu.memory_space<vmem>>, vector<8x128xf32>
    tpu.vector_store %arg13[%c40_127, %c0_128], %424 {strides = array<i32>} : memref<64x128xf32, #tpu.memory_space<vmem>>, vector<8x128xf32>,
    %c48_129 = arith.constant 48 : index
    %c0_130 = arith.constant 0 : index
    %426 = vector.load %arg11[%c48_129, %c0_130] : memref<64x512xf32, #tpu.memory_space<vmem>>, vector<8x512xf32>
    %cst_131 = arith.constant dense<0.000000e+00> : vector<8x512xf32>
    %427 = tpu.matmul %424, %244, %cst_131 {dimension_numbers = #tpu.dot_dimension_numbers<[1], [0], [0], [1], [0, 0, 1, 1], [], []>} : vector<8x128xf32>, vector<128x512xf32>, vector<8x512xf32> -> vector<8x512xf32>
    %428 = arith.addf %426, %427 : vector<8x512xf32>
    %429 = vector.extract_strided_slice %428 {offsets = [0, 0], sizes = [8, 128], strides = [1, 1]} : vector<8x512xf32> to vector<8x128xf32>
    %430 = arith.negf %429 : vector<8x128xf32>
    %431 = math.exp %430 : vector<8x128xf32>
    %cst_132 = arith.constant 1.000000e+00 : f32
    %432 = vector.broadcast %cst_132 : f32 to vector<8x128xf32>
    %433 = arith.addf %432, %431 : vector<8x128xf32>
    %434 = arith.divf %432, %433 : vector<8x128xf32>
    %435 = vector.extract_strided_slice %428 {offsets = [0, 128], sizes = [8, 128], strides = [1, 1]} : vector<8x512xf32> to vector<8x128xf32>
    %436 = arith.negf %435 : vector<8x128xf32>
    %437 = math.exp %436 : vector<8x128xf32>
    %cst_133 = arith.constant 1.000000e+00 : f32
    %438 = vector.broadcast %cst_133 : f32 to vector<8x128xf32>
    %439 = arith.addf %438, %437 : vector<8x128xf32>
    %440 = arith.divf %438, %439 : vector<8x128xf32>
    %441 = vector.extract_strided_slice %428 {offsets = [0, 256], sizes = [8, 128], strides = [1, 1]} : vector<8x512xf32> to vector<8x128xf32>
    %442 = math.tanh %441 : vector<8x128xf32>
    %443 = vector.extract_strided_slice %428 {offsets = [0, 384], sizes = [8, 128], strides = [1, 1]} : vector<8x512xf32> to vector<8x128xf32>
    %444 = arith.negf %443 : vector<8x128xf32>
    %445 = math.exp %444 : vector<8x128xf32>
    %cst_134 = arith.constant 1.000000e+00 : f32
    %446 = vector.broadcast %cst_134 : f32 to vector<8x128xf32>
    %447 = arith.addf %446, %445 : vector<8x128xf32>
    %448 = arith.divf %446, %447 : vector<8x128xf32>
    %449 = arith.mulf %440, %422 : vector<8x128xf32>
    %450 = arith.mulf %434, %442 : vector<8x128xf32>
    %451 = arith.addf %449, %450 : vector<8x128xf32>
    %452 = math.tanh %451 : vector<8x128xf32>
    %453 = arith.mulf %448, %452 : vector<8x128xf32>
    %c48_135 = arith.constant 48 : index
    %c0_136 = arith.constant 0 : index
    %454 = vector.load %arg13[%c48_135, %c0_136] : memref<64x128xf32, #tpu.memory_space<vmem>>, vector<8x128xf32>
    tpu.vector_store %arg13[%c48_135, %c0_136], %453 {strides = array<i32>} : memref<64x128xf32, #tpu.memory_space<vmem>>, vector<8x128xf32>,
    %c56_137 = arith.constant 56 : index
    %c0_138 = arith.constant 0 : index
    %455 = vector.load %arg11[%c56_137, %c0_138] : memref<64x512xf32, #tpu.memory_space<vmem>>, vector<8x512xf32>
    %cst_139 = arith.constant dense<0.000000e+00> : vector<8x512xf32>
    %456 = tpu.matmul %453, %244, %cst_139 {dimension_numbers = #tpu.dot_dimension_numbers<[1], [0], [0], [1], [0, 0, 1, 1], [], []>} : vector<8x128xf32>, vector<128x512xf32>, vector<8x512xf32> -> vector<8x512xf32>
    %457 = arith.addf %455, %456 : vector<8x512xf32>
    %458 = vector.extract_strided_slice %457 {offsets = [0, 0], sizes = [8, 128], strides = [1, 1]} : vector<8x512xf32> to vector<8x128xf32>
    %459 = arith.negf %458 : vector<8x128xf32>
    %460 = math.exp %459 : vector<8x128xf32>
    %cst_140 = arith.constant 1.000000e+00 : f32
    %461 = vector.broadcast %cst_140 : f32 to vector<8x128xf32>
    %462 = arith.addf %461, %460 : vector<8x128xf32>
    %463 = arith.divf %461, %462 : vector<8x128xf32>
    %464 = vector.extract_strided_slice %457 {offsets = [0, 128], sizes = [8, 128], strides = [1, 1]} : vector<8x512xf32> to vector<8x128xf32>
    %465 = arith.negf %464 : vector<8x128xf32>
    %466 = math.exp %465 : vector<8x128xf32>
    %cst_141 = arith.constant 1.000000e+00 : f32
    %467 = vector.broadcast %cst_141 : f32 to vector<8x128xf32>
    %468 = arith.addf %467, %466 : vector<8x128xf32>
    %469 = arith.divf %467, %468 : vector<8x128xf32>
    %470 = vector.extract_strided_slice %457 {offsets = [0, 256], sizes = [8, 128], strides = [1, 1]} : vector<8x512xf32> to vector<8x128xf32>
    %471 = math.tanh %470 : vector<8x128xf32>
    %472 = vector.extract_strided_slice %457 {offsets = [0, 384], sizes = [8, 128], strides = [1, 1]} : vector<8x512xf32> to vector<8x128xf32>
    %473 = arith.negf %472 : vector<8x128xf32>
    %474 = math.exp %473 : vector<8x128xf32>
    %cst_142 = arith.constant 1.000000e+00 : f32
    %475 = vector.broadcast %cst_142 : f32 to vector<8x128xf32>
    %476 = arith.addf %475, %474 : vector<8x128xf32>
    %477 = arith.divf %475, %476 : vector<8x128xf32>
    %478 = arith.mulf %469, %451 : vector<8x128xf32>
    %479 = arith.mulf %463, %471 : vector<8x128xf32>
    %480 = arith.addf %478, %479 : vector<8x128xf32>
    %481 = math.tanh %480 : vector<8x128xf32>
    %482 = arith.mulf %477, %481 : vector<8x128xf32>
    %c56_143 = arith.constant 56 : index
    %c0_144 = arith.constant 0 : index
    %483 = vector.load %arg13[%c56_143, %c0_144] : memref<64x128xf32, #tpu.memory_space<vmem>>, vector<8x128xf32>
    tpu.vector_store %arg13[%c56_143, %c0_144], %482 {strides = array<i32>} : memref<64x128xf32, #tpu.memory_space<vmem>>, vector<8x128xf32>,
    %c0_145 = arith.constant 0 : index
    %c0_146 = arith.constant 0 : index
    %484 = vector.load %arg13[%c0_145, %c0_146] : memref<64x128xf32, #tpu.memory_space<vmem>>, vector<64x128xf32>
    %c0_147 = arith.constant 0 : index
    %c0_148 = arith.constant 0 : index
    %485 = vector.load %arg8[%c0_147, %c0_148] : memref<128x128xf32, #tpu.memory_space<vmem>>, vector<128x128xf32>
    %cst_149 = arith.constant dense<0.000000e+00> : vector<64x128xf32>
    %486 = tpu.matmul %484, %485, %cst_149 {dimension_numbers = #tpu.dot_dimension_numbers<[1], [0], [0], [1], [0, 0, 1, 1], [], []>} : vector<64x128xf32>, vector<128x128xf32>, vector<64x128xf32> -> vector<64x128xf32>
    %c0_150 = arith.constant 0 : index
    %c0_151 = arith.constant 0 : index
    %487 = vector.load %arg9[%c0_150, %c0_151] : memref<1x128xf32, #tpu.memory_space<vmem>>, vector<1x128xf32>
    %488 = vector.broadcast %487 : vector<1x128xf32> to vector<64x128xf32>
    %489 = arith.addf %486, %488 : vector<64x128xf32>
    %c0_152 = arith.constant 0 : index
    %c0_153 = arith.constant 0 : index
    %490 = vector.load %arg10[%c0_152, %c0_153] : memref<64x128xf32, #tpu.memory_space<vmem>>, vector<64x128xf32>
    tpu.vector_store %arg10[%c0_152, %c0_153], %489 {strides = array<i32>} : memref<64x128xf32, #tpu.memory_space<vmem>>, vector<64x128xf32>,
    return
  }
  func.func @transform_0(%arg0: i32) -> (i32, i32) {
    %c0_i32 = arith.constant 0 : i32
    %c0_i32_0 = arith.constant 0 : i32
    %c0_i32_1 = arith.constant 0 : i32
    return %c0_i32, %c0_i32_0 : i32, i32
  }
  func.func @transform_1(%arg0: i32) -> (i32, i32) {
    %c0_i32 = arith.constant 0 : i32
    %c0_i32_0 = arith.constant 0 : i32
    %c0_i32_1 = arith.constant 0 : i32
    return %c0_i32, %c0_i32_0 : i32, i32
  }
  func.func @transform_2(%arg0: i32) -> (i32, i32) {
    %c0_i32 = arith.constant 0 : i32
    %c0_i32_0 = arith.constant 0 : i32
    %c0_i32_1 = arith.constant 0 : i32
    return %c0_i32, %c0_i32_0 : i32, i32
  }
  func.func @transform_3(%arg0: i32) -> (i32, i32) {
    %c0_i32 = arith.constant 0 : i32
    %c0_i32_0 = arith.constant 0 : i32
    %c0_i32_1 = arith.constant 0 : i32
    return %c0_i32, %c0_i32_0 : i32, i32
  }
  func.func @transform_4(%arg0: i32) -> (i32, i32) {
    %c0_i32 = arith.constant 0 : i32
    %c0_i32_0 = arith.constant 0 : i32
    %c0_i32_1 = arith.constant 0 : i32
    return %c0_i32, %c0_i32_0 : i32, i32
  }
  func.func @transform_5(%arg0: i32) -> (i32, i32) {
    %c0_i32 = arith.constant 0 : i32
    %c0_i32_0 = arith.constant 0 : i32
    %c0_i32_1 = arith.constant 0 : i32
    return %c0_i32, %c0_i32_0 : i32, i32
  }
  func.func @transform_6(%arg0: i32) -> (i32, i32) {
    %c0_i32 = arith.constant 0 : i32
    %c0_i32_0 = arith.constant 0 : i32
    %c0_i32_1 = arith.constant 0 : i32
    return %c0_i32, %c0_i32_0 : i32, i32
  }
  func.func @transform_7(%arg0: i32) -> (i32, i32) {
    %c0_i32 = arith.constant 0 : i32
    %c0_i32_0 = arith.constant 0 : i32
    %c0_i32_1 = arith.constant 0 : i32
    return %c0_i32, %c0_i32_0 : i32, i32
  }
  func.func @transform_8(%arg0: i32) -> (i32, i32) {
    %c0_i32 = arith.constant 0 : i32
    %c0_i32_0 = arith.constant 0 : i32
    %c0_i32_1 = arith.constant 0 : i32
    return %c0_i32, %c0_i32_0 : i32, i32
  }
  func.func @transform_9(%arg0: i32) -> (i32, i32) {
    %c0_i32 = arith.constant 0 : i32
    %c0_i32_0 = arith.constant 0 : i32
    %c0_i32_1 = arith.constant 0 : i32
    return %c0_i32, %c0_i32_0 : i32, i32
  }
}

</mosaic_0001>

<bundles_post_ra>
// kernel: tpu_custom_call.1
= control target key start
LH: loop header
LB: loop body
LE: loop exit
PB: predicated region body
PF: predicated region fallthrough
CT: control target
= control target key end

     0   :  { %14 = vsyncpa [#allocation6], 0  ;;  %s6782_s0 = inlined_call_operand.vmem [shape: f32[64,5], index: 0, kind: input, shape index: {}]   ;;  %s6783_s1 = inlined_call_operand.vmem [shape: f32[5,512], index: 1, kind: input, shape index: {}]   ;;  %s6784_s2 = inlined_call_operand.hbm [shape: f32[128,512], index: 2, kind: input, shape index: {}]   ;;  %s6785_s3 = inlined_call_operand.vmem [shape: f32[1,512], index: 3, kind: input, shape index: {}]   ;;  %s6786_s4 = inlined_call_operand.hbm [shape: f32[128,512], index: 4, kind: input, shape index: {}]   ;;  %s6787_s5 = inlined_call_operand.hbm [shape: f32[128,512], index: 5, kind: input, shape index: {}]   ;;  %s6788_s6 = inlined_call_operand.vmem [shape: f32[1,512], index: 6, kind: input, shape index: {}]   ;;  %s6789_s7 = inlined_call_operand.hbm [shape: f32[128,128], index: 7, kind: input, shape index: {}]   ;;  %s6790_s8 = inlined_call_operand.vmem [shape: f32[1,128], index: 8, kind: input, shape index: {}]   ;;  %s6791_s9 = inlined_call_operand.hbm [shape: f32[64,128], index: 9, kind: output, shape index: {}]  }
   0x1   :  { %15 = vsyncpa [#allocation9], 0 }
   0x2   :  { %16 = vsyncpa [#allocation12], 0 }
   0x3   :  { %17 = vsyncpa [#allocation7], 0  ;;  %s5630_s30 = smov [#allocation8]   ;;  %s5631_s11 = smov [#allocation5]  }
   0x4   :  { %s41_s10 = sshll.u32 %s5630_s30, 4  ;;  %s27_s12 = sshll.u32 %s5631_s11, 4  ;;  %s42_s10 = int_to_ptr.vmem [resolvable:$true] %s41_s10  ;;  %s5690_s12 = int_to_ptr.vmem [resolvable:$true] %s27_s12 }
   0x5   :  { %s5512_s15 = scalar_lea.hbm %s6786_s4, 8192 }
   0x6   :  { %p5513_p0 = scmp.ne.s32.totalorder %s6786_s4, %s5512_s15  ;;  %p5516_p1 = scmp.lt.u32.totalorder %s5512_s15, %s6786_s4 }
   0x8   :  { %p5518_p2 = pnand %p5516_p1, %p5513_p0 }
   0xa   :  { %5521 = shalt.err (!%p5518_p2)
}
   0xb   :  { %s5522_s20 = scalar_lea.vmem %s42_s10, 8192  ;;  %p5527_p4 = scmp.lt.s32.totalorder %s42_s10, %s42_s10 }
   0xc   :  { %p5523_p3 = scmp.ne.s32.totalorder %s42_s10, %s5522_s20  ;;  %p5528_p5 = scmp.lt.s32.totalorder %s5522_s20, %s5522_s20 }
   0xe   :  { %p5529_p6 = por %p5528_p5, %p5527_p4 }
  0x10   :  { %p5530_p7 = pnand %p5529_p6, %p5523_p3 }
  0x12   :  { %5533 = shalt.err (!%p5530_p7)
}
  0x13   :  { %s5632_s21 = smov 512   ;;  %s5633_s22 = smov 32  }
  0x14   :  { %47 = dma.hbm_to_vmem [thread:$0]  %s6786_s4, 8192, %s42_s10, [#allocation9], %s5632_s21, %s5632_s21, %s5633_s22  }
  0x15   :  { %s5534_s27 = scalar_lea.hbm %s6784_s2, 8192 }
  0x16   :  { %p5535_p8 = scmp.ne.s32.totalorder %s6784_s2, %s5534_s27  ;;  %p5538_p9 = scmp.lt.u32.totalorder %s5534_s27, %s6784_s2 }
  0x18   :  { %p5540_p10 = pnand %p5538_p9, %p5535_p8 }
  0x1a   :  { %5543 = shalt.err (!%p5540_p10)
}
  0x1b   :  { %s5544_s13 = scalar_lea.vmem %s5690_s12, 8192  ;;  %p5549_p12 = scmp.lt.s32.totalorder %s5690_s12, %s5690_s12 }
  0x1c   :  { %p5545_p11 = scmp.ne.s32.totalorder %s5690_s12, %s5544_s13  ;;  %p5550_p13 = scmp.lt.s32.totalorder %s5544_s13, %s5544_s13 }
  0x1e   :  { %p5551_p0 = por %p5550_p13, %p5549_p12 }
  0x20   :  { %p5552_p1 = pnand %p5551_p0, %p5545_p11 }
  0x22   :  { %5555 = shalt.err (!%p5552_p1)
}
  0x23   :  { %33 = dma.hbm_to_vmem [thread:$0]  %s6784_s2, 8192, %s5690_s12, [#allocation6], %s5632_s21, %s5632_s21, %s5633_s22  }
  0x24   :  { %s5634_s14 = smov [#allocation10]   ;;  %s5635_s16 = smov [#allocation11]  }
  0x25   :  { %s53_s15 = sshll.u32 %s5634_s14, 4  ;;  %s67_s17 = sshll.u32 %s5635_s16, 4  ;;  %s54_s15 = int_to_ptr.vmem [resolvable:$true] %s53_s15  ;;  %s5727_s17 = int_to_ptr.vmem [resolvable:$true] %s67_s17 }
  0x26   :  { %s5556_s20 = scalar_lea.hbm %s6787_s5, 8192 }
  0x27   :  { %p5557_p2 = scmp.ne.s32.totalorder %s6787_s5, %s5556_s20  ;;  %p5560_p3 = scmp.lt.u32.totalorder %s5556_s20, %s6787_s5 }
  0x29   :  { %p5562_p4 = pnand %p5560_p3, %p5557_p2 }
  0x2b   :  { %5565 = shalt.err (!%p5562_p4)
}
  0x2c   :  { %s5566_s2 = scalar_lea.vmem %s54_s15, 8192  ;;  %p5571_p6 = scmp.lt.s32.totalorder %s54_s15, %s54_s15 }
  0x2d   :  { %p5567_p5 = scmp.ne.s32.totalorder %s54_s15, %s5566_s2  ;;  %p5572_p7 = scmp.lt.s32.totalorder %s5566_s2, %s5566_s2 }
  0x2f   :  { %p5573_p8 = por %p5572_p7, %p5571_p6 }
  0x31   :  { %p5574_p9 = pnand %p5573_p8, %p5567_p5 }
  0x33   :  { %5577 = shalt.err (!%p5574_p9)
}
  0x34   :  { %59 = dma.hbm_to_vmem [thread:$0]  %s6787_s5, 8192, %s54_s15, [#allocation9], %s5632_s21, %s5632_s21, %s5633_s22  }
  0x35   :  { %s5578_s30 = scalar_lea.hbm %s6789_s7, 2048 }
  0x36   :  { %p5579_p10 = scmp.ne.s32.totalorder %s6789_s7, %s5578_s30  ;;  %p5582_p11 = scmp.lt.u32.totalorder %s5578_s30, %s6789_s7 }
  0x38   :  { %p5584_p12 = pnand %p5582_p11, %p5579_p10 }
  0x3a   :  { %5587 = shalt.err (!%p5584_p12)
}
  0x3b   :  { %s5588_s14 = scalar_lea.vmem %s5727_s17, 2048  ;;  %p5593_p0 = scmp.lt.s32.totalorder %s5727_s17, %s5727_s17 }
  0x3c   :  { %p5589_p13 = scmp.ne.s32.totalorder %s5727_s17, %s5588_s14  ;;  %p5594_p1 = scmp.lt.s32.totalorder %s5588_s14, %s5588_s14 }
  0x3e   :  { %p5595_p2 = por %p5594_p1, %p5593_p0 }
  0x40   :  { %p5596_p3 = pnand %p5595_p2, %p5589_p13 }
  0x42   :  { %5599 = shalt.err (!%p5596_p3)
}
  0x43   :  { %s5636_s5 = smov 128   ;;  %s5637_s21 = smov 8  }
  0x44   :  { %73 = dma.hbm_to_vmem [thread:$0]  %s6789_s7, 2048, %s5727_s17, [#allocation12], %s5636_s5, %s5636_s5, %s5637_s21  }
  0x45   :  { %5622 = dma.done.wait [#allocation6], 8192  }
  0x46   :  { %5623 = vsyncadd [#allocation6], 4294959104 }
  0x47   :  { %5624 = dma.done.wait [#allocation9], 16384  }
  0x48   :  { %5625 = vsyncadd [#allocation9], 4294950912 }
  0x49   :  { %5626 = dma.done.wait [#allocation12], 2048  }
  0x4a   :  { %5627 = vsyncadd [#allocation12], 4294965248  ;;  %v5638_v0 = vmov 0.0   ;;  %vm211_vm0 = vcmask 1044480   ;;  %v99_v1 = vld [vmem:[%s6783_s1 + $0x18] sm:$0x1f] }
  0x4b   :  { %401 = vmatprep.mubr.f32.mxu1 %v5638_v0  ;;  %288 = vmatprep.mubr.f32.mxu0 %v5638_v0  ;;  %v98_v2 = vld [vmem:[%s6783_s1 + $0x10] sm:$0x1f]  ;;  %v88_v3 = vld [vmem:[%s6782_s0] sm:$0xff]  ;;  %vm186_vm1 = vcmask 39936   ;;  %v101_v4 = vld [vmem:[#allocation5 + $0x8] sm:$0xff] }
  0x4c   :  { %3871 = vmatprep.subr.msk.mxu1 %vm211_vm0, %v99_v1  ;;  %v105_v5 = vld [vmem:[#allocation5 + $0x28] sm:$0xff]  ;;  %v100_v6 = vld [vmem:[#allocation5] sm:$0xff]  ;;  %v90_v24 = vld [vmem:[%s6782_s0 + $0x10] sm:$0xff] }
  0x4d   :  { %3872 = vmatpush1.msk.msra.mxu1 %vm211_vm0, %v98_v2  ;;  %v5777_v7 = vpack.c.bf16 %v105_v5, %v101_v4  ;;  %v104_v8 = vld [vmem:[#allocation5 + $0x20] sm:$0xff]  ;;  %v109_v9 = vld [vmem:[#allocation5 + $0x48] sm:$0xff]  ;;  %v91_v31 = vld [vmem:[%s6782_s0 + $0x18] sm:$0xff] }
  0x4e   :  { %3873 = vmatmul.mubr.msk.f32.vlgmr.msra.gmra.mrb[0].mxu1 %vm186_vm1, %v88_v3  ;;  %v5780_v10 = vpack.c.bf16 %v104_v8, %v100_v6  ;;  %v113_v11 = vld [vmem:[#allocation5 + $0x68] sm:$0xff]  ;;  %v108_v12 = vld [vmem:[#allocation5 + $0x40] sm:$0xff]  ;;  %v94_v54 = vld [vmem:[%s6782_s0 + $0x30] sm:$0xff] }
  0x4f   :  { %v112_v13 = vld [vmem:[#allocation5 + $0x60] sm:$0xff]  ;;  %3999 = vmatprep.subr.bf16.mxu1 %v5777_v7  ;;  %407 = vmatprep.mubr.f32.mxu1 %v5638_v0  ;;  %v89_v14 = vld [vmem:[%s6782_s0 + $0x8] sm:$0xff]  ;;  %v5787_v15 = vpack.c.bf16 %v113_v11, %v109_v9  ;;  %v103_v59 = vld [vmem:[#allocation5 + $0x18] sm:$0xff] }
  0x50   :  { %v117_v16 = vld [vmem:[#allocation5 + $0x88] sm:$0xff]  ;;  %4001 = vmatpush1.bf16.msra.mxu1 %v5780_v10  ;;  %v5790_v18 = vpack.c.bf16 %v112_v13, %v108_v12  ;;  %v116_v20 = vld [vmem:[#allocation5 + $0x80] sm:$0xff]  ;;  %v107_v60 = vld [vmem:[#allocation5 + $0x38] sm:$0xff] }
  0x51   :  { %v121_v17 = vld [vmem:[#allocation5 + $0xa8] sm:$0xff]  ;;  %4003 = vmatprep.subr.bf16.mxu1 %v5787_v15  ;;  %v120_v21 = vld [vmem:[#allocation5 + $0xa0] sm:$0xff]  ;;  %v95_v61 = vld [vmem:[%s6782_s0 + $0x38] sm:$0xff]  ;;  %v5882_v63 = vpack.c.bf16 %v107_v60, %v103_v59 }
  0x52   :  { %v5793_v19 = vpack.c.bf16 %v121_v17, %v117_v16  ;;  %3874 = vmatmul.mubr.msk.f32.gmra.mrb[2].mxu1 %vm186_vm1, %v89_v14  ;;  %v125_v22 = vld [vmem:[#allocation5 + $0xc8] sm:$0xff]  ;;  %v5801_v25 = vpack.c.bf16 %v120_v21, %v116_v20  ;;  %v124_v27 = vld [vmem:[#allocation5 + $0xc0] sm:$0xff]  ;;  %v102_v1 = vld [vmem:[#allocation5 + $0x10] sm:$0xff] }
  0x53   :  { %v129_v23 = vld [vmem:[#allocation5 + $0xe8] sm:$0xff]  ;;  %413 = vmatprep.mubr.f32.mxu1 %v5638_v0  ;;  %v128_v28 = vld [vmem:[#allocation5 + $0xe0] sm:$0xff]  ;;  %v106_v2 = vld [vmem:[#allocation5 + $0x30] sm:$0xff] }
  0x54   :  { %4005 = vmatpush1.bf16.msra.mxu1 %v5790_v18  ;;  %v5804_v26 = vpack.c.bf16 %v129_v23, %v125_v22  ;;  %v133_v29 = vld [vmem:[#allocation5 + $0x108] sm:$0xff]  ;;  %v5815_v33 = vpack.c.bf16 %v128_v28, %v124_v27  ;;  %v96_v34 = vld [vmem:[%s6783_s1] sm:$0x1f]  ;;  %v115_v4 = vld [vmem:[#allocation5 + $0x78] sm:$0xff]  ;;  %v5890_v5 = vpack.c.bf16 %v106_v2, %v102_v1  ;;  %v166_v2 = vlaneseq }
  0x55   :  { %4007 = vmatprep.subr.bf16.mxu1 %v5793_v19  ;;  %v137_v30 = vld [vmem:[#allocation5 + $0x128] sm:$0xff]  ;;  %v132_v36 = vld [vmem:[#allocation5 + $0x100] sm:$0xff]  ;;  %v110_v8 = vld [vmem:[#allocation5 + $0x50] sm:$0xff] }
  0x56   :  { %3875 = vmatmul.mubr.msk.f32.gmra.mrb[4].mxu1 %vm186_vm1, %v90_v24  ;;  %v97_v32 = vld [vmem:[%s6783_s1 + $0x8] sm:$0x1f]  ;;  %v5822_v35 = vpack.c.bf16 %v137_v30, %v133_v29  ;;  %v136_v37 = vld [vmem:[#allocation5 + $0x120] sm:$0xff]  ;;  %v114_v9 = vld [vmem:[#allocation5 + $0x70] sm:$0xff] }
  0x57   :  { %419 = vmatprep.mubr.f32.mxu1 %v5638_v0  ;;  %3861 = vmatprep.subr.msk.mxu0 %vm211_vm0, %v97_v32  ;;  %v141_v38 = vld [vmem:[#allocation5 + $0x148] sm:$0xff]  ;;  %v92_v40 = vld [vmem:[%s6782_s0 + $0x20] sm:$0xff]  ;;  %v5833_v41 = vpack.c.bf16 %v136_v37, %v132_v36  ;;  %v119_v11 = vld [vmem:[#allocation5 + $0x98] sm:$0xff]  ;;  %v5901_v13 = vpack.c.bf16 %v114_v9, %v110_v8 }
  0x58   :  { %4009 = vmatpush1.bf16.msra.mxu1 %v5801_v25  ;;  %3862 = vmatpush1.msk.msra.mxu0 %vm211_vm0, %v96_v34  ;;  %v145_v39 = vld [vmem:[#allocation5 + $0x168] sm:$0xff]  ;;  %v140_v43 = vld [vmem:[#allocation5 + $0x140] sm:$0xff]  ;;  %v123_v12 = vld [vmem:[#allocation5 + $0xb8] sm:$0xff] }
  0x59   :  { %4011 = vmatprep.subr.bf16.mxu1 %v5804_v26  ;;  %3863 = vmatmul.mubr.msk.f32.vlgmr.msra.gmra.mrb[0].mxu0 %vm186_vm1, %v88_v3  ;;  %v5837_v42 = vpack.c.bf16 %v145_v39, %v141_v38  ;;  %v144_v44 = vld [vmem:[#allocation5 + $0x160] sm:$0xff]  ;;  %v149_v45 = vld [vmem:[#allocation5 + $0x188] sm:$0xff]  ;;  %v111_v3 = vld [vmem:[#allocation5 + $0x58] sm:$0xff] }
  0x5a   :  { %3876 = vmatmul.mubr.msk.f32.gmra.mrb[6].mxu1 %vm186_vm1, %v91_v31  ;;  %4063 = vmatprep.subr.bf16.mxu0 %v5777_v7  ;;  %v153_v46 = vld [vmem:[#allocation5 + $0x1a8] sm:$0xff]  ;;  %v5848_v48 = vpack.c.bf16 %v144_v44, %v140_v43  ;;  %v148_v50 = vld [vmem:[#allocation5 + $0x180] sm:$0xff]  ;;  %v5894_v6 = vpack.c.bf16 %v115_v4, %v111_v3  ;;  %v118_v16 = vld [vmem:[#allocation5 + $0x90] sm:$0xff]  ;;  %v5972_v3 = vshrl.u32 %v166_v2, 7 }
  0x5b   :  { %425 = vmatprep.mubr.f32.mxu1 %v5638_v0  ;;  %4065 = vmatpush1.bf16.msra.mxu0 %v5780_v10  ;;  %v93_v47 = vld [vmem:[%s6782_s0 + $0x28] sm:$0xff]  ;;  %v5852_v49 = vpack.c.bf16 %v153_v46, %v149_v45  ;;  %v152_v51 = vld [vmem:[#allocation5 + $0x1a0] sm:$0xff]  ;;  %v122_v17 = vld [vmem:[#allocation5 + $0xb0] sm:$0xff] }
  0x5c   :  { %4013 = vmatpush1.bf16.msra.mxu1 %v5815_v33  ;;  %294 = vmatprep.mubr.f32.mxu0 %v5638_v0  ;;  %v157_v52 = vld [vmem:[#allocation5 + $0x1c8] sm:$0xff]  ;;  %v5863_v55 = vpack.c.bf16 %v152_v51, %v148_v50  ;;  %v156_v57 = vld [vmem:[#allocation5 + $0x1c0] sm:$0xff]  ;;  %v127_v20 = vld [vmem:[#allocation5 + $0xd8] sm:$0xff]  ;;  %v5912_v22 = vpack.c.bf16 %v122_v17, %v118_v16  ;;  %v168_v4 = vsub.s32 0, %v5972_v3  ;;  %v172_v9 = vsub.s32 1, %v5972_v3 }
  0x5d   :  { %4015 = vmatprep.subr.bf16.mxu1 %v5822_v35  ;;  %4067 = vmatprep.subr.bf16.mxu0 %v5787_v15  ;;  %v161_v53 = vld [vmem:[#allocation5 + $0x1e8] sm:$0xff]  ;;  %v160_v58 = vld [vmem:[#allocation5 + $0x1e0] sm:$0xff]  ;;  %v131_v21 = vld [vmem:[#allocation5 + $0xf8] sm:$0xff] }
  0x5e   :  { %3877 = vmatmul.mubr.msk.f32.gmra.mrb[8].mxu1 %vm186_vm1, %v92_v40  ;;  %3864 = vmatmul.mubr.msk.f32.gmra.mrb[2].mxu0 %vm186_vm1, %v89_v14  ;;  %v5867_v56 = vpack.c.bf16 %v161_v53, %v157_v52  ;;  %v5878_v62 = vpack.c.bf16 %v160_v58, %v156_v57  ;;  %v5905_v14 = vpack.c.bf16 %v123_v12, %v119_v11  ;;  %v130_v27 = vld [vmem:[#allocation5 + $0xf0] sm:$0xff]  ;;  %v135_v28 = vld [vmem:[#allocation5 + $0x118] sm:$0xff]  ;;  %v164_v8 = vld [vmem:[%s6785_s3] sm:$0xf] }
  0x5f   :  { %431 = vmatprep.mubr.f32.mxu1 %v5638_v0  ;;  %4069 = vmatpush1.bf16.msra.mxu0 %v5790_v18  ;;  %v5916_v23 = vpack.c.bf16 %v131_v21, %v127_v20  ;;  %v139_v29 = vld [vmem:[#allocation5 + $0x138] sm:$0xff]  ;;  %v134_v32 = vld [vmem:[#allocation5 + $0x110] sm:$0xff]  ;;  %v5981_v11 = vrot.slane %v164_v8, %v168_v4  ;;  %v5985_v12 = vrot.slane %v164_v8, %v172_v9 }
  0x60   :  { %4017 = vmatpush1.bf16.msra.mxu1 %v5833_v41  ;;  %300 = vmatprep.mubr.f32.mxu0 %v5638_v0  ;;  %v138_v34 = vld [vmem:[#allocation5 + $0x130] sm:$0xff]  ;;  %v143_v36 = vld [vmem:[#allocation5 + $0x158] sm:$0xff] }
  0x61   :  { %4019 = vmatprep.subr.bf16.mxu1 %v5837_v42  ;;  %4071 = vmatprep.subr.bf16.mxu0 %v5793_v19  ;;  %v147_v37 = vld [vmem:[#allocation5 + $0x178] sm:$0xff]  ;;  %v5931_v38 = vpack.c.bf16 %v138_v34, %v134_v32  ;;  %v146_v43 = vld [vmem:[#allocation5 + $0x170] sm:$0xff]  ;;  %v176_v32 = vsub.s32 2, %v5972_v3 }
  0x62   :  { %3878 = vmatmul.mubr.msk.f32.gmra.mrb[10].mxu1 %vm186_vm1, %v93_v47  ;;  %3865 = vmatmul.mubr.msk.f32.gmra.mrb[4].mxu0 %vm186_vm1, %v90_v24  ;;  %v126_v24 = vld [vmem:[#allocation5 + $0xd0] sm:$0xff]  ;;  %v5934_v39 = vpack.c.bf16 %v147_v37, %v143_v36  ;;  %v151_v44 = vld [vmem:[#allocation5 + $0x198] sm:$0xff]  ;;  %v180_v36 = vsub.s32 3, %v5972_v3 }
  0x63   :  { %437 = vmatprep.mubr.f32.mxu1 %v5638_v0  ;;  %4073 = vmatpush1.bf16.msra.mxu0 %v5801_v25  ;;  %v5922_v30 = vpack.c.bf16 %v130_v27, %v126_v24  ;;  %v155_v45 = vld [vmem:[#allocation5 + $0x1b8] sm:$0xff]  ;;  %v150_v50 = vld [vmem:[#allocation5 + $0x190] sm:$0xff] }
  0x64   :  { %4021 = vmatpush1.bf16.msra.mxu1 %v5848_v48  ;;  %306 = vmatprep.mubr.f32.mxu0 %v5638_v0  ;;  %v154_v51 = vld [vmem:[#allocation5 + $0x1b0] sm:$0xff]  ;;  %v159_v52 = vld [vmem:[#allocation5 + $0x1d8] sm:$0xff] }
  0x65   :  { %4023 = vmatprep.subr.bf16.mxu1 %v5852_v49  ;;  %4075 = vmatprep.subr.bf16.mxu0 %v5804_v26  ;;  %v163_v53 = vld [vmem:[#allocation5 + $0x1f8] sm:$0xff]  ;;  %v158_v58 = vld [vmem:[#allocation5 + $0x1d0] sm:$0xff] }
  0x66   :  { %3879 = vmatmul.mubr.msk.f32.gmra.mrb[12].mxu1 %vm186_vm1, %v94_v54  ;;  %3866 = vmatmul.mubr.msk.f32.gmra.mrb[6].mxu0 %vm186_vm1, %v91_v31  ;;  %v5926_v31 = vpack.c.bf16 %v139_v29, %v135_v28  ;;  %v5946_v57 = vpack.c.bf16 %v163_v53, %v159_v52  ;;  %v162_v59 = vld [vmem:[#allocation5 + $0x1f0] sm:$0xff] }
  0x67   :  { %443 = vmatprep.mubr.f32.mxu1 %v5638_v0  ;;  %4077 = vmatpush1.bf16.msra.mxu0 %v5815_v33  ;;  %v5949_v60 = vpack.c.bf16 %v162_v59, %v158_v58 }
  0x68   :  { %4025 = vmatpush1.bf16.msra.mxu1 %v5863_v55  ;;  %312 = vmatprep.mubr.f32.mxu0 %v5638_v0 }
  0x69   :  { %4027 = vmatprep.subr.bf16.mxu1 %v5867_v56  ;;  %4079 = vmatprep.subr.bf16.mxu0 %v5822_v35 }
  0x6a   :  { %3880 = vmatmul.mubr.msk.f32.gmra.mrb[14].mxu1 %vm186_vm1, %v95_v61  ;;  %3867 = vmatmul.mubr.msk.f32.gmra.mrb[8].mxu0 %vm186_vm1, %v92_v40  ;;  %v142_v40 = vld [vmem:[#allocation5 + $0x150] sm:$0xff] }
  0x6b   :  { %550 = vmatprep.mubr.f32.mxu1 %v5638_v0  ;;  %4081 = vmatpush1.bf16.msra.mxu0 %v5833_v41  ;;  %v5937_v46 = vpack.c.bf16 %v146_v43, %v142_v40  ;;  %v5993_v43 = vrot.slane %v164_v8, %v176_v32 }
  0x6c   :  { %4029 = vmatpush1.bf16.msra.mxu1 %v5878_v62  ;;  %318 = vmatprep.mubr.f32.mxu0 %v5638_v0 }
  0x6d   :  { %4031 = vmatprep.subr.bf16.mxu1 %v5882_v63  ;;  %4083 = vmatprep.subr.bf16.mxu0 %v5837_v42 }
  0x6e   :  { %3868 = vmatmul.mubr.msk.f32.gmra.mrb[10].mxu0 %vm186_vm1, %v93_v47  ;;  %v5940_v47 = vpack.c.bf16 %v155_v45, %v151_v44  ;;  %v5997_v45 = vrot.slane %v164_v8, %v180_v36 }
  0x6f   :  { %551 = vmatmul.mubr.f32.vlgmr.msra.gmra.mrb[16].mxu1 %v5638_v0  ;;  %4085 = vmatpush1.bf16.msra.mxu0 %v5848_v48 }
  0x70   :  { %4033 = vmatpush1.bf16.msra.mxu1 %v5890_v5  ;;  %621 = vmatprep.mubr.f32.mxu1 %v5638_v0 }
  0x71   :  { %4035 = vmatprep.subr.bf16.mxu1 %v5894_v6  ;;  %324 = vmatprep.mubr.f32.mxu0 %v5638_v0 }
  0x72   :  { %4087 = vmatprep.subr.bf16.mxu0 %v5852_v49  ;;  %3869 = vmatmul.mubr.msk.f32.gmra.mrb[12].mxu0 %vm186_vm1, %v94_v54  ;;  %v5943_v54 = vpack.c.bf16 %v154_v51, %v150_v50 }
  0x73   :  { %330 = vmatprep.mubr.f32.mxu0 %v5638_v0  ;;  %4089 = vmatpush1.bf16.msra.mxu0 %v5863_v55 }
  0x74   :  { %4037 = vmatpush1.bf16.msra.mxu1 %v5901_v13  ;;  %4091 = vmatprep.subr.bf16.mxu0 %v5867_v56 }
  0x75   :  { %4039 = vmatprep.subr.bf16.mxu1 %v5905_v14 }
  0x76   :  { %3870 = vmatmul.mubr.msk.f32.gmra.mrb[14].mxu0 %vm186_vm1, %v95_v61 }
  0x77   :  { %725 = vmatprep.mubr.f32.mxu0 %v5638_v0  ;;  %4093 = vmatpush1.bf16.msra.mxu0 %v5878_v62 }
  0x78   :  { %4041 = vmatpush1.bf16.msra.mxu1 %v5912_v22  ;;  %4127 = vmatprep.subr.bf16.mxu0 %v5777_v7 }
  0x79   :  { %4043 = vmatprep.subr.bf16.mxu1 %v5916_v23 }
  0x7c   :  { %4045 = vmatpush1.bf16.msra.mxu1 %v5922_v30 }
  0x7d   :  { %4047 = vmatprep.subr.bf16.mxu1 %v5926_v31 }
  0x80   :  { %4049 = vmatpush1.bf16.msra.mxu1 %v5931_v38 }
  0x81   :  { %4051 = vmatprep.subr.bf16.mxu1 %v5934_v39 }
  0x84   :  { %4053 = vmatpush1.bf16.msra.mxu1 %v5937_v46 }
  0x85   :  { %4055 = vmatprep.subr.bf16.mxu1 %v5940_v47 }
  0x88   :  { %4057 = vmatpush1.bf16.msra.mxu1 %v5943_v54 }
  0x89   :  { %4059 = vmatprep.subr.bf16.mxu1 %v5946_v57 }
  0x8c   :  { %4061 = vmatpush1.bf16.msra.mxu1 %v5949_v60 }
  0x8d   :  { %4095 = vmatprep.subr.bf16.mxu1 %v5882_v63 }
  0x8f   :  { %622 = vmatmul.mubr.f32.vlgmr.msra.gmra.mrb[0].mxu1 %v5638_v0 }
  0x90   :  { %4097 = vmatpush1.bf16.msra.mxu1 %v5890_v5  ;;  %796 = vmatprep.mubr.f32.mxu1 %v5638_v0 }
  0x91   :  { %4099 = vmatprep.subr.bf16.mxu1 %v5894_v6 }
  0x94   :  { %4101 = vmatpush1.bf16.msra.mxu1 %v5901_v13 }
  0x95   :  { %4103 = vmatprep.subr.bf16.mxu1 %v5905_v14 }
  0x98   :  { %4105 = vmatpush1.bf16.msra.mxu1 %v5912_v22 }
  0x99   :  { %4107 = vmatprep.subr.bf16.mxu1 %v5916_v23 }
  0x9c   :  { %4109 = vmatpush1.bf16.msra.mxu1 %v5922_v30 }
  0x9d   :  { %4111 = vmatprep.subr.bf16.mxu1 %v5926_v31 }
  0xa0   :  { %4113 = vmatpush1.bf16.msra.mxu1 %v5931_v38 }
  0xa1   :  { %4115 = vmatprep.subr.bf16.mxu1 %v5934_v39 }
  0xa4   :  { %4117 = vmatpush1.bf16.msra.mxu1 %v5937_v46 }
  0xa5   :  { %4119 = vmatprep.subr.bf16.mxu1 %v5940_v47 }
  0xa8   :  { %4121 = vmatpush1.bf16.msra.mxu1 %v5943_v54 }
  0xa9   :  { %4123 = vmatprep.subr.bf16.mxu1 %v5946_v57 }
  0xac   :  { %4125 = vmatpush1.bf16.msra.mxu1 %v5949_v60 }
  0xad   :  { %4159 = vmatprep.subr.bf16.mxu1 %v5882_v63 }
 0x12c   :  { %v290_v61 = vpop.f32.mrb[0].mxu0 }
 0x12d   :  { %v292_v1 = vpop.f32.mrb[1].mxu0  ;;  %v291_v16 = vadd.f32 %v290_v61, %v5981_v11 }
 0x12e   :  { %v293_v17 = vadd.f32 %v292_v1, %v5985_v12 }
 0x142   :  { %v552_v20 = vpop.f32.mrb[16].mxu1 }
 0x143   :  { %v628_v21 = vadd.f32 %v552_v20, %v291_v16  ;;  %v554_v24 = vpop.f32.mrb[17].mxu1 }
 0x144   :  { %v629_v27 = vadd.f32 %v554_v24, %v293_v17 }
 0x145   :  { %v3881_v29 = vmul.f32 -1.442695, %v628_v21 }
 0x146   :  { %v3882_v28 = vmul.f32 -1.442695, %v629_v27 }
 0x148   :  { %5256 = vpow2.f32 %v3882_v28 }
 0x149   :  { %5258 = vpow2.f32 %v3881_v29 }
 0x152   :  { %v5257_v34 = vpop.eup %5256 }
 0x153   :  { %v5259_v37 = vpop.eup %5258  ;;  %v641_v40 = vadd.f32 1.0, %v5257_v34 }
 0x154   :  { %v635_v44 = vadd.f32 1.0, %v5259_v37 }
 0x155   :  { %5260 = vrcp.f32 %v641_v40 }
 0x156   :  { %5262 = vrcp.f32 %v635_v44 }
 0x15f   :  { %v5261_v59 = vpop.eup %5260 }
 0x160   :  { %v5263_v61 = vpop.eup %5262  ;;  %v651_v2 = vmul.f32 0.0, %v5261_v59 }
 0x162   :  { %v623_v50 = vpop.f32.mrb[0].mxu1 }
 0x163   :  { %v5136_v51 = vadd.f32 %v623_v50, %v5993_v43  ;;  %v625_v52 = vpop.f32.mrb[1].mxu1 }
 0x164   :  { %v5137_v53 = vadd.f32 %v625_v52, %v5997_v45 }
 0x165   :  { %5264 = vtanh.f32 %v5136_v51 }
 0x166   :  { %v3883_v58 = vmul.f32 -1.442695, %v5137_v53 }
 0x168   :  { %5266 = vpow2.f32 %v3883_v58 }
 0x16f   :  { %v5265_v1 = vpop.eup %5264 }
 0x170   :  { %v652_v16 = vmul.f32 %v5265_v1, %v5263_v61 }
 0x172   :  { %v5267_v17 = vpop.eup %5266  ;;  %v6001_v20 = vadd.f32 %v652_v16, %v651_v2 }
 0x173   :  { %v648_v8 = vadd.f32 1.0, %v5267_v17 }
 0x174   :  { %5268 = vtanh.f32 %v6001_v20 }
 0x175   :  { %5270 = vrcp.f32 %v648_v8 }
 0x17e   :  { %v5269_v21 = vpop.eup %5268 }
 0x17f   :  { %v5271_v24 = vpop.eup %5270 }
 0x180   :  { %v6004_v27 = vmul.f32 %v5271_v24, %v5269_v21 }
 0x182   :  { %726 = vmatmul.mubr.f32.vlgmr.msra.gmra.mrb[2].mxu0 %v6004_v27  ;;  %797 = vmatmul.mubr.f32.vlgmr.msra.gmra.mrb[2].mxu1 %v6004_v27 }
 0x183   :  { %4129 = vmatpush1.bf16.msra.mxu0 %v5780_v10  ;;  %4161 = vmatpush1.bf16.msra.mxu1 %v5890_v5 }
 0x184   :  { %4131 = vmatprep.subr.bf16.mxu0 %v5787_v15  ;;  %4163 = vmatprep.subr.bf16.mxu1 %v5894_v6 }
 0x185   :  { %900 = vmatprep.mubr.f32.mxu0 %v5638_v0  ;;  %971 = vmatprep.mubr.f32.mxu1 %v5638_v0 }
 0x187   :  { %4133 = vmatpush1.bf16.msra.mxu0 %v5790_v18  ;;  %4165 = vmatpush1.bf16.msra.mxu1 %v5901_v13 }
 0x188   :  { %4135 = vmatprep.subr.bf16.mxu0 %v5793_v19  ;;  %4167 = vmatprep.subr.bf16.mxu1 %v5905_v14 }
 0x18b   :  { %4137 = vmatpush1.bf16.msra.mxu0 %v5801_v25  ;;  %4169 = vmatpush1.bf16.msra.mxu1 %v5912_v22 }
 0x18c   :  { %4139 = vmatprep.subr.bf16.mxu0 %v5804_v26  ;;  %4171 = vmatprep.subr.bf16.mxu1 %v5916_v23 }
 0x18f   :  { %4141 = vmatpush1.bf16.msra.mxu0 %v5815_v33  ;;  %4173 = vmatpush1.bf16.msra.mxu1 %v5922_v30 }
 0x190   :  { %4143 = vmatprep.subr.bf16.mxu0 %v5822_v35  ;;  %4175 = vmatprep.subr.bf16.mxu1 %v5926_v31 }
 0x193   :  { %4145 = vmatpush1.bf16.msra.mxu0 %v5833_v41  ;;  %4177 = vmatpush1.bf16.msra.mxu1 %v5931_v38 }
 0x194   :  { %4147 = vmatprep.subr.bf16.mxu0 %v5837_v42  ;;  %4179 = vmatprep.subr.bf16.mxu1 %v5934_v39 }
 0x197   :  { %4149 = vmatpush1.bf16.msra.mxu0 %v5848_v48  ;;  %4181 = vmatpush1.bf16.msra.mxu1 %v5937_v46 }
 0x198   :  { %4151 = vmatprep.subr.bf16.mxu0 %v5852_v49  ;;  %4183 = vmatprep.subr.bf16.mxu1 %v5940_v47 }
 0x19b   :  { %4153 = vmatpush1.bf16.msra.mxu0 %v5863_v55  ;;  %4185 = vmatpush1.bf16.msra.mxu1 %v5943_v54 }
 0x19c   :  { %4155 = vmatprep.subr.bf16.mxu0 %v5867_v56  ;;  %4187 = vmatprep.subr.bf16.mxu1 %v5946_v57 }
 0x19f   :  { %4157 = vmatpush1.bf16.msra.mxu0 %v5878_v62  ;;  %4189 = vmatpush1.bf16.msra.mxu1 %v5949_v60 }
 0x1a0   :  { %4191 = vmatprep.subr.bf16.mxu0 %v5777_v7  ;;  %4223 = vmatprep.subr.bf16.mxu1 %v5882_v63 }
 0x255   :  { %v727_v28 = vpop.f32.mrb[2].mxu0  ;;  %v798_v29 = vpop.f32.mrb[2].mxu1 }
 0x256   :  { %v5122_v34 = vadd.f32 %v727_v28, %v5981_v11  ;;  %v729_v37 = vpop.f32.mrb[3].mxu0  ;;  %v800_v40 = vpop.f32.mrb[3].mxu1  ;;  %v5138_v58 = vadd.f32 %v798_v29, %v5993_v43 }
 0x257   :  { %v5123_v44 = vadd.f32 %v729_v37, %v5985_v12  ;;  %v5139_v52 = vadd.f32 %v800_v40, %v5997_v45 }
 0x258   :  { %v3884_v50 = vmul.f32 -1.442695, %v5122_v34 }
 0x259   :  { %v3885_v51 = vmul.f32 -1.442695, %v5123_v44  ;;  %v3886_v53 = vmul.f32 -1.442695, %v5139_v52 }
 0x25a   :  { %5272 = vpow2.f32 %v3884_v50 }
 0x25b   :  { %5274 = vpow2.f32 %v3885_v51 }
 0x25c   :  { %5276 = vpow2.f32 %v3886_v53 }
 0x25d   :  { %5278 = vtanh.f32 %v5138_v58 }
 0x264   :  { %v5273_v59 = vpop.eup %5272 }
 0x265   :  { %v5275_v61 = vpop.eup %5274  ;;  %v810_v1 = vadd.f32 1.0, %v5273_v59 }
 0x266   :  { %v816_v2 = vadd.f32 1.0, %v5275_v61  ;;  %v5277_v16 = vpop.eup %5276 }
 0x267   :  { %5280 = vrcp.f32 %v810_v1  ;;  %v5279_v17 = vpop.eup %5278  ;;  %v823_v28 = vadd.f32 1.0, %v5277_v16 }
 0x268   :  { %5282 = vrcp.f32 %v816_v2 }
 0x269   :  { %5284 = vrcp.f32 %v823_v28 }
 0x271   :  { %v5281_v8 = vpop.eup %5280 }
 0x272   :  { %v5283_v21 = vpop.eup %5282  ;;  %v827_v24 = vmul.f32 %v5281_v8, %v5279_v17 }
 0x273   :  { %v826_v34 = vmul.f32 %v5283_v21, %v6001_v20  ;;  %v5285_v29 = vpop.eup %5284 }
 0x275   :  { %v6047_v37 = vadd.f32 %v827_v24, %v826_v34 }
 0x277   :  { %5286 = vtanh.f32 %v6047_v37 }
 0x281   :  { %v5287_v40 = vpop.eup %5286 }
 0x282   :  { %v6050_v44 = vmul.f32 %v5287_v40, %v5285_v29 }
 0x284   :  { %901 = vmatmul.mubr.f32.vlgmr.msra.gmra.mrb[4].mxu0 %v6050_v44  ;;  %972 = vmatmul.mubr.f32.vlgmr.msra.gmra.mrb[4].mxu1 %v6050_v44 }
 0x285   :  { %4193 = vmatpush1.bf16.msra.mxu0 %v5780_v10  ;;  %4225 = vmatpush1.bf16.msra.mxu1 %v5890_v5 }
 0x286   :  { %4195 = vmatprep.subr.bf16.mxu0 %v5787_v15  ;;  %4227 = vmatprep.subr.bf16.mxu1 %v5894_v6 }
 0x287   :  { %1075 = vmatprep.mubr.f32.mxu0 %v5638_v0  ;;  %1146 = vmatprep.mubr.f32.mxu1 %v5638_v0 }
 0x289   :  { %4197 = vmatpush1.bf16.msra.mxu0 %v5790_v18  ;;  %4229 = vmatpush1.bf16.msra.mxu1 %v5901_v13 }
 0x28a   :  { %4199 = vmatprep.subr.bf16.mxu0 %v5793_v19  ;;  %4231 = vmatprep.subr.bf16.mxu1 %v5905_v14 }
 0x28d   :  { %4201 = vmatpush1.bf16.msra.mxu0 %v5801_v25  ;;  %4233 = vmatpush1.bf16.msra.mxu1 %v5912_v22 }
 0x28e   :  { %4203 = vmatprep.subr.bf16.mxu0 %v5804_v26  ;;  %4235 = vmatprep.subr.bf16.mxu1 %v5916_v23 }
 0x291   :  { %4205 = vmatpush1.bf16.msra.mxu0 %v5815_v33  ;;  %4237 = vmatpush1.bf16.msra.mxu1 %v5922_v30 }
 0x292   :  { %4207 = vmatprep.subr.bf16.mxu0 %v5822_v35  ;;  %4239 = vmatprep.subr.bf16.mxu1 %v5926_v31 }
 0x295   :  { %4209 = vmatpush1.bf16.msra.mxu0 %v5833_v41  ;;  %4241 = vmatpush1.bf16.msra.mxu1 %v5931_v38 }
 0x296   :  { %4211 = vmatprep.subr.bf16.mxu0 %v5837_v42  ;;  %4243 = vmatprep.subr.bf16.mxu1 %v5934_v39 }
 0x299   :  { %4213 = vmatpush1.bf16.msra.mxu0 %v5848_v48  ;;  %4245 = vmatpush1.bf16.msra.mxu1 %v5937_v46 }
 0x29a   :  { %4215 = vmatprep.subr.bf16.mxu0 %v5852_v49  ;;  %4247 = vmatprep.subr.bf16.mxu1 %v5940_v47 }
 0x29d   :  { %4217 = vmatpush1.bf16.msra.mxu0 %v5863_v55  ;;  %4249 = vmatpush1.bf16.msra.mxu1 %v5943_v54 }
 0x29e   :  { %4219 = vmatprep.subr.bf16.mxu0 %v5867_v56  ;;  %4251 = vmatprep.subr.bf16.mxu1 %v5946_v57 }
 0x2a1   :  { %4221 = vmatpush1.bf16.msra.mxu0 %v5878_v62  ;;  %4253 = vmatpush1.bf16.msra.mxu1 %v5949_v60 }
 0x2a2   :  { %4255 = vmatprep.subr.bf16.mxu0 %v5777_v7  ;;  %4287 = vmatprep.subr.bf16.mxu1 %v5882_v63 }
 0x357   :  { %v902_v20 = vpop.f32.mrb[4].mxu0  ;;  %v973_v50 = vpop.f32.mrb[4].mxu1 }
 0x358   :  { %v5124_v51 = vadd.f32 %v902_v20, %v5981_v11  ;;  %v904_v52 = vpop.f32.mrb[5].mxu0  ;;  %v975_v53 = vpop.f32.mrb[5].mxu1  ;;  %v5140_v16 = vadd.f32 %v973_v50, %v5993_v43 }
 0x359   :  { %v5125_v58 = vadd.f32 %v904_v52, %v5985_v12  ;;  %v5141_v1 = vadd.f32 %v975_v53, %v5997_v45 }
 0x35a   :  { %v3887_v59 = vmul.f32 -1.442695, %v5124_v51 }
 0x35b   :  { %v3888_v61 = vmul.f32 -1.442695, %v5125_v58  ;;  %v3889_v2 = vmul.f32 -1.442695, %v5141_v1 }
 0x35c   :  { %5288 = vpow2.f32 %v3887_v59 }
 0x35d   :  { %5290 = vpow2.f32 %v3888_v61 }
 0x35e   :  { %5292 = vpow2.f32 %v3889_v2 }
 0x35f   :  { %5294 = vtanh.f32 %v5140_v16 }
 0x366   :  { %v5289_v17 = vpop.eup %5288 }
 0x367   :  { %v5291_v8 = vpop.eup %5290  ;;  %v985_v21 = vadd.f32 1.0, %v5289_v17 }
 0x368   :  { %v991_v24 = vadd.f32 1.0, %v5291_v8  ;;  %v5293_v28 = vpop.eup %5292 }
 0x369   :  { %5296 = vrcp.f32 %v985_v21  ;;  %v5295_v34 = vpop.eup %5294  ;;  %v998_v51 = vadd.f32 1.0, %v5293_v28 }
 0x36a   :  { %5298 = vrcp.f32 %v991_v24 }
 0x36b   :  { %5300 = vrcp.f32 %v998_v51 }
 0x373   :  { %v5297_v29 = vpop.eup %5296 }
 0x374   :  { %v5299_v40 = vpop.eup %5298  ;;  %v1002_v20 = vmul.f32 %v5297_v29, %v5295_v34 }
 0x375   :  { %v1001_v52 = vmul.f32 %v5299_v40, %v6047_v37  ;;  %v5301_v50 = vpop.eup %5300 }
 0x377   :  { %v6093_v53 = vadd.f32 %v1002_v20, %v1001_v52 }
 0x379   :  { %5302 = vtanh.f32 %v6093_v53 }
 0x383   :  { %v5303_v58 = vpop.eup %5302 }
 0x384   :  { %v6096_v59 = vmul.f32 %v5303_v58, %v5301_v50 }
 0x386   :  { %1076 = vmatmul.mubr.f32.vlgmr.msra.gmra.mrb[6].mxu0 %v6096_v59  ;;  %1147 = vmatmul.mubr.f32.vlgmr.msra.gmra.mrb[6].mxu1 %v6096_v59 }
 0x387   :  { %4257 = vmatpush1.bf16.msra.mxu0 %v5780_v10  ;;  %4289 = vmatpush1.bf16.msra.mxu1 %v5890_v5 }
 0x388   :  { %4259 = vmatprep.subr.bf16.mxu0 %v5787_v15  ;;  %4291 = vmatprep.subr.bf16.mxu1 %v5894_v6 }
 0x389   :  { %1250 = vmatprep.mubr.f32.mxu0 %v5638_v0  ;;  %1321 = vmatprep.mubr.f32.mxu1 %v5638_v0 }
 0x38b   :  { %4261 = vmatpush1.bf16.msra.mxu0 %v5790_v18  ;;  %4293 = vmatpush1.bf16.msra.mxu1 %v5901_v13 }
 0x38c   :  { %4263 = vmatprep.subr.bf16.mxu0 %v5793_v19  ;;  %4295 = vmatprep.subr.bf16.mxu1 %v5905_v14 }
 0x38f   :  { %4265 = vmatpush1.bf16.msra.mxu0 %v5801_v25  ;;  %4297 = vmatpush1.bf16.msra.mxu1 %v5912_v22 }
 0x390   :  { %4267 = vmatprep.subr.bf16.mxu0 %v5804_v26  ;;  %4299 = vmatprep.subr.bf16.mxu1 %v5916_v23 }
 0x393   :  { %4269 = vmatpush1.bf16.msra.mxu0 %v5815_v33  ;;  %4301 = vmatpush1.bf16.msra.mxu1 %v5922_v30 }
 0x394   :  { %4271 = vmatprep.subr.bf16.mxu0 %v5822_v35  ;;  %4303 = vmatprep.subr.bf16.mxu1 %v5926_v31 }
 0x397   :  { %4273 = vmatpush1.bf16.msra.mxu0 %v5833_v41  ;;  %4305 = vmatpush1.bf16.msra.mxu1 %v5931_v38 }
 0x398   :  { %4275 = vmatprep.subr.bf16.mxu0 %v5837_v42  ;;  %4307 = vmatprep.subr.bf16.mxu1 %v5934_v39 }
 0x39b   :  { %4277 = vmatpush1.bf16.msra.mxu0 %v5848_v48  ;;  %4309 = vmatpush1.bf16.msra.mxu1 %v5937_v46 }
 0x39c   :  { %4279 = vmatprep.subr.bf16.mxu0 %v5852_v49  ;;  %4311 = vmatprep.subr.bf16.mxu1 %v5940_v47 }
 0x39f   :  { %4281 = vmatpush1.bf16.msra.mxu0 %v5863_v55  ;;  %4313 = vmatpush1.bf16.msra.mxu1 %v5943_v54 }
 0x3a0   :  { %4283 = vmatprep.subr.bf16.mxu0 %v5867_v56  ;;  %4315 = vmatprep.subr.bf16.mxu1 %v5946_v57 }
 0x3a3   :  { %4285 = vmatpush1.bf16.msra.mxu0 %v5878_v62  ;;  %4317 = vmatpush1.bf16.msra.mxu1 %v5949_v60 }
 0x3a4   :  { %4319 = vmatprep.subr.bf16.mxu0 %v5777_v7  ;;  %4351 = vmatprep.subr.bf16.mxu1 %v5882_v63 }
 0x459   :  { %v1077_v37 = vpop.f32.mrb[6].mxu0  ;;  %v1148_v61 = vpop.f32.mrb[6].mxu1 }
 0x45a   :  { %v5126_v1 = vadd.f32 %v1077_v37, %v5981_v11  ;;  %v1079_v2 = vpop.f32.mrb[7].mxu0  ;;  %v1150_v16 = vpop.f32.mrb[7].mxu1  ;;  %v5142_v34 = vadd.f32 %v1148_v61, %v5993_v43 }
 0x45b   :  { %v5127_v17 = vadd.f32 %v1079_v2, %v5985_v12  ;;  %v5143_v24 = vadd.f32 %v1150_v16, %v5997_v45 }
 0x45c   :  { %v3890_v8 = vmul.f32 -1.442695, %v5126_v1 }
 0x45d   :  { %v3891_v21 = vmul.f32 -1.442695, %v5127_v17  ;;  %v3892_v28 = vmul.f32 -1.442695, %v5143_v24 }
 0x45e   :  { %5304 = vpow2.f32 %v3890_v8 }
 0x45f   :  { %5306 = vpow2.f32 %v3891_v21 }
 0x460   :  { %5308 = vpow2.f32 %v3892_v28 }
 0x461   :  { %5310 = vtanh.f32 %v5142_v34 }
 0x468   :  { %v5305_v29 = vpop.eup %5304 }
 0x469   :  { %v5307_v40 = vpop.eup %5306  ;;  %v1160_v20 = vadd.f32 1.0, %v5305_v29 }
 0x46a   :  { %v1166_v51 = vadd.f32 1.0, %v5307_v40  ;;  %v5309_v52 = vpop.eup %5308 }
 0x46b   :  { %5312 = vrcp.f32 %v1160_v20  ;;  %v5311_v50 = vpop.eup %5310  ;;  %v1173_v2 = vadd.f32 1.0, %v5309_v52 }
 0x46c   :  { %5314 = vrcp.f32 %v1166_v51 }
 0x46d   :  { %5316 = vrcp.f32 %v1173_v2 }
 0x475   :  { %v5313_v58 = vpop.eup %5312 }
 0x476   :  { %v5315_v37 = vpop.eup %5314  ;;  %v1177_v1 = vmul.f32 %v5313_v58, %v5311_v50 }
 0x477   :  { %v1176_v17 = vmul.f32 %v5315_v37, %v6093_v53  ;;  %v5317_v61 = vpop.eup %5316 }
 0x479   :  { %v6139_v16 = vadd.f32 %v1177_v1, %v1176_v17 }
 0x47b   :  { %5318 = vtanh.f32 %v6139_v16 }
 0x485   :  { %v5319_v8 = vpop.eup %5318 }
 0x486   :  { %v6142_v21 = vmul.f32 %v5319_v8, %v5317_v61 }
 0x488   :  { %1251 = vmatmul.mubr.f32.vlgmr.msra.gmra.mrb[8].mxu0 %v6142_v21  ;;  %1322 = vmatmul.mubr.f32.vlgmr.msra.gmra.mrb[8].mxu1 %v6142_v21 }
 0x489   :  { %4321 = vmatpush1.bf16.msra.mxu0 %v5780_v10  ;;  %4353 = vmatpush1.bf16.msra.mxu1 %v5890_v5 }
 0x48a   :  { %4323 = vmatprep.subr.bf16.mxu0 %v5787_v15  ;;  %4355 = vmatprep.subr.bf16.mxu1 %v5894_v6 }
 0x48b   :  { %1425 = vmatprep.mubr.f32.mxu0 %v5638_v0  ;;  %1496 = vmatprep.mubr.f32.mxu1 %v5638_v0 }
 0x48d   :  { %4325 = vmatpush1.bf16.msra.mxu0 %v5790_v18  ;;  %4357 = vmatpush1.bf16.msra.mxu1 %v5901_v13 }
 0x48e   :  { %4327 = vmatprep.subr.bf16.mxu0 %v5793_v19  ;;  %4359 = vmatprep.subr.bf16.mxu1 %v5905_v14 }
 0x491   :  { %4329 = vmatpush1.bf16.msra.mxu0 %v5801_v25  ;;  %4361 = vmatpush1.bf16.msra.mxu1 %v5912_v22 }
 0x492   :  { %4331 = vmatprep.subr.bf16.mxu0 %v5804_v26  ;;  %4363 = vmatprep.subr.bf16.mxu1 %v5916_v23 }
 0x495   :  { %4333 = vmatpush1.bf16.msra.mxu0 %v5815_v33  ;;  %4365 = vmatpush1.bf16.msra.mxu1 %v5922_v30 }
 0x496   :  { %4335 = vmatprep.subr.bf16.mxu0 %v5822_v35  ;;  %4367 = vmatprep.subr.bf16.mxu1 %v5926_v31 }
 0x499   :  { %4337 = vmatpush1.bf16.msra.mxu0 %v5833_v41  ;;  %4369 = vmatpush1.bf16.msra.mxu1 %v5931_v38 }
 0x49a   :  { %4339 = vmatprep.subr.bf16.mxu0 %v5837_v42  ;;  %4371 = vmatprep.subr.bf16.mxu1 %v5934_v39 }
 0x49d   :  { %4341 = vmatpush1.bf16.msra.mxu0 %v5848_v48  ;;  %4373 = vmatpush1.bf16.msra.mxu1 %v5937_v46 }
 0x49e   :  { %4343 = vmatprep.subr.bf16.mxu0 %v5852_v49  ;;  %4375 = vmatprep.subr.bf16.mxu1 %v5940_v47 }
 0x4a1   :  { %4345 = vmatpush1.bf16.msra.mxu0 %v5863_v55  ;;  %4377 = vmatpush1.bf16.msra.mxu1 %v5943_v54 }
 0x4a2   :  { %4347 = vmatprep.subr.bf16.mxu0 %v5867_v56  ;;  %4379 = vmatprep.subr.bf16.mxu1 %v5946_v57 }
 0x4a5   :  { %4349 = vmatpush1.bf16.msra.mxu0 %v5878_v62  ;;  %4381 = vmatpush1.bf16.msra.mxu1 %v5949_v60 }
 0x4a6   :  { %4383 = vmatprep.subr.bf16.mxu0 %v5777_v7  ;;  %4415 = vmatprep.subr.bf16.mxu1 %v5882_v63 }
 0x55b   :  { %v1252_v53 = vpop.f32.mrb[8].mxu0  ;;  %v1323_v24 = vpop.f32.mrb[8].mxu1 }
 0x55c   :  { %v5128_v28 = vadd.f32 %v1252_v53, %v5981_v11  ;;  %v1254_v34 = vpop.f32.mrb[9].mxu0  ;;  %v1325_v29 = vpop.f32.mrb[9].mxu1  ;;  %v5144_v58 = vadd.f32 %v1323_v24, %v5993_v43 }
 0x55d   :  { %v5129_v40 = vadd.f32 %v1254_v34, %v5985_v12  ;;  %v5145_v52 = vadd.f32 %v1325_v29, %v5997_v45 }
 0x55e   :  { %v3893_v20 = vmul.f32 -1.442695, %v5128_v28 }
 0x55f   :  { %v3894_v51 = vmul.f32 -1.442695, %v5129_v40  ;;  %v3895_v50 = vmul.f32 -1.442695, %v5145_v52 }
 0x560   :  { %5320 = vpow2.f32 %v3893_v20 }
 0x561   :  { %5322 = vpow2.f32 %v3894_v51 }
 0x562   :  { %5324 = vpow2.f32 %v3895_v50 }
 0x563   :  { %5326 = vtanh.f32 %v5144_v58 }
 0x56a   :  { %v5321_v37 = vpop.eup %5320 }
 0x56b   :  { %v5323_v1 = vpop.eup %5322  ;;  %v1335_v2 = vadd.f32 1.0, %v5321_v37 }
 0x56c   :  { %v1341_v17 = vadd.f32 1.0, %v5323_v1  ;;  %v5325_v61 = vpop.eup %5324 }
 0x56d   :  { %5328 = vrcp.f32 %v1335_v2  ;;  %v5327_v8 = vpop.eup %5326  ;;  %v1348_v40 = vadd.f32 1.0, %v5325_v61 }
 0x56e   :  { %5330 = vrcp.f32 %v1341_v17 }
 0x56f   :  { %5332 = vrcp.f32 %v1348_v40 }
 0x577   :  { %v5329_v53 = vpop.eup %5328 }
 0x578   :  { %v5331_v28 = vpop.eup %5330  ;;  %v1352_v34 = vmul.f32 %v5329_v53, %v5327_v8 }
 0x579   :  { %v1351_v20 = vmul.f32 %v5331_v28, %v6139_v16  ;;  %v5333_v24 = vpop.eup %5332 }
 0x57b   :  { %v6185_v29 = vadd.f32 %v1352_v34, %v1351_v20 }
 0x57d   :  { %5334 = vtanh.f32 %v6185_v29 }
 0x587   :  { %v5335_v51 = vpop.eup %5334 }
 0x588   :  { %v6188_v52 = vmul.f32 %v5335_v51, %v5333_v24 }
 0x58a   :  { %1426 = vmatmul.mubr.f32.vlgmr.msra.gmra.mrb[10].mxu0 %v6188_v52  ;;  %1497 = vmatmul.mubr.f32.vlgmr.msra.gmra.mrb[10].mxu1 %v6188_v52 }
 0x58b   :  { %4385 = vmatpush1.bf16.msra.mxu0 %v5780_v10  ;;  %4417 = vmatpush1.bf16.msra.mxu1 %v5890_v5 }
 0x58c   :  { %4387 = vmatprep.subr.bf16.mxu0 %v5787_v15  ;;  %4419 = vmatprep.subr.bf16.mxu1 %v5894_v6 }
 0x58d   :  { %1600 = vmatprep.mubr.f32.mxu0 %v5638_v0  ;;  %1671 = vmatprep.mubr.f32.mxu1 %v5638_v0 }
 0x58f   :  { %4389 = vmatpush1.bf16.msra.mxu0 %v5790_v18  ;;  %4421 = vmatpush1.bf16.msra.mxu1 %v5901_v13 }
 0x590   :  { %4391 = vmatprep.subr.bf16.mxu0 %v5793_v19  ;;  %4423 = vmatprep.subr.bf16.mxu1 %v5905_v14 }
 0x593   :  { %4393 = vmatpush1.bf16.msra.mxu0 %v5801_v25  ;;  %4425 = vmatpush1.bf16.msra.mxu1 %v5912_v22 }
 0x594   :  { %4395 = vmatprep.subr.bf16.mxu0 %v5804_v26  ;;  %4427 = vmatprep.subr.bf16.mxu1 %v5916_v23 }
 0x597   :  { %4397 = vmatpush1.bf16.msra.mxu0 %v5815_v33  ;;  %4429 = vmatpush1.bf16.msra.mxu1 %v5922_v30 }
 0x598   :  { %4399 = vmatprep.subr.bf16.mxu0 %v5822_v35  ;;  %4431 = vmatprep.subr.bf16.mxu1 %v5926_v31 }
 0x59b   :  { %4401 = vmatpush1.bf16.msra.mxu0 %v5833_v41  ;;  %4433 = vmatpush1.bf16.msra.mxu1 %v5931_v38 }
 0x59c   :  { %4403 = vmatprep.subr.bf16.mxu0 %v5837_v42  ;;  %4435 = vmatprep.subr.bf16.mxu1 %v5934_v39 }
 0x59f   :  { %4405 = vmatpush1.bf16.msra.mxu0 %v5848_v48  ;;  %4437 = vmatpush1.bf16.msra.mxu1 %v5937_v46 }
 0x5a0   :  { %4407 = vmatprep.subr.bf16.mxu0 %v5852_v49  ;;  %4439 = vmatprep.subr.bf16.mxu1 %v5940_v47 }
 0x5a3   :  { %4409 = vmatpush1.bf16.msra.mxu0 %v5863_v55  ;;  %4441 = vmatpush1.bf16.msra.mxu1 %v5943_v54 }
 0x5a4   :  { %4411 = vmatprep.subr.bf16.mxu0 %v5867_v56  ;;  %4443 = vmatprep.subr.bf16.mxu1 %v5946_v57 }
 0x5a7   :  { %4413 = vmatpush1.bf16.msra.mxu0 %v5878_v62  ;;  %4445 = vmatpush1.bf16.msra.mxu1 %v5949_v60 }
 0x5a8   :  { %4447 = vmatprep.subr.bf16.mxu0 %v5777_v7  ;;  %4479 = vmatprep.subr.bf16.mxu1 %v5882_v63 }
 0x65d   :  { %v1427_v16 = vpop.f32.mrb[10].mxu0  ;;  %v1498_v50 = vpop.f32.mrb[10].mxu1 }
 0x65e   :  { %v5130_v58 = vadd.f32 %v1427_v16, %v5981_v11  ;;  %v1429_v37 = vpop.f32.mrb[11].mxu0  ;;  %v1500_v1 = vpop.f32.mrb[11].mxu1  ;;  %v5146_v28 = vadd.f32 %v1498_v50, %v5993_v43 }
 0x65f   :  { %v5131_v2 = vadd.f32 %v1429_v37, %v5985_v12  ;;  %v5147_v8 = vadd.f32 %v1500_v1, %v5997_v45 }
 0x660   :  { %v3896_v17 = vmul.f32 -1.442695, %v5130_v58 }
 0x661   :  { %v3897_v61 = vmul.f32 -1.442695, %v5131_v2  ;;  %v3898_v53 = vmul.f32 -1.442695, %v5147_v8  ;;  %v1892_v8 = vld [vmem:[#allocation8 + $0x10] sm:$0xff] }
 0x662   :  { %5336 = vpow2.f32 %v3896_v17 }
 0x663   :  { %5338 = vpow2.f32 %v3897_v61 }
 0x664   :  { %5340 = vpow2.f32 %v3898_v53  ;;  %v1896_v53 = vld [vmem:[#allocation8 + $0x30] sm:$0xff] }
 0x665   :  { %5342 = vtanh.f32 %v5146_v28  ;;  %v1899_v28 = vld [vmem:[#allocation8 + $0x48] sm:$0xff] }
 0x66c   :  { %v5337_v7 = vpop.eup %5336 }
 0x66d   :  { %v5339_v34 = vpop.eup %5338  ;;  %v1510_v63 = vadd.f32 1.0, %v5337_v7  ;;  %v1903_v7 = vld [vmem:[#allocation8 + $0x68] sm:$0xff] }
 0x66e   :  { %v1516_v40 = vadd.f32 1.0, %v5339_v34  ;;  %v5341_v20 = vpop.eup %5340  ;;  %v1901_v34 = vld [vmem:[#allocation8 + $0x58] sm:$0xff] }
 0x66f   :  { %5344 = vrcp.f32 %v1510_v63  ;;  %v5343_v24 = vpop.eup %5342  ;;  %v1523_v37 = vadd.f32 1.0, %v5341_v20  ;;  %v1905_v63 = vld [vmem:[#allocation8 + $0x78] sm:$0xff] }
 0x670   :  { %5346 = vrcp.f32 %v1516_v40 }
 0x671   :  { %5348 = vrcp.f32 %v1523_v37 }
 0x679   :  { %v5345_v51 = vpop.eup %5344 }
 0x67a   :  { %v5347_v16 = vpop.eup %5346  ;;  %v1527_v58 = vmul.f32 %v5345_v51, %v5343_v24  ;;  %v4544_v51 = vpack.c.bf16 %v1896_v53, %v1892_v8  ;;  %v1922_v8 = vld [vmem:[#allocation8 + $0x100] sm:$0xff] }
 0x67b   :  { %v1526_v2 = vmul.f32 %v5347_v16, %v6185_v29  ;;  %v5349_v50 = vpop.eup %5348  ;;  %v1894_v29 = vld [vmem:[#allocation8 + $0x20] sm:$0xff] }
 0x67c   :  { %v1898_v16 = vld [vmem:[#allocation8 + $0x40] sm:$0xff] }
 0x67d   :  { %v6231_v1 = vadd.f32 %v1527_v58, %v1526_v2  ;;  %v1902_v58 = vld [vmem:[#allocation8 + $0x60] sm:$0xff]  ;;  %v4514_v2 = vpack.c.bf16 %v1903_v7, %v1899_v28 }
 0x67e   :  { %v1926_v53 = vld [vmem:[#allocation8 + $0x120] sm:$0xff] }
 0x67f   :  { %5350 = vtanh.f32 %v6231_v1 }
 0x689   :  { %v5351_v17 = vpop.eup %5350 }
 0x68a   :  { %v6234_v61 = vmul.f32 %v5351_v17, %v5349_v50  ;;  %v1900_v50 = vld [vmem:[#allocation8 + $0x50] sm:$0xff] }
 0x68b   :  { %v1904_v17 = vld [vmem:[#allocation8 + $0x70] sm:$0xff] }
 0x68c   :  { %1601 = vmatmul.mubr.f32.vlgmr.msra.gmra.mrb[12].mxu0 %v6234_v61  ;;  %1672 = vmatmul.mubr.f32.vlgmr.msra.gmra.mrb[12].mxu1 %v6234_v61 }
 0x68d   :  { %4449 = vmatpush1.bf16.msra.mxu0 %v5780_v10  ;;  %4481 = vmatpush1.bf16.msra.mxu1 %v5890_v5  ;;  %v1891_v10 = vld [vmem:[#allocation8 + $0x8] sm:$0xff] }
 0x68e   :  { %4451 = vmatprep.subr.bf16.mxu0 %v5787_v15  ;;  %4483 = vmatprep.subr.bf16.mxu1 %v5894_v6  ;;  %v1895_v15 = vld [vmem:[#allocation8 + $0x28] sm:$0xff] }
 0x68f   :  { %1775 = vmatprep.mubr.f32.mxu0 %v5638_v0  ;;  %1846 = vmatprep.mubr.f32.mxu1 %v5638_v0 }
 0x691   :  { %4453 = vmatpush1.bf16.msra.mxu0 %v5790_v18  ;;  %4485 = vmatpush1.bf16.msra.mxu1 %v5901_v13  ;;  %v1893_v18 = vld [vmem:[#allocation8 + $0x18] sm:$0xff] }
 0x692   :  { %4455 = vmatprep.subr.bf16.mxu0 %v5793_v19  ;;  %4487 = vmatprep.subr.bf16.mxu1 %v5905_v14  ;;  %v4510_v19 = vpack.c.bf16 %v1895_v15, %v1891_v10  ;;  %v1907_v10 = vld [vmem:[#allocation8 + $0x88] sm:$0xff] }
 0x693   :  { %v1911_v15 = vld [vmem:[#allocation8 + $0xa8] sm:$0xff] }
 0x695   :  { %4457 = vmatpush1.bf16.msra.mxu0 %v5801_v25  ;;  %4489 = vmatpush1.bf16.msra.mxu1 %v5912_v22  ;;  %v1897_v25 = vld [vmem:[#allocation8 + $0x38] sm:$0xff] }
 0x696   :  { %4459 = vmatprep.subr.bf16.mxu0 %v5804_v26  ;;  %4491 = vmatprep.subr.bf16.mxu1 %v5916_v23  ;;  %v4542_v26 = vpack.c.bf16 %v1897_v25, %v1893_v18  ;;  %v1909_v18 = vld [vmem:[#allocation8 + $0x98] sm:$0xff]  ;;  %v4516_v25 = vpack.c.bf16 %v1902_v58, %v1898_v16  ;;  %v4528_v16 = vpack.c.bf16 %v1926_v53, %v1922_v8  ;;  %v1956_v53 = vld [vmem:[#allocation10 + $0x10] sm:$0xff] }
 0x699   :  { %4461 = vmatpush1.bf16.msra.mxu0 %v5815_v33  ;;  %4493 = vmatpush1.bf16.msra.mxu1 %v5922_v30 }
 0x69a   :  { %4463 = vmatprep.subr.bf16.mxu0 %v5822_v35  ;;  %4495 = vmatprep.subr.bf16.mxu1 %v5926_v31 }
 0x69d   :  { %4465 = vmatpush1.bf16.msra.mxu0 %v5833_v41  ;;  %4497 = vmatpush1.bf16.msra.mxu1 %v5931_v38 }
 0x69e   :  { %4467 = vmatprep.subr.bf16.mxu0 %v5837_v42  ;;  %4499 = vmatprep.subr.bf16.mxu1 %v5934_v39 }
 0x6a1   :  { %4469 = vmatpush1.bf16.msra.mxu0 %v5848_v48  ;;  %4501 = vmatpush1.bf16.msra.mxu1 %v5937_v46 }
 0x6a2   :  { %4471 = vmatprep.subr.bf16.mxu0 %v5852_v49  ;;  %4503 = vmatprep.subr.bf16.mxu1 %v5940_v47 }
 0x6a5   :  { %4473 = vmatpush1.bf16.msra.mxu0 %v5863_v55  ;;  %4505 = vmatpush1.bf16.msra.mxu1 %v5943_v54 }
 0x6a6   :  { %4475 = vmatprep.subr.bf16.mxu0 %v5867_v56  ;;  %4507 = vmatprep.subr.bf16.mxu1 %v5946_v57 }
 0x6a9   :  { %4477 = vmatpush1.bf16.msra.mxu0 %v5878_v62  ;;  %4509 = vmatpush1.bf16.msra.mxu1 %v5949_v60  ;;  %v1890_v60 = vld [vmem:[#allocation8] sm:$0xff] }
 0x6aa   :  { %4511 = vmatprep.subr.bf16.mxu0 %v4510_v19  ;;  %4543 = vmatprep.subr.bf16.mxu1 %v4542_v26  ;;  %v4512_v24 = vpack.c.bf16 %v1894_v29, %v1890_v60  ;;  %v1913_v19 = vld [vmem:[#allocation8 + $0xb8] sm:$0xff]  ;;  %v4548_v26 = vpack.c.bf16 %v1904_v17, %v1900_v50 }
 0x75f   :  { %v1602_v33 = vpop.f32.mrb[12].mxu0  ;;  %v1673_v35 = vpop.f32.mrb[12].mxu1 }
 0x760   :  { %v5132_v41 = vadd.f32 %v1602_v33, %v5981_v11  ;;  %v1604_v42 = vpop.f32.mrb[13].mxu0  ;;  %v1675_v48 = vpop.f32.mrb[13].mxu1  ;;  %v5148_v6 = vadd.f32 %v1673_v35, %v5993_v43  ;;  %v1906_v33 = vld [vmem:[#allocation8 + $0x80] sm:$0xff] }
 0x761   :  { %v5133_v49 = vadd.f32 %v1604_v42, %v5985_v12  ;;  %v5149_v62 = vadd.f32 %v1675_v48, %v5997_v45  ;;  %v1910_v35 = vld [vmem:[#allocation8 + $0xa0] sm:$0xff]  ;;  %v4550_v42 = vpack.c.bf16 %v1913_v19, %v1909_v18  ;;  %v1908_v48 = vld [vmem:[#allocation8 + $0x90] sm:$0xff]  ;;  %v1939_v18 = vld [vmem:[#allocation8 + $0x188] sm:$0xff] }
 0x762   :  { %v3899_v55 = vmul.f32 -1.442695, %v5132_v41  ;;  %v4518_v41 = vpack.c.bf16 %v1911_v15, %v1907_v10  ;;  %v1932_v10 = vld [vmem:[#allocation8 + $0x150] sm:$0xff]  ;;  %v1943_v19 = vld [vmem:[#allocation8 + $0x1a8] sm:$0xff] }
 0x763   :  { %v3900_v56 = vmul.f32 -1.442695, %v5133_v49  ;;  %v3901_v5 = vmul.f32 -1.442695, %v5149_v62  ;;  %v1912_v49 = vld [vmem:[#allocation8 + $0xb0] sm:$0xff]  ;;  %v1917_v62 = vld [vmem:[#allocation8 + $0xd8] sm:$0xff] }
 0x764   :  { %5352 = vpow2.f32 %v3899_v55  ;;  %v1915_v55 = vld [vmem:[#allocation8 + $0xc8] sm:$0xff]  ;;  %v1936_v15 = vld [vmem:[#allocation8 + $0x170] sm:$0xff] }
 0x765   :  { %5354 = vpow2.f32 %v3900_v56  ;;  %v1919_v56 = vld [vmem:[#allocation8 + $0xe8] sm:$0xff] }
 0x766   :  { %5356 = vpow2.f32 %v3901_v5  ;;  %v1921_v5 = vld [vmem:[#allocation8 + $0xf8] sm:$0xff] }
 0x767   :  { %5358 = vtanh.f32 %v5148_v6  ;;  %v4520_v6 = vpack.c.bf16 %v1910_v35, %v1906_v33  ;;  %v4564_v35 = vpack.c.bf16 %v1936_v15, %v1932_v10  ;;  %v1975_v10 = vld [vmem:[#allocation10 + $0xa8] sm:$0xff]  ;;  %v1973_v15 = vld [vmem:[#allocation10 + $0x98] sm:$0xff] }
 0x76e   :  { %v5353_v13 = vpop.eup %5352 }
 0x76f   :  { %v5355_v14 = vpop.eup %5354  ;;  %v1685_v22 = vadd.f32 1.0, %v5353_v13  ;;  %v4552_v13 = vpack.c.bf16 %v1912_v49, %v1908_v48  ;;  %v4534_v48 = vpack.c.bf16 %v1943_v19, %v1939_v18  ;;  %v1970_v19 = vld [vmem:[#allocation10 + $0x80] sm:$0xff] }
 0x770   :  { %v1691_v23 = vadd.f32 1.0, %v5355_v14  ;;  %v5357_v30 = vpop.eup %5356  ;;  %v1914_v14 = vld [vmem:[#allocation8 + $0xc0] sm:$0xff] }
 0x771   :  { %5360 = vrcp.f32 %v1685_v22  ;;  %v5359_v31 = vpop.eup %5358  ;;  %v1698_v47 = vadd.f32 1.0, %v5357_v30  ;;  %v1918_v22 = vld [vmem:[#allocation8 + $0xe0] sm:$0xff]  ;;  %v4554_v30 = vpack.c.bf16 %v1921_v5, %v1917_v62  ;;  %v1947_v62 = vld [vmem:[#allocation8 + $0x1c8] sm:$0xff] }
 0x772   :  { %5362 = vrcp.f32 %v1691_v23  ;;  %v4522_v23 = vpack.c.bf16 %v1919_v56, %v1915_v55  ;;  %v4524_v60 = vpack.c.bf16 %v1918_v22, %v1914_v14  ;;  %v1940_v55 = vld [vmem:[#allocation8 + $0x190] sm:$0xff]  ;;  %v1951_v5 = vld [vmem:[#allocation8 + $0x1e8] sm:$0xff] }
 0x773   :  { %5364 = vrcp.f32 %v1698_v47  ;;  %v1925_v47 = vld [vmem:[#allocation8 + $0x118] sm:$0xff]  ;;  %v1944_v56 = vld [vmem:[#allocation8 + $0x1b0] sm:$0xff] }
 0x774   :  { %v4568_v22 = vpack.c.bf16 %v1944_v56, %v1940_v55  ;;  %v1983_v55 = vld [vmem:[#allocation10 + $0xe8] sm:$0xff]  ;;  %v1981_v56 = vld [vmem:[#allocation10 + $0xd8] sm:$0xff] }
 0x77b   :  { %v5361_v38 = vpop.eup %5360 }
 0x77c   :  { %v5363_v39 = vpop.eup %5362  ;;  %v1702_v46 = vmul.f32 %v5361_v38, %v5359_v31  ;;  %v1916_v31 = vld [vmem:[#allocation8 + $0xd0] sm:$0xff] }
 0x77d   :  { %v1701_v54 = vmul.f32 %v5363_v39, %v6231_v1  ;;  %v5365_v40 = vpop.eup %5364  ;;  %v4546_v1 = vpack.c.bf16 %v1905_v63, %v1901_v34  ;;  %v1920_v38 = vld [vmem:[#allocation8 + $0xf0] sm:$0xff]  ;;  %v1923_v39 = vld [vmem:[#allocation8 + $0x108] sm:$0xff] }
 0x77e   :  { %v4556_v29 = vpack.c.bf16 %v1920_v38, %v1916_v31  ;;  %v1924_v34 = vld [vmem:[#allocation8 + $0x110] sm:$0xff]  ;;  %v1950_v38 = vld [vmem:[#allocation8 + $0x1e0] sm:$0xff] }
 0x77f   :  { %v6275_v57 = vadd.f32 %v1702_v46, %v1701_v54  ;;  %v1927_v46 = vld [vmem:[#allocation8 + $0x128] sm:$0xff]  ;;  %v1929_v54 = vld [vmem:[#allocation8 + $0x138] sm:$0xff]  ;;  %v1928_v63 = vld [vmem:[#allocation8 + $0x130] sm:$0xff] }
 0x780   :  { %v4526_v28 = vpack.c.bf16 %v1927_v46, %v1923_v39  ;;  %v4558_v7 = vpack.c.bf16 %v1929_v54, %v1925_v47  ;;  %v4560_v58 = vpack.c.bf16 %v1928_v63, %v1924_v34  ;;  %v1948_v39 = vld [vmem:[#allocation8 + $0x1d0] sm:$0xff]  ;;  %v1967_v34 = vld [vmem:[#allocation10 + $0x68] sm:$0xff]  ;;  %v1965_v63 = vld [vmem:[#allocation10 + $0x58] sm:$0xff] }
 0x781   :  { %5366 = vtanh.f32 %v6275_v57  ;;  %v1952_v46 = vld [vmem:[#allocation8 + $0x1f0] sm:$0xff] }
 0x782   :  { %v4572_v54 = vpack.c.bf16 %v1952_v46, %v1948_v39  ;;  %v1991_v39 = vld [vmem:[#allocation10 + $0x128] sm:$0xff]  ;;  %v1986_v46 = vld [vmem:[#allocation10 + $0x100] sm:$0xff] }
 0x78b   :  { %v5367_v20 = vpop.eup %5366 }
 0x78c   :  { %v6278_v37 = vmul.f32 %v5367_v20, %v5365_v40  ;;  %v1931_v40 = vld [vmem:[#allocation8 + $0x148] sm:$0xff] }
 0x78d   :  { %v1935_v20 = vld [vmem:[#allocation8 + $0x168] sm:$0xff] }
 0x78e   :  { %1776 = vmatmul.mubr.f32.vlgmr.msra.gmra.mrb[14].mxu0 %v6278_v37  ;;  %1847 = vmatmul.mubr.f32.vlgmr.msra.gmra.mrb[14].mxu1 %v6278_v37  ;;  %v4530_v50 = vpack.c.bf16 %v1935_v20, %v1931_v40  ;;  %v1962_v20 = vld [vmem:[#allocation10 + $0x40] sm:$0xff] }
 0x78f   :  { %4513 = vmatpush1.bf16.msra.mxu0 %v4512_v24  ;;  %4545 = vmatpush1.bf16.msra.mxu1 %v4544_v51  ;;  %v1933_v24 = vld [vmem:[#allocation8 + $0x158] sm:$0xff] }
 0x790   :  { %4515 = vmatprep.subr.bf16.mxu0 %v4514_v2  ;;  %4547 = vmatprep.subr.bf16.mxu1 %v4546_v1  ;;  %v1937_v51 = vld [vmem:[#allocation8 + $0x178] sm:$0xff]  ;;  %v1930_v2 = vld [vmem:[#allocation8 + $0x140] sm:$0xff] }
 0x791   :  { %2104 = vmatprep.mubr.f32.mxu0 %v5638_v0  ;;  %2217 = vmatprep.mubr.f32.mxu1 %v5638_v0  ;;  %v1934_v1 = vld [vmem:[#allocation8 + $0x160] sm:$0xff]  ;;  %v4562_v17 = vpack.c.bf16 %v1937_v51, %v1933_v24  ;;  %v1969_v51 = vld [vmem:[#allocation10 + $0x78] sm:$0xff] }
 0x792   :  { %v4532_v33 = vpack.c.bf16 %v1934_v1, %v1930_v2  ;;  %v1966_v24 = vld [vmem:[#allocation10 + $0x60] sm:$0xff]  ;;  %v1964_v2 = vld [vmem:[#allocation10 + $0x50] sm:$0xff] }
 0x793   :  { %4517 = vmatpush1.bf16.msra.mxu0 %v4516_v25  ;;  %4549 = vmatpush1.bf16.msra.mxu1 %v4548_v26  ;;  %v1941_v25 = vld [vmem:[#allocation8 + $0x198] sm:$0xff]  ;;  %v1968_v1 = vld [vmem:[#allocation10 + $0x70] sm:$0xff] }
 0x794   :  { %4519 = vmatprep.subr.bf16.mxu0 %v4518_v41  ;;  %4551 = vmatprep.subr.bf16.mxu1 %v4550_v42  ;;  %v1945_v26 = vld [vmem:[#allocation8 + $0x1b8] sm:$0xff]  ;;  %v1938_v41 = vld [vmem:[#allocation8 + $0x180] sm:$0xff] }
 0x795   :  { %v1942_v42 = vld [vmem:[#allocation8 + $0x1a0] sm:$0xff]  ;;  %v4566_v49 = vpack.c.bf16 %v1945_v26, %v1941_v25  ;;  %v1977_v26 = vld [vmem:[#allocation10 + $0xb8] sm:$0xff] }
 0x796   :  { %v4536_v14 = vpack.c.bf16 %v1942_v42, %v1938_v41  ;;  %v1974_v25 = vld [vmem:[#allocation10 + $0xa0] sm:$0xff]  ;;  %v1972_v41 = vld [vmem:[#allocation10 + $0x90] sm:$0xff] }
 0x797   :  { %4521 = vmatpush1.bf16.msra.mxu0 %v4520_v6  ;;  %4553 = vmatpush1.bf16.msra.mxu1 %v4552_v13  ;;  %v1949_v6 = vld [vmem:[#allocation8 + $0x1d8] sm:$0xff]  ;;  %v1976_v42 = vld [vmem:[#allocation10 + $0xb0] sm:$0xff] }
 0x798   :  { %4523 = vmatprep.subr.bf16.mxu0 %v4522_v23  ;;  %4555 = vmatprep.subr.bf16.mxu1 %v4554_v30  ;;  %v1953_v13 = vld [vmem:[#allocation8 + $0x1f8] sm:$0xff]  ;;  %v1946_v23 = vld [vmem:[#allocation8 + $0x1c0] sm:$0xff]  ;;  %v4538_v30 = vpack.c.bf16 %v1951_v5, %v1947_v62 }
 0x799   :  { %v4570_v31 = vpack.c.bf16 %v1953_v13, %v1949_v6  ;;  %v4540_v47 = vpack.c.bf16 %v1950_v38, %v1946_v23  ;;  %v1978_v5 = vld [vmem:[#allocation10 + $0xc0] sm:$0xff]  ;;  %v1985_v13 = vld [vmem:[#allocation10 + $0xf8] sm:$0xff]  ;;  %v1980_v23 = vld [vmem:[#allocation10 + $0xd0] sm:$0xff] }
 0x79a   :  { %v1982_v6 = vld [vmem:[#allocation10 + $0xe0] sm:$0xff] }
 0x79b   :  { %4525 = vmatpush1.bf16.msra.mxu0 %v4524_v60  ;;  %4557 = vmatpush1.bf16.msra.mxu1 %v4556_v29  ;;  %v1958_v60 = vld [vmem:[#allocation10 + $0x20] sm:$0xff] }
 0x79c   :  { %4527 = vmatprep.subr.bf16.mxu0 %v4526_v28  ;;  %4559 = vmatprep.subr.bf16.mxu1 %v4558_v7  ;;  %v1960_v28 = vld [vmem:[#allocation10 + $0x30] sm:$0xff]  ;;  %v1963_v7 = vld [vmem:[#allocation10 + $0x48] sm:$0xff] }
 0x79d   :  { %v6324_v40 = vpack.c.bf16 %v1967_v34, %v1963_v7 }
 0x79f   :  { %4529 = vmatpush1.bf16.msra.mxu0 %v4528_v16  ;;  %4561 = vmatpush1.bf16.msra.mxu1 %v4560_v58  ;;  %v6326_v16 = vpack.c.bf16 %v1966_v24, %v1962_v20  ;;  %v6328_v58 = vpack.c.bf16 %v1969_v51, %v1965_v63  ;;  %v1994_v63 = vld [vmem:[#allocation10 + $0x140] sm:$0xff]  ;;  %v1997_v24 = vld [vmem:[#allocation10 + $0x158] sm:$0xff] }
 0x7a0   :  { %4531 = vmatprep.subr.bf16.mxu0 %v4530_v50  ;;  %4563 = vmatprep.subr.bf16.mxu1 %v4562_v17  ;;  %v6331_v50 = vpack.c.bf16 %v1968_v1, %v1964_v2  ;;  %v1971_v17 = vld [vmem:[#allocation10 + $0x88] sm:$0xff]  ;;  %v1998_v20 = vld [vmem:[#allocation10 + $0x160] sm:$0xff]  ;;  %v2001_v51 = vld [vmem:[#allocation10 + $0x178] sm:$0xff] }
 0x7a1   :  { %v6336_v18 = vpack.c.bf16 %v1975_v10, %v1971_v17  ;;  %v1996_v2 = vld [vmem:[#allocation10 + $0x150] sm:$0xff]  ;;  %v6373_v17 = vpack.c.bf16 %v1998_v20, %v1994_v63  ;;  %v6375_v10 = vpack.c.bf16 %v2001_v51, %v1997_v24 }
 0x7a2   :  { %v2000_v1 = vld [vmem:[#allocation10 + $0x170] sm:$0xff] }
 0x7a3   :  { %4533 = vmatpush1.bf16.msra.mxu0 %v4532_v33  ;;  %4565 = vmatpush1.bf16.msra.mxu1 %v4564_v35  ;;  %v6338_v33 = vpack.c.bf16 %v1974_v25, %v1970_v19  ;;  %v6340_v35 = vpack.c.bf16 %v1977_v26, %v1973_v15  ;;  %v2003_v15 = vld [vmem:[#allocation10 + $0x188] sm:$0xff]  ;;  %v2002_v25 = vld [vmem:[#allocation10 + $0x180] sm:$0xff]  ;;  %v6379_v26 = vpack.c.bf16 %v2000_v1, %v1996_v2 }
 0x7a4   :  { %4535 = vmatprep.subr.bf16.mxu0 %v4534_v48  ;;  %4567 = vmatprep.subr.bf16.mxu1 %v4566_v49  ;;  %v6343_v48 = vpack.c.bf16 %v1976_v42, %v1972_v41  ;;  %v1979_v49 = vld [vmem:[#allocation10 + $0xc8] sm:$0xff]  ;;  %v2006_v42 = vld [vmem:[#allocation10 + $0x1a0] sm:$0xff] }
 0x7a5   :  { %v6348_v62 = vpack.c.bf16 %v1983_v55, %v1979_v49  ;;  %v2007_v19 = vld [vmem:[#allocation10 + $0x1a8] sm:$0xff]  ;;  %v2005_v49 = vld [vmem:[#allocation10 + $0x198] sm:$0xff] }
 0x7a6   :  { %v6381_v41 = vpack.c.bf16 %v2007_v19, %v2003_v15  ;;  %v2009_v55 = vld [vmem:[#allocation10 + $0x1b8] sm:$0xff] }
 0x7a7   :  { %4537 = vmatpush1.bf16.msra.mxu0 %v4536_v14  ;;  %4569 = vmatpush1.bf16.msra.mxu1 %v4568_v22  ;;  %v6350_v14 = vpack.c.bf16 %v1982_v6, %v1978_v5  ;;  %v6352_v22 = vpack.c.bf16 %v1985_v13, %v1981_v56  ;;  %v6384_v56 = vpack.c.bf16 %v2009_v55, %v2005_v49  ;;  %v2004_v5 = vld [vmem:[#allocation10 + $0x190] sm:$0xff]  ;;  %v2011_v13 = vld [vmem:[#allocation10 + $0x1c8] sm:$0xff] }
 0x7a8   :  { %4539 = vmatprep.subr.bf16.mxu0 %v4538_v30  ;;  %4571 = vmatprep.subr.bf16.mxu1 %v4570_v31  ;;  %v1984_v30 = vld [vmem:[#allocation10 + $0xf0] sm:$0xff]  ;;  %v1987_v31 = vld [vmem:[#allocation10 + $0x108] sm:$0xff] }
 0x7a9   :  { %v6355_v38 = vpack.c.bf16 %v1984_v30, %v1980_v23  ;;  %v2008_v6 = vld [vmem:[#allocation10 + $0x1b0] sm:$0xff]  ;;  %v2015_v23 = vld [vmem:[#allocation10 + $0x1e8] sm:$0xff]  ;;  %v6387_v30 = vpack.c.bf16 %v2006_v42, %v2002_v25 }
 0x7ab   :  { %4541 = vmatpush1.bf16.msra.mxu0 %v4540_v47  ;;  %4573 = vmatpush1.bf16.msra.mxu1 %v4572_v54  ;;  %v1990_v47 = vld [vmem:[#allocation10 + $0x120] sm:$0xff]  ;;  %v6359_v54 = vpack.c.bf16 %v1991_v39, %v1987_v31  ;;  %v6391_v31 = vpack.c.bf16 %v2008_v6, %v2004_v5  ;;  %v6393_v39 = vpack.c.bf16 %v2015_v23, %v2011_v13 }
 0x7ae   :  { %2105 = vmatmul.mubr.f32.vlgmr.msra.gmra.mrb[16].mxu0 %v6004_v27  ;;  %2218 = vmatmul.mubr.f32.vlgmr.msra.gmra.mrb[18].mxu1 %v6004_v27  ;;  %v1955_v27 = vld [vmem:[#allocation10 + $0x8] sm:$0xff] }
 0x7af   :  { %2110 = vmatprep.mubr.f32.mxu0 %v5638_v0  ;;  %2223 = vmatprep.mubr.f32.mxu1 %v5638_v0 }
 0x7b2   :  { %2111 = vmatmul.mubr.f32.gmra.mrb[18].mxu0 %v6050_v44  ;;  %2224 = vmatmul.mubr.f32.gmra.mrb[20].mxu1 %v6050_v44  ;;  %v1959_v44 = vld [vmem:[#allocation10 + $0x28] sm:$0xff] }
 0x7b3   :  { %2116 = vmatprep.mubr.f32.mxu0 %v5638_v0  ;;  %2229 = vmatprep.mubr.f32.mxu1 %v5638_v0 }
 0x7b6   :  { %2117 = vmatmul.mubr.f32.gmra.mrb[20].mxu0 %v6096_v59  ;;  %2230 = vmatmul.mubr.f32.gmra.mrb[22].mxu1 %v6096_v59  ;;  %v1957_v59 = vld [vmem:[#allocation10 + $0x18] sm:$0xff] }
 0x7b7   :  { %2122 = vmatprep.mubr.f32.mxu0 %v5638_v0  ;;  %2235 = vmatprep.mubr.f32.mxu1 %v5638_v0 }
 0x7ba   :  { %2123 = vmatmul.mubr.f32.gmra.mrb[22].mxu0 %v6142_v21  ;;  %2236 = vmatmul.mubr.f32.gmra.mrb[24].mxu1 %v6142_v21  ;;  %v6312_v21 = vpack.c.bf16 %v1959_v44, %v1955_v27  ;;  %v6361_v27 = vpack.c.bf16 %v1990_v47, %v1986_v46  ;;  %v1989_v44 = vld [vmem:[#allocation10 + $0x118] sm:$0xff] }
 0x7bb   :  { %2128 = vmatprep.mubr.f32.mxu0 %v5638_v0  ;;  %2241 = vmatprep.mubr.f32.mxu1 %v5638_v0  ;;  %v2013_v46 = vld [vmem:[#allocation10 + $0x1d8] sm:$0xff] }
 0x7bc   :  { %4575 = vmatprep.subr.bf16.mxu0 %v6312_v21  ;;  %v2017_v47 = vld [vmem:[#allocation10 + $0x1f8] sm:$0xff] }
 0x7be   :  { %2129 = vmatmul.mubr.f32.gmra.mrb[24].mxu0 %v6188_v52  ;;  %2242 = vmatmul.mubr.f32.gmra.mrb[26].mxu1 %v6188_v52  ;;  %v1954_v52 = vld [vmem:[#allocation10] sm:$0xff] }
 0x7bf   :  { %2134 = vmatprep.mubr.f32.mxu0 %v5638_v0  ;;  %2247 = vmatprep.mubr.f32.mxu1 %v5638_v0  ;;  %v6314_v29 = vpack.c.bf16 %v1958_v60, %v1954_v52  ;;  %v1988_v52 = vld [vmem:[#allocation10 + $0x110] sm:$0xff] }
 0x7c1   :  { %4577 = vmatpush1.bf16.msra.mxu0 %v6314_v29 }
 0x7c2   :  { %2135 = vmatmul.mubr.f32.gmra.mrb[26].mxu0 %v6234_v61  ;;  %2248 = vmatmul.mubr.f32.gmra.mrb[28].mxu1 %v6234_v61  ;;  %v1961_v61 = vld [vmem:[#allocation10 + $0x38] sm:$0xff] }
 0x7c3   :  { %2140 = vmatprep.mubr.f32.mxu0 %v5638_v0  ;;  %2253 = vmatprep.mubr.f32.mxu1 %v5638_v0  ;;  %v6316_v8 = vpack.c.bf16 %v1961_v61, %v1957_v59  ;;  %v1993_v59 = vld [vmem:[#allocation10 + $0x138] sm:$0xff]  ;;  %v1992_v61 = vld [vmem:[#allocation10 + $0x130] sm:$0xff] }
 0x7c4   :  { %4579 = vmatprep.subr.bf16.mxu0 %v6324_v40  ;;  %v6364_v60 = vpack.c.bf16 %v1993_v59, %v1989_v44  ;;  %v6367_v7 = vpack.c.bf16 %v1992_v61, %v1988_v52  ;;  %v2010_v44 = vld [vmem:[#allocation10 + $0x1c0] sm:$0xff]  ;;  %v6399_v52 = vpack.c.bf16 %v2017_v47, %v2013_v46  ;;  %v2012_v61 = vld [vmem:[#allocation10 + $0x1d0] sm:$0xff] }
 0x7c5   :  { %4607 = vmatprep.subr.bf16.mxu1 %v6316_v8  ;;  %4581 = vmatpush1.bf16.msra.mxu0 %v6326_v16  ;;  %v2014_v59 = vld [vmem:[#allocation10 + $0x1e0] sm:$0xff] }
 0x7c6   :  { %2141 = vmatmul.mubr.f32.gmra.mrb[28].mxu0 %v6278_v37  ;;  %2254 = vmatmul.mubr.f32.gmra.mrb[30].mxu1 %v6278_v37  ;;  %v6319_v37 = vpack.c.bf16 %v1960_v28, %v1956_v53  ;;  %v1995_v53 = vld [vmem:[#allocation10 + $0x148] sm:$0xff] }
 0x7c7   :  { %2146 = vmatprep.mubr.f32.mxu0 %v5638_v0  ;;  %2259 = vmatprep.mubr.f32.mxu1 %v5638_v0  ;;  %v1999_v28 = vld [vmem:[#allocation10 + $0x168] sm:$0xff] }
 0x7c8   :  { %4609 = vmatpush1.bf16.msra.mxu1 %v6319_v37  ;;  %4583 = vmatprep.subr.bf16.mxu0 %v6336_v18  ;;  %v6369_v34 = vpack.c.bf16 %v1999_v28, %v1995_v53  ;;  %v6401_v53 = vpack.c.bf16 %v2014_v59, %v2010_v44  ;;  %v2016_v28 = vld [vmem:[#allocation10 + $0x1f0] sm:$0xff] }
 0x7c9   :  { %4611 = vmatprep.subr.bf16.mxu1 %v6328_v58  ;;  %4585 = vmatpush1.bf16.msra.mxu0 %v6338_v33  ;;  %v6404_v63 = vpack.c.bf16 %v2016_v28, %v2012_v61 }
 0x7ca   :  { %4587 = vmatprep.subr.bf16.mxu0 %v6348_v62 }
 0x7cc   :  { %4613 = vmatpush1.bf16.msra.mxu1 %v6331_v50 }
 0x7cd   :  { %4615 = vmatprep.subr.bf16.mxu1 %v6340_v35  ;;  %4589 = vmatpush1.bf16.msra.mxu0 %v6350_v14 }
 0x7ce   :  { %4591 = vmatprep.subr.bf16.mxu0 %v6359_v54 }
 0x7d0   :  { %4617 = vmatpush1.bf16.msra.mxu1 %v6343_v48 }
 0x7d1   :  { %4619 = vmatprep.subr.bf16.mxu1 %v6352_v22  ;;  %4593 = vmatpush1.bf16.msra.mxu0 %v6361_v27 }
 0x7d2   :  { %4595 = vmatprep.subr.bf16.mxu0 %v6369_v34 }
 0x7d4   :  { %4621 = vmatpush1.bf16.msra.mxu1 %v6355_v38 }
 0x7d5   :  { %4623 = vmatprep.subr.bf16.mxu1 %v6364_v60  ;;  %4597 = vmatpush1.bf16.msra.mxu0 %v6373_v17 }
 0x7d6   :  { %4599 = vmatprep.subr.bf16.mxu0 %v6381_v41 }
 0x7d8   :  { %4625 = vmatpush1.bf16.msra.mxu1 %v6367_v7 }
 0x7d9   :  { %4627 = vmatprep.subr.bf16.mxu1 %v6375_v10  ;;  %4601 = vmatpush1.bf16.msra.mxu0 %v6387_v30 }
 0x7da   :  { %4603 = vmatprep.subr.bf16.mxu0 %v6393_v39 }
 0x7dc   :  { %4629 = vmatpush1.bf16.msra.mxu1 %v6379_v26 }
 0x7dd   :  { %4631 = vmatprep.subr.bf16.mxu1 %v6384_v56  ;;  %4605 = vmatpush1.bf16.msra.mxu0 %v6401_v53 }
 0x7de   :  { %4639 = vmatprep.subr.bf16.mxu0 %v6312_v21 }
 0x7e0   :  { %4633 = vmatpush1.bf16.msra.mxu1 %v6391_v31 }
 0x7e1   :  { %4635 = vmatprep.subr.bf16.mxu1 %v6399_v52 }
 0x7e4   :  { %4637 = vmatpush1.bf16.msra.mxu1 %v6404_v63 }
 0x7e5   :  { %4671 = vmatprep.subr.bf16.mxu1 %v6316_v8 }
 0x861   :  { %v1777_v20 = vpop.f32.mrb[14].mxu0  ;;  %v1848_v24 = vpop.f32.mrb[14].mxu1 }
 0x862   :  { %v5134_v51 = vadd.f32 %v1777_v20, %v5981_v11  ;;  %v1779_v2 = vpop.f32.mrb[15].mxu0  ;;  %v1850_v1 = vpop.f32.mrb[15].mxu1  ;;  %v5150_v55 = vadd.f32 %v1848_v24, %v5993_v43 }
 0x863   :  { %v5135_v15 = vadd.f32 %v1779_v2, %v5985_v12  ;;  %v5151_v42 = vadd.f32 %v1850_v1, %v5997_v45 }
 0x864   :  { %v3902_v19 = vmul.f32 -1.442695, %v5134_v51 }
 0x865   :  { %v3903_v25 = vmul.f32 -1.442695, %v5135_v15  ;;  %v3904_v49 = vmul.f32 -1.442695, %v5151_v42 }
 0x866   :  { %5368 = vpow2.f32 %v3902_v19 }
 0x867   :  { %5370 = vpow2.f32 %v3903_v25 }
 0x868   :  { %5372 = vpow2.f32 %v3904_v49 }
 0x869   :  { %5374 = vtanh.f32 %v5150_v55 }
 0x870   :  { %v5369_v5 = vpop.eup %5368 }
 0x871   :  { %v5371_v6 = vpop.eup %5370  ;;  %v1860_v13 = vadd.f32 1.0, %v5369_v5 }
 0x872   :  { %v1866_v23 = vadd.f32 1.0, %v5371_v6  ;;  %v5373_v11 = vpop.eup %5372 }
 0x873   :  { %5376 = vrcp.f32 %v1860_v13  ;;  %v5375_v46 = vpop.eup %5374  ;;  %v1873_v59 = vadd.f32 1.0, %v5373_v11 }
 0x874   :  { %5378 = vrcp.f32 %v1866_v23 }
 0x875   :  { %5380 = vrcp.f32 %v1873_v59 }
 0x87d   :  { %v5377_v12 = vpop.eup %5376 }
 0x87e   :  { %v5379_v47 = vpop.eup %5378  ;;  %v1877_v44 = vmul.f32 %v5377_v12, %v5375_v46 }
 0x87f   :  { %v1876_v61 = vmul.f32 %v5379_v47, %v6275_v57  ;;  %v5381_v43 = vpop.eup %5380  ;;  %v2018_v57 = vld [vmem:[%s6788_s6] sm:$0xf] }
 0x880   :  { %v6458_v24 = vrot.slane %v2018_v57, %v168_v4  ;;  %v6462_v51 = vrot.slane %v2018_v57, %v172_v9  ;;  %v6468_v5 = vrot.slane %v2018_v57, %v180_v36  ;;  %v6473_v9 = vrot.slane %v2018_v57, %v176_v32 }
 0x881   :  { %v1878_v45 = vadd.f32 %v1877_v44, %v1876_v61 }
 0x883   :  { %5382 = vtanh.f32 %v1878_v45 }
 0x88d   :  { %v5383_v28 = vpop.eup %5382 }
 0x88e   :  { %v1880_v20 = vmul.f32 %v5383_v28, %v5381_v43 }
 0x890   :  { %2147 = vmatmul.mubr.f32.gmra.mrb[30].mxu0 %v1880_v20  ;;  %2260 = vmatmul.mubr.f32.gmra.mrb[32].mxu1 %v1880_v20 }
 0x891   :  { %2366 = vmatprep.mubr.f32.mxu0 %v5638_v0  ;;  %2437 = vmatprep.mubr.f32.mxu1 %v5638_v0 }
 0x894   :  { %2367 = vmatmul.mubr.f32.vlgmr.msra.gmra.mrb[16].mxu0 %v5638_v0  ;;  %2438 = vmatmul.mubr.f32.vlgmr.msra.gmra.mrb[18].mxu1 %v5638_v0 }
 0x895   :  { %4641 = vmatpush1.bf16.msra.mxu0 %v6314_v29  ;;  %4673 = vmatpush1.bf16.msra.mxu1 %v6319_v37 }
 0x896   :  { %4643 = vmatprep.subr.bf16.mxu0 %v6324_v40  ;;  %4675 = vmatprep.subr.bf16.mxu1 %v6328_v58 }
 0x897   :  { %2541 = vmatprep.mubr.f32.mxu0 %v5638_v0  ;;  %2612 = vmatprep.mubr.f32.mxu1 %v5638_v0 }
 0x899   :  { %4645 = vmatpush1.bf16.msra.mxu0 %v6326_v16  ;;  %4677 = vmatpush1.bf16.msra.mxu1 %v6331_v50 }
 0x89a   :  { %4647 = vmatprep.subr.bf16.mxu0 %v6336_v18  ;;  %4679 = vmatprep.subr.bf16.mxu1 %v6340_v35 }
 0x89d   :  { %4649 = vmatpush1.bf16.msra.mxu0 %v6338_v33  ;;  %4681 = vmatpush1.bf16.msra.mxu1 %v6343_v48 }
 0x89e   :  { %4651 = vmatprep.subr.bf16.mxu0 %v6348_v62  ;;  %4683 = vmatprep.subr.bf16.mxu1 %v6352_v22 }
 0x8a1   :  { %4653 = vmatpush1.bf16.msra.mxu0 %v6350_v14  ;;  %4685 = vmatpush1.bf16.msra.mxu1 %v6355_v38 }
 0x8a2   :  { %4655 = vmatprep.subr.bf16.mxu0 %v6359_v54  ;;  %4687 = vmatprep.subr.bf16.mxu1 %v6364_v60 }
 0x8a5   :  { %4657 = vmatpush1.bf16.msra.mxu0 %v6361_v27  ;;  %4689 = vmatpush1.bf16.msra.mxu1 %v6367_v7 }
 0x8a6   :  { %4659 = vmatprep.subr.bf16.mxu0 %v6369_v34  ;;  %4691 = vmatprep.subr.bf16.mxu1 %v6375_v10 }
 0x8a9   :  { %4661 = vmatpush1.bf16.msra.mxu0 %v6373_v17  ;;  %4693 = vmatpush1.bf16.msra.mxu1 %v6379_v26 }
 0x8aa   :  { %4663 = vmatprep.subr.bf16.mxu0 %v6381_v41  ;;  %4695 = vmatprep.subr.bf16.mxu1 %v6384_v56 }
 0x8ad   :  { %4665 = vmatpush1.bf16.msra.mxu0 %v6387_v30  ;;  %4697 = vmatpush1.bf16.msra.mxu1 %v6391_v31 }
 0x8ae   :  { %4667 = vmatprep.subr.bf16.mxu0 %v6393_v39  ;;  %4699 = vmatprep.subr.bf16.mxu1 %v6399_v52 }
 0x8b1   :  { %4669 = vmatpush1.bf16.msra.mxu0 %v6401_v53  ;;  %4701 = vmatpush1.bf16.msra.mxu1 %v6404_v63 }
 0x8b2   :  { %4703 = vmatprep.subr.bf16.mxu0 %v6312_v21  ;;  %4735 = vmatprep.subr.bf16.mxu1 %v6316_v8 }
 0x967   :  { %v2368_v2 = vpop.f32.mrb[16].mxu0  ;;  %v2439_v1 = vpop.f32.mrb[18].mxu1 }
 0x968   :  { %v5152_v15 = vadd.f32 %v2368_v2, %v6458_v24  ;;  %v2370_v19 = vpop.f32.mrb[17].mxu0  ;;  %v2441_v25 = vpop.f32.mrb[19].mxu1  ;;  %v5168_v13 = vadd.f32 %v2439_v1, %v6473_v9 }
 0x969   :  { %v5153_v42 = vadd.f32 %v2370_v19, %v6462_v51  ;;  %v5169_v4 = vadd.f32 %v2441_v25, %v6468_v5 }
 0x96a   :  { %v3905_v49 = vmul.f32 -1.442695, %v5152_v15 }
 0x96b   :  { %v3906_v55 = vmul.f32 -1.442695, %v5153_v42  ;;  %v3907_v6 = vmul.f32 -1.442695, %v5169_v4 }
 0x96c   :  { %5384 = vpow2.f32 %v3905_v49 }
 0x96d   :  { %5386 = vpow2.f32 %v3906_v55 }
 0x96e   :  { %5388 = vpow2.f32 %v3907_v6 }
 0x96f   :  { %5390 = vtanh.f32 %v5168_v13 }
 0x976   :  { %v5385_v23 = vpop.eup %5384 }
 0x977   :  { %v5387_v11 = vpop.eup %5386  ;;  %v2451_v46 = vadd.f32 1.0, %v5385_v23 }
 0x978   :  { %v2457_v12 = vadd.f32 1.0, %v5387_v11  ;;  %v5389_v36 = vpop.eup %5388 }
 0x979   :  { %5392 = vrcp.f32 %v2451_v46  ;;  %v5391_v47 = vpop.eup %5390  ;;  %v2464_v45 = vadd.f32 1.0, %v5389_v36 }
 0x97a   :  { %5394 = vrcp.f32 %v2457_v12 }
 0x97b   :  { %5396 = vrcp.f32 %v2464_v45 }
 0x983   :  { %v5393_v44 = vpop.eup %5392 }
 0x984   :  { %v5395_v59 = vpop.eup %5394  ;;  %v2468_v61 = vmul.f32 %v5393_v44, %v5391_v47 }
 0x985   :  { %v2467_v3 = vmul.f32 0.0, %v5395_v59  ;;  %v5397_v43 = vpop.eup %5396 }
 0x987   :  { %v6476_v32 = vadd.f32 %v2468_v61, %v2467_v3 }
 0x989   :  { %5398 = vtanh.f32 %v6476_v32 }
 0x993   :  { %v5399_v28 = vpop.eup %5398 }
 0x994   :  { %v6479_v20 = vmul.f32 %v5399_v28, %v5397_v43 }
 0x996   :  { %2542 = vmatmul.mubr.f32.vlgmr.msra.gmra.mrb[18].mxu0 %v6479_v20  ;;  %2613 = vmatmul.mubr.f32.vlgmr.msra.gmra.mrb[20].mxu1 %v6479_v20 }
 0x997   :  { %4705 = vmatpush1.bf16.msra.mxu0 %v6314_v29  ;;  %4737 = vmatpush1.bf16.msra.mxu1 %v6319_v37 }
 0x998   :  { %4707 = vmatprep.subr.bf16.mxu0 %v6324_v40  ;;  %4739 = vmatprep.subr.bf16.mxu1 %v6328_v58 }
 0x999   :  { %2716 = vmatprep.mubr.f32.mxu0 %v5638_v0  ;;  %2787 = vmatprep.mubr.f32.mxu1 %v5638_v0 }
 0x99b   :  { %4709 = vmatpush1.bf16.msra.mxu0 %v6326_v16  ;;  %4741 = vmatpush1.bf16.msra.mxu1 %v6331_v50 }
 0x99c   :  { %4711 = vmatprep.subr.bf16.mxu0 %v6336_v18  ;;  %4743 = vmatprep.subr.bf16.mxu1 %v6340_v35 }
 0x99f   :  { %4713 = vmatpush1.bf16.msra.mxu0 %v6338_v33  ;;  %4745 = vmatpush1.bf16.msra.mxu1 %v6343_v48 }
 0x9a0   :  { %4715 = vmatprep.subr.bf16.mxu0 %v6348_v62  ;;  %4747 = vmatprep.subr.bf16.mxu1 %v6352_v22 }
 0x9a3   :  { %4717 = vmatpush1.bf16.msra.mxu0 %v6350_v14  ;;  %4749 = vmatpush1.bf16.msra.mxu1 %v6355_v38 }
 0x9a4   :  { %4719 = vmatprep.subr.bf16.mxu0 %v6359_v54  ;;  %4751 = vmatprep.subr.bf16.mxu1 %v6364_v60 }
 0x9a7   :  { %4721 = vmatpush1.bf16.msra.mxu0 %v6361_v27  ;;  %4753 = vmatpush1.bf16.msra.mxu1 %v6367_v7 }
 0x9a8   :  { %4723 = vmatprep.subr.bf16.mxu0 %v6369_v34  ;;  %4755 = vmatprep.subr.bf16.mxu1 %v6375_v10 }
 0x9ab   :  { %4725 = vmatpush1.bf16.msra.mxu0 %v6373_v17  ;;  %4757 = vmatpush1.bf16.msra.mxu1 %v6379_v26 }
 0x9ac   :  { %4727 = vmatprep.subr.bf16.mxu0 %v6381_v41  ;;  %4759 = vmatprep.subr.bf16.mxu1 %v6384_v56 }
 0x9af   :  { %4729 = vmatpush1.bf16.msra.mxu0 %v6387_v30  ;;  %4761 = vmatpush1.bf16.msra.mxu1 %v6391_v31 }
 0x9b0   :  { %4731 = vmatprep.subr.bf16.mxu0 %v6393_v39  ;;  %4763 = vmatprep.subr.bf16.mxu1 %v6399_v52 }
 0x9b3   :  { %4733 = vmatpush1.bf16.msra.mxu0 %v6401_v53  ;;  %4765 = vmatpush1.bf16.msra.mxu1 %v6404_v63 }
 0x9b4   :  { %4767 = vmatprep.subr.bf16.mxu0 %v6312_v21  ;;  %4799 = vmatprep.subr.bf16.mxu1 %v6316_v8 }
 0xa69   :  { %v2543_v57 = vpop.f32.mrb[18].mxu0  ;;  %v2614_v2 = vpop.f32.mrb[20].mxu1 }
 0xa6a   :  { %v5154_v1 = vadd.f32 %v2543_v57, %v6458_v24  ;;  %v2545_v15 = vpop.f32.mrb[19].mxu0  ;;  %v2616_v19 = vpop.f32.mrb[21].mxu1  ;;  %v5170_v6 = vadd.f32 %v2614_v2, %v6473_v9 }
 0xa6b   :  { %v5155_v25 = vadd.f32 %v2545_v15, %v6462_v51  ;;  %v5171_v55 = vadd.f32 %v2616_v19, %v6468_v5 }
 0xa6c   :  { %v3908_v42 = vmul.f32 -1.442695, %v5154_v1 }
 0xa6d   :  { %v3909_v49 = vmul.f32 -1.442695, %v5155_v25  ;;  %v3910_v4 = vmul.f32 -1.442695, %v5171_v55 }
 0xa6e   :  { %5400 = vpow2.f32 %v3908_v42 }
 0xa6f   :  { %5402 = vpow2.f32 %v3909_v49 }
 0xa70   :  { %5404 = vpow2.f32 %v3910_v4 }
 0xa71   :  { %5406 = vtanh.f32 %v5170_v6 }
 0xa78   :  { %v5401_v13 = vpop.eup %5400 }
 0xa79   :  { %v5403_v23 = vpop.eup %5402  ;;  %v2626_v11 = vadd.f32 1.0, %v5401_v13 }
 0xa7a   :  { %v2632_v46 = vadd.f32 1.0, %v5403_v23  ;;  %v5405_v12 = vpop.eup %5404 }
 0xa7b   :  { %5408 = vrcp.f32 %v2626_v11  ;;  %v5407_v36 = vpop.eup %5406  ;;  %v2639_v61 = vadd.f32 1.0, %v5405_v12 }
 0xa7c   :  { %5410 = vrcp.f32 %v2632_v46 }
 0xa7d   :  { %5412 = vrcp.f32 %v2639_v61 }
 0xa85   :  { %v5409_v47 = vpop.eup %5408 }
 0xa86   :  { %v5411_v44 = vpop.eup %5410  ;;  %v2643_v59 = vmul.f32 %v5409_v47, %v5407_v36 }
 0xa87   :  { %v2642_v45 = vmul.f32 %v5411_v44, %v6476_v32  ;;  %v5413_v43 = vpop.eup %5412 }
 0xa89   :  { %v6522_v3 = vadd.f32 %v2643_v59, %v2642_v45 }
 0xa8b   :  { %5414 = vtanh.f32 %v6522_v3 }
 0xa95   :  { %v5415_v28 = vpop.eup %5414 }
 0xa96   :  { %v6525_v57 = vmul.f32 %v5415_v28, %v5413_v43 }
 0xa98   :  { %2717 = vmatmul.mubr.f32.vlgmr.msra.gmra.mrb[20].mxu0 %v6525_v57  ;;  %2788 = vmatmul.mubr.f32.vlgmr.msra.gmra.mrb[22].mxu1 %v6525_v57 }
 0xa99   :  { %4769 = vmatpush1.bf16.msra.mxu0 %v6314_v29  ;;  %4801 = vmatpush1.bf16.msra.mxu1 %v6319_v37 }
 0xa9a   :  { %4771 = vmatprep.subr.bf16.mxu0 %v6324_v40  ;;  %4803 = vmatprep.subr.bf16.mxu1 %v6328_v58 }
 0xa9b   :  { %2891 = vmatprep.mubr.f32.mxu0 %v5638_v0  ;;  %2962 = vmatprep.mubr.f32.mxu1 %v5638_v0 }
 0xa9d   :  { %4773 = vmatpush1.bf16.msra.mxu0 %v6326_v16  ;;  %4805 = vmatpush1.bf16.msra.mxu1 %v6331_v50 }
 0xa9e   :  { %4775 = vmatprep.subr.bf16.mxu0 %v6336_v18  ;;  %4807 = vmatprep.subr.bf16.mxu1 %v6340_v35 }
 0xaa1   :  { %4777 = vmatpush1.bf16.msra.mxu0 %v6338_v33  ;;  %4809 = vmatpush1.bf16.msra.mxu1 %v6343_v48 }
 0xaa2   :  { %4779 = vmatprep.subr.bf16.mxu0 %v6348_v62  ;;  %4811 = vmatprep.subr.bf16.mxu1 %v6352_v22 }
 0xaa5   :  { %4781 = vmatpush1.bf16.msra.mxu0 %v6350_v14  ;;  %4813 = vmatpush1.bf16.msra.mxu1 %v6355_v38 }
 0xaa6   :  { %4783 = vmatprep.subr.bf16.mxu0 %v6359_v54  ;;  %4815 = vmatprep.subr.bf16.mxu1 %v6364_v60 }
 0xaa9   :  { %4785 = vmatpush1.bf16.msra.mxu0 %v6361_v27  ;;  %4817 = vmatpush1.bf16.msra.mxu1 %v6367_v7 }
 0xaaa   :  { %4787 = vmatprep.subr.bf16.mxu0 %v6369_v34  ;;  %4819 = vmatprep.subr.bf16.mxu1 %v6375_v10 }
 0xaad   :  { %4789 = vmatpush1.bf16.msra.mxu0 %v6373_v17  ;;  %4821 = vmatpush1.bf16.msra.mxu1 %v6379_v26 }
 0xaae   :  { %4791 = vmatprep.subr.bf16.mxu0 %v6381_v41  ;;  %4823 = vmatprep.subr.bf16.mxu1 %v6384_v56 }
 0xab1   :  { %4793 = vmatpush1.bf16.msra.mxu0 %v6387_v30  ;;  %4825 = vmatpush1.bf16.msra.mxu1 %v6391_v31 }
 0xab2   :  { %4795 = vmatprep.subr.bf16.mxu0 %v6393_v39  ;;  %4827 = vmatprep.subr.bf16.mxu1 %v6399_v52 }
 0xab5   :  { %4797 = vmatpush1.bf16.msra.mxu0 %v6401_v53  ;;  %4829 = vmatpush1.bf16.msra.mxu1 %v6404_v63 }
 0xab6   :  { %4831 = vmatprep.subr.bf16.mxu0 %v6312_v21  ;;  %4863 = vmatprep.subr.bf16.mxu1 %v6316_v8 }
 0xb6b   :  { %v2718_v32 = vpop.f32.mrb[20].mxu0  ;;  %v2789_v2 = vpop.f32.mrb[22].mxu1 }
 0xb6c   :  { %v5156_v1 = vadd.f32 %v2718_v32, %v6458_v24  ;;  %v2720_v15 = vpop.f32.mrb[21].mxu0  ;;  %v2791_v19 = vpop.f32.mrb[23].mxu1  ;;  %v5172_v6 = vadd.f32 %v2789_v2, %v6473_v9 }
 0xb6d   :  { %v5157_v25 = vadd.f32 %v2720_v15, %v6462_v51  ;;  %v5173_v55 = vadd.f32 %v2791_v19, %v6468_v5 }
 0xb6e   :  { %v3911_v42 = vmul.f32 -1.442695, %v5156_v1 }
 0xb6f   :  { %v3912_v49 = vmul.f32 -1.442695, %v5157_v25  ;;  %v3913_v4 = vmul.f32 -1.442695, %v5173_v55 }
 0xb70   :  { %5416 = vpow2.f32 %v3911_v42 }
 0xb71   :  { %5418 = vpow2.f32 %v3912_v49 }
 0xb72   :  { %5420 = vpow2.f32 %v3913_v4 }
 0xb73   :  { %5422 = vtanh.f32 %v5172_v6 }
 0xb7a   :  { %v5417_v13 = vpop.eup %5416 }
 0xb7b   :  { %v5419_v23 = vpop.eup %5418  ;;  %v2801_v11 = vadd.f32 1.0, %v5417_v13 }
 0xb7c   :  { %v2807_v46 = vadd.f32 1.0, %v5419_v23  ;;  %v5421_v12 = vpop.eup %5420 }
 0xb7d   :  { %5424 = vrcp.f32 %v2801_v11  ;;  %v5423_v36 = vpop.eup %5422  ;;  %v2814_v61 = vadd.f32 1.0, %v5421_v12 }
 0xb7e   :  { %5426 = vrcp.f32 %v2807_v46 }
 0xb7f   :  { %5428 = vrcp.f32 %v2814_v61 }
 0xb87   :  { %v5425_v47 = vpop.eup %5424 }
 0xb88   :  { %v5427_v44 = vpop.eup %5426  ;;  %v2818_v59 = vmul.f32 %v5425_v47, %v5423_v36 }
 0xb89   :  { %v2817_v45 = vmul.f32 %v5427_v44, %v6522_v3  ;;  %v5429_v28 = vpop.eup %5428 }
 0xb8b   :  { %v6568_v43 = vadd.f32 %v2818_v59, %v2817_v45 }
 0xb8d   :  { %5430 = vtanh.f32 %v6568_v43 }
 0xb97   :  { %v5431_v32 = vpop.eup %5430 }
 0xb98   :  { %v6571_v2 = vmul.f32 %v5431_v32, %v5429_v28 }
 0xb9a   :  { %2892 = vmatmul.mubr.f32.vlgmr.msra.gmra.mrb[22].mxu0 %v6571_v2  ;;  %2963 = vmatmul.mubr.f32.vlgmr.msra.gmra.mrb[24].mxu1 %v6571_v2 }
 0xb9b   :  { %4833 = vmatpush1.bf16.msra.mxu0 %v6314_v29  ;;  %4865 = vmatpush1.bf16.msra.mxu1 %v6319_v37 }
 0xb9c   :  { %4835 = vmatprep.subr.bf16.mxu0 %v6324_v40  ;;  %4867 = vmatprep.subr.bf16.mxu1 %v6328_v58 }
 0xb9d   :  { %3066 = vmatprep.mubr.f32.mxu0 %v5638_v0  ;;  %3137 = vmatprep.mubr.f32.mxu1 %v5638_v0 }
 0xb9f   :  { %4837 = vmatpush1.bf16.msra.mxu0 %v6326_v16  ;;  %4869 = vmatpush1.bf16.msra.mxu1 %v6331_v50 }
 0xba0   :  { %4839 = vmatprep.subr.bf16.mxu0 %v6336_v18  ;;  %4871 = vmatprep.subr.bf16.mxu1 %v6340_v35 }
 0xba3   :  { %4841 = vmatpush1.bf16.msra.mxu0 %v6338_v33  ;;  %4873 = vmatpush1.bf16.msra.mxu1 %v6343_v48 }
 0xba4   :  { %4843 = vmatprep.subr.bf16.mxu0 %v6348_v62  ;;  %4875 = vmatprep.subr.bf16.mxu1 %v6352_v22 }
 0xba7   :  { %4845 = vmatpush1.bf16.msra.mxu0 %v6350_v14  ;;  %4877 = vmatpush1.bf16.msra.mxu1 %v6355_v38 }
 0xba8   :  { %4847 = vmatprep.subr.bf16.mxu0 %v6359_v54  ;;  %4879 = vmatprep.subr.bf16.mxu1 %v6364_v60 }
 0xbab   :  { %4849 = vmatpush1.bf16.msra.mxu0 %v6361_v27  ;;  %4881 = vmatpush1.bf16.msra.mxu1 %v6367_v7 }
 0xbac   :  { %4851 = vmatprep.subr.bf16.mxu0 %v6369_v34  ;;  %4883 = vmatprep.subr.bf16.mxu1 %v6375_v10 }
 0xbaf   :  { %4853 = vmatpush1.bf16.msra.mxu0 %v6373_v17  ;;  %4885 = vmatpush1.bf16.msra.mxu1 %v6379_v26 }
 0xbb0   :  { %4855 = vmatprep.subr.bf16.mxu0 %v6381_v41  ;;  %4887 = vmatprep.subr.bf16.mxu1 %v6384_v56 }
 0xbb3   :  { %4857 = vmatpush1.bf16.msra.mxu0 %v6387_v30  ;;  %4889 = vmatpush1.bf16.msra.mxu1 %v6391_v31 }
 0xbb4   :  { %4859 = vmatprep.subr.bf16.mxu0 %v6393_v39  ;;  %4891 = vmatprep.subr.bf16.mxu1 %v6399_v52 }
 0xbb7   :  { %4861 = vmatpush1.bf16.msra.mxu0 %v6401_v53  ;;  %4893 = vmatpush1.bf16.msra.mxu1 %v6404_v63 }
 0xbb8   :  { %4895 = vmatprep.subr.bf16.mxu0 %v6312_v21  ;;  %4927 = vmatprep.subr.bf16.mxu1 %v6316_v8 }
 0xc6d   :  { %v2893_v3 = vpop.f32.mrb[22].mxu0  ;;  %v2964_v1 = vpop.f32.mrb[24].mxu1 }
 0xc6e   :  { %v5158_v15 = vadd.f32 %v2893_v3, %v6458_v24  ;;  %v2895_v19 = vpop.f32.mrb[23].mxu0  ;;  %v2966_v25 = vpop.f32.mrb[25].mxu1  ;;  %v5174_v13 = vadd.f32 %v2964_v1, %v6473_v9 }
 0xc6f   :  { %v5159_v42 = vadd.f32 %v2895_v19, %v6462_v51  ;;  %v5175_v4 = vadd.f32 %v2966_v25, %v6468_v5 }
 0xc70   :  { %v3914_v49 = vmul.f32 -1.442695, %v5158_v15 }
 0xc71   :  { %v3915_v55 = vmul.f32 -1.442695, %v5159_v42  ;;  %v3916_v6 = vmul.f32 -1.442695, %v5175_v4 }
 0xc72   :  { %5432 = vpow2.f32 %v3914_v49 }
 0xc73   :  { %5434 = vpow2.f32 %v3915_v55 }
 0xc74   :  { %5436 = vpow2.f32 %v3916_v6 }
 0xc75   :  { %5438 = vtanh.f32 %v5174_v13 }
 0xc7c   :  { %v5433_v23 = vpop.eup %5432 }
 0xc7d   :  { %v5435_v11 = vpop.eup %5434  ;;  %v2976_v46 = vadd.f32 1.0, %v5433_v23 }
 0xc7e   :  { %v2982_v12 = vadd.f32 1.0, %v5435_v11  ;;  %v5437_v36 = vpop.eup %5436 }
 0xc7f   :  { %5440 = vrcp.f32 %v2976_v46  ;;  %v5439_v47 = vpop.eup %5438  ;;  %v2989_v45 = vadd.f32 1.0, %v5437_v36 }
 0xc80   :  { %5442 = vrcp.f32 %v2982_v12 }
 0xc81   :  { %5444 = vrcp.f32 %v2989_v45 }
 0xc89   :  { %v5441_v44 = vpop.eup %5440 }
 0xc8a   :  { %v5443_v59 = vpop.eup %5442  ;;  %v2993_v61 = vmul.f32 %v5441_v44, %v5439_v47 }
 0xc8b   :  { %v2992_v28 = vmul.f32 %v5443_v59, %v6568_v43  ;;  %v5445_v3 = vpop.eup %5444 }
 0xc8d   :  { %v6614_v32 = vadd.f32 %v2993_v61, %v2992_v28 }
 0xc8f   :  { %5446 = vtanh.f32 %v6614_v32 }
 0xc99   :  { %v5447_v1 = vpop.eup %5446 }
 0xc9a   :  { %v6617_v15 = vmul.f32 %v5447_v1, %v5445_v3 }
 0xc9c   :  { %3067 = vmatmul.mubr.f32.vlgmr.msra.gmra.mrb[24].mxu0 %v6617_v15  ;;  %3138 = vmatmul.mubr.f32.vlgmr.msra.gmra.mrb[26].mxu1 %v6617_v15 }
 0xc9d   :  { %4897 = vmatpush1.bf16.msra.mxu0 %v6314_v29  ;;  %4929 = vmatpush1.bf16.msra.mxu1 %v6319_v37 }
 0xc9e   :  { %4899 = vmatprep.subr.bf16.mxu0 %v6324_v40  ;;  %4931 = vmatprep.subr.bf16.mxu1 %v6328_v58 }
 0xc9f   :  { %3241 = vmatprep.mubr.f32.mxu0 %v5638_v0  ;;  %3312 = vmatprep.mubr.f32.mxu1 %v5638_v0 }
 0xca1   :  { %4901 = vmatpush1.bf16.msra.mxu0 %v6326_v16  ;;  %4933 = vmatpush1.bf16.msra.mxu1 %v6331_v50 }
 0xca2   :  { %4903 = vmatprep.subr.bf16.mxu0 %v6336_v18  ;;  %4935 = vmatprep.subr.bf16.mxu1 %v6340_v35 }
 0xca5   :  { %4905 = vmatpush1.bf16.msra.mxu0 %v6338_v33  ;;  %4937 = vmatpush1.bf16.msra.mxu1 %v6343_v48 }
 0xca6   :  { %4907 = vmatprep.subr.bf16.mxu0 %v6348_v62  ;;  %4939 = vmatprep.subr.bf16.mxu1 %v6352_v22 }
 0xca9   :  { %4909 = vmatpush1.bf16.msra.mxu0 %v6350_v14  ;;  %4941 = vmatpush1.bf16.msra.mxu1 %v6355_v38 }
 0xcaa   :  { %4911 = vmatprep.subr.bf16.mxu0 %v6359_v54  ;;  %4943 = vmatprep.subr.bf16.mxu1 %v6364_v60 }
 0xcad   :  { %4913 = vmatpush1.bf16.msra.mxu0 %v6361_v27  ;;  %4945 = vmatpush1.bf16.msra.mxu1 %v6367_v7 }
 0xcae   :  { %4915 = vmatprep.subr.bf16.mxu0 %v6369_v34  ;;  %4947 = vmatprep.subr.bf16.mxu1 %v6375_v10 }
 0xcb1   :  { %4917 = vmatpush1.bf16.msra.mxu0 %v6373_v17  ;;  %4949 = vmatpush1.bf16.msra.mxu1 %v6379_v26 }
 0xcb2   :  { %4919 = vmatprep.subr.bf16.mxu0 %v6381_v41  ;;  %4951 = vmatprep.subr.bf16.mxu1 %v6384_v56 }
 0xcb5   :  { %4921 = vmatpush1.bf16.msra.mxu0 %v6387_v30  ;;  %4953 = vmatpush1.bf16.msra.mxu1 %v6391_v31 }
 0xcb6   :  { %4923 = vmatprep.subr.bf16.mxu0 %v6393_v39  ;;  %4955 = vmatprep.subr.bf16.mxu1 %v6399_v52 }
 0xcb9   :  { %4925 = vmatpush1.bf16.msra.mxu0 %v6401_v53  ;;  %4957 = vmatpush1.bf16.msra.mxu1 %v6404_v63 }
 0xcba   :  { %4959 = vmatprep.subr.bf16.mxu0 %v6312_v21  ;;  %4991 = vmatprep.subr.bf16.mxu1 %v6316_v8 }
 0xd6f   :  { %v3068_v43 = vpop.f32.mrb[24].mxu0  ;;  %v3139_v19 = vpop.f32.mrb[26].mxu1 }
 0xd70   :  { %v5160_v25 = vadd.f32 %v3068_v43, %v6458_v24  ;;  %v3070_v42 = vpop.f32.mrb[25].mxu0  ;;  %v3141_v49 = vpop.f32.mrb[27].mxu1  ;;  %v5176_v11 = vadd.f32 %v3139_v19, %v6473_v9 }
 0xd71   :  { %v5161_v55 = vadd.f32 %v3070_v42, %v6462_v51  ;;  %v5177_v13 = vadd.f32 %v3141_v49, %v6468_v5 }
 0xd72   :  { %v3917_v4 = vmul.f32 -1.442695, %v5160_v25 }
 0xd73   :  { %v3918_v6 = vmul.f32 -1.442695, %v5161_v55  ;;  %v3919_v23 = vmul.f32 -1.442695, %v5177_v13 }
 0xd74   :  { %5448 = vpow2.f32 %v3917_v4 }
 0xd75   :  { %5450 = vpow2.f32 %v3918_v6 }
 0xd76   :  { %5452 = vpow2.f32 %v3919_v23 }
 0xd77   :  { %5454 = vtanh.f32 %v5176_v11 }
 0xd7e   :  { %v5449_v46 = vpop.eup %5448 }
 0xd7f   :  { %v5451_v12 = vpop.eup %5450  ;;  %v3151_v36 = vadd.f32 1.0, %v5449_v46 }
 0xd80   :  { %v3157_v47 = vadd.f32 1.0, %v5451_v12  ;;  %v5453_v44 = vpop.eup %5452 }
 0xd81   :  { %5456 = vrcp.f32 %v3151_v36  ;;  %v5455_v59 = vpop.eup %5454  ;;  %v3164_v3 = vadd.f32 1.0, %v5453_v44 }
 0xd82   :  { %5458 = vrcp.f32 %v3157_v47 }
 0xd83   :  { %5460 = vrcp.f32 %v3164_v3 }
 0xd8b   :  { %v5457_v61 = vpop.eup %5456 }
 0xd8c   :  { %v5459_v45 = vpop.eup %5458  ;;  %v3168_v28 = vmul.f32 %v5457_v61, %v5455_v59 }
 0xd8d   :  { %v3167_v1 = vmul.f32 %v5459_v45, %v6614_v32  ;;  %v5461_v19 = vpop.eup %5460 }
 0xd8f   :  { %v6660_v43 = vadd.f32 %v3168_v28, %v3167_v1 }
 0xd91   :  { %5462 = vtanh.f32 %v6660_v43 }
 0xd9b   :  { %v5463_v25 = vpop.eup %5462 }
 0xd9c   :  { %v6663_v42 = vmul.f32 %v5463_v25, %v5461_v19 }
 0xd9e   :  { %3242 = vmatmul.mubr.f32.vlgmr.msra.gmra.mrb[26].mxu0 %v6663_v42  ;;  %3313 = vmatmul.mubr.f32.vlgmr.msra.gmra.mrb[28].mxu1 %v6663_v42 }
 0xd9f   :  { %4961 = vmatpush1.bf16.msra.mxu0 %v6314_v29  ;;  %4993 = vmatpush1.bf16.msra.mxu1 %v6319_v37 }
 0xda0   :  { %4963 = vmatprep.subr.bf16.mxu0 %v6324_v40  ;;  %4995 = vmatprep.subr.bf16.mxu1 %v6328_v58 }
 0xda1   :  { %3416 = vmatprep.mubr.f32.mxu0 %v5638_v0  ;;  %3487 = vmatprep.mubr.f32.mxu1 %v5638_v0 }
 0xda3   :  { %4965 = vmatpush1.bf16.msra.mxu0 %v6326_v16  ;;  %4997 = vmatpush1.bf16.msra.mxu1 %v6331_v50 }
 0xda4   :  { %4967 = vmatprep.subr.bf16.mxu0 %v6336_v18  ;;  %4999 = vmatprep.subr.bf16.mxu1 %v6340_v35 }
 0xda7   :  { %4969 = vmatpush1.bf16.msra.mxu0 %v6338_v33  ;;  %5001 = vmatpush1.bf16.msra.mxu1 %v6343_v48 }
 0xda8   :  { %4971 = vmatprep.subr.bf16.mxu0 %v6348_v62  ;;  %5003 = vmatprep.subr.bf16.mxu1 %v6352_v22 }
 0xdab   :  { %4973 = vmatpush1.bf16.msra.mxu0 %v6350_v14  ;;  %5005 = vmatpush1.bf16.msra.mxu1 %v6355_v38 }
 0xdac   :  { %4975 = vmatprep.subr.bf16.mxu0 %v6359_v54  ;;  %5007 = vmatprep.subr.bf16.mxu1 %v6364_v60 }
 0xdaf   :  { %4977 = vmatpush1.bf16.msra.mxu0 %v6361_v27  ;;  %5009 = vmatpush1.bf16.msra.mxu1 %v6367_v7 }
 0xdb0   :  { %4979 = vmatprep.subr.bf16.mxu0 %v6369_v34  ;;  %5011 = vmatprep.subr.bf16.mxu1 %v6375_v10 }
 0xdb3   :  { %4981 = vmatpush1.bf16.msra.mxu0 %v6373_v17  ;;  %5013 = vmatpush1.bf16.msra.mxu1 %v6379_v26 }
 0xdb4   :  { %4983 = vmatprep.subr.bf16.mxu0 %v6381_v41  ;;  %5015 = vmatprep.subr.bf16.mxu1 %v6384_v56 }
 0xdb7   :  { %4985 = vmatpush1.bf16.msra.mxu0 %v6387_v30  ;;  %5017 = vmatpush1.bf16.msra.mxu1 %v6391_v31 }
 0xdb8   :  { %4987 = vmatprep.subr.bf16.mxu0 %v6393_v39  ;;  %5019 = vmatprep.subr.bf16.mxu1 %v6399_v52 }
 0xdbb   :  { %4989 = vmatpush1.bf16.msra.mxu0 %v6401_v53  ;;  %5021 = vmatpush1.bf16.msra.mxu1 %v6404_v63 }
 0xdbc   :  { %5023 = vmatprep.subr.bf16.mxu0 %v6312_v21  ;;  %5055 = vmatprep.subr.bf16.mxu1 %v6316_v8 }
 0xe71   :  { %v3243_v32 = vpop.f32.mrb[26].mxu0  ;;  %v3314_v49 = vpop.f32.mrb[28].mxu1 }
 0xe72   :  { %v5162_v55 = vadd.f32 %v3243_v32, %v6458_v24  ;;  %v3245_v4 = vpop.f32.mrb[27].mxu0  ;;  %v3316_v6 = vpop.f32.mrb[29].mxu1  ;;  %v5178_v36 = vadd.f32 %v3314_v49, %v6473_v9 }
 0xe73   :  { %v5163_v13 = vadd.f32 %v3245_v4, %v6462_v51  ;;  %v5179_v46 = vadd.f32 %v3316_v6, %v6468_v5  ;;  %v3710_v4 = vld [vmem:[#allocation11 + $0x20] sm:$0xff]  ;;  %v3711_v6 = vld [vmem:[#allocation11 + $0x28] sm:$0xff] }
 0xe74   :  { %v3920_v23 = vmul.f32 -1.442695, %v5162_v55 }
 0xe75   :  { %v3921_v11 = vmul.f32 -1.442695, %v5163_v13  ;;  %v3922_v12 = vmul.f32 -1.442695, %v5179_v46  ;;  %v5094_v13 = vpack.c.bf16 %v3711_v6, %v3710_v4 }
 0xe76   :  { %5464 = vpow2.f32 %v3920_v23  ;;  %v3712_v23 = vld [vmem:[#allocation11 + $0x30] sm:$0xff] }
 0xe77   :  { %5466 = vpow2.f32 %v3921_v11  ;;  %v3713_v11 = vld [vmem:[#allocation11 + $0x38] sm:$0xff] }
 0xe78   :  { %5468 = vpow2.f32 %v3922_v12  ;;  %v5098_v46 = vpack.c.bf16 %v3713_v11, %v3712_v23  ;;  %v3714_v12 = vld [vmem:[#allocation11 + $0x40] sm:$0xff] }
 0xe79   :  { %5470 = vtanh.f32 %v5178_v36  ;;  %v3715_v36 = vld [vmem:[#allocation11 + $0x48] sm:$0xff] }
 0xe80   :  { %v5465_v21 = vpop.eup %5464 }
 0xe81   :  { %v5467_v47 = vpop.eup %5466  ;;  %v3326_v8 = vadd.f32 1.0, %v5465_v21  ;;  %v5102_v21 = vpack.c.bf16 %v3715_v36, %v3714_v12 }
 0xe82   :  { %v3332_v44 = vadd.f32 1.0, %v5467_v47  ;;  %v5469_v59 = vpop.eup %5468  ;;  %v3716_v47 = vld [vmem:[#allocation11 + $0x50] sm:$0xff] }
 0xe83   :  { %5472 = vrcp.f32 %v3326_v8  ;;  %v5471_v61 = vpop.eup %5470  ;;  %v3339_v1 = vadd.f32 1.0, %v5469_v59  ;;  %v3717_v8 = vld [vmem:[#allocation11 + $0x58] sm:$0xff]  ;;  %v3718_v59 = vld [vmem:[#allocation11 + $0x60] sm:$0xff] }
 0xe84   :  { %5474 = vrcp.f32 %v3332_v44  ;;  %v5106_v44 = vpack.c.bf16 %v3717_v8, %v3716_v47 }
 0xe85   :  { %5476 = vrcp.f32 %v3339_v1 }
 0xe8d   :  { %v5473_v45 = vpop.eup %5472 }
 0xe8e   :  { %v5475_v28 = vpop.eup %5474  ;;  %v3343_v3 = vmul.f32 %v5473_v45, %v5471_v61  ;;  %v3719_v61 = vld [vmem:[#allocation11 + $0x68] sm:$0xff]  ;;  %v3720_v45 = vld [vmem:[#allocation11 + $0x70] sm:$0xff] }
 0xe8f   :  { %v3342_v19 = vmul.f32 %v5475_v28, %v6660_v43  ;;  %v5477_v32 = vpop.eup %5476  ;;  %v3721_v28 = vld [vmem:[#allocation11 + $0x78] sm:$0xff] }
 0xe91   :  { %v6706_v25 = vadd.f32 %v3343_v3, %v3342_v19  ;;  %v5114_v3 = vpack.c.bf16 %v3721_v28, %v3720_v45 }
 0xe93   :  { %5478 = vtanh.f32 %v6706_v25 }
 0xe9d   :  { %v5479_v49 = vpop.eup %5478 }
 0xe9e   :  { %v6709_v55 = vmul.f32 %v5479_v49, %v5477_v32 }
 0xea0   :  { %3417 = vmatmul.mubr.f32.vlgmr.msra.gmra.mrb[28].mxu0 %v6709_v55  ;;  %3488 = vmatmul.mubr.f32.vlgmr.msra.gmra.mrb[30].mxu1 %v6709_v55 }
 0xea1   :  { %5025 = vmatpush1.bf16.msra.mxu0 %v6314_v29  ;;  %5057 = vmatpush1.bf16.msra.mxu1 %v6319_v37  ;;  %v3707_v29 = vld [vmem:[#allocation11 + $0x8] sm:$0xff] }
 0xea2   :  { %5027 = vmatprep.subr.bf16.mxu0 %v6324_v40  ;;  %5059 = vmatprep.subr.bf16.mxu1 %v6328_v58 }
 0xea3   :  { %3591 = vmatprep.mubr.f32.mxu0 %v5638_v0  ;;  %3662 = vmatprep.mubr.f32.mxu1 %v5638_v0  ;;  %v3706_v0 = vld [vmem:[#allocation11] sm:$0xff] }
 0xea4   :  { %v5086_v37 = vpack.c.bf16 %v3707_v29, %v3706_v0 }
 0xea5   :  { %5029 = vmatpush1.bf16.msra.mxu0 %v6326_v16  ;;  %5061 = vmatpush1.bf16.msra.mxu1 %v6331_v50 }
 0xea6   :  { %5031 = vmatprep.subr.bf16.mxu0 %v6336_v18  ;;  %5063 = vmatprep.subr.bf16.mxu1 %v6340_v35 }
 0xea9   :  { %5033 = vmatpush1.bf16.msra.mxu0 %v6338_v33  ;;  %5065 = vmatpush1.bf16.msra.mxu1 %v6343_v48 }
 0xeaa   :  { %5035 = vmatprep.subr.bf16.mxu0 %v6348_v62  ;;  %5067 = vmatprep.subr.bf16.mxu1 %v6352_v22 }
 0xead   :  { %5037 = vmatpush1.bf16.msra.mxu0 %v6350_v14  ;;  %5069 = vmatpush1.bf16.msra.mxu1 %v6355_v38 }
 0xeae   :  { %5039 = vmatprep.subr.bf16.mxu0 %v6359_v54  ;;  %5071 = vmatprep.subr.bf16.mxu1 %v6364_v60 }
 0xeb1   :  { %5041 = vmatpush1.bf16.msra.mxu0 %v6361_v27  ;;  %5073 = vmatpush1.bf16.msra.mxu1 %v6367_v7 }
 0xeb2   :  { %5043 = vmatprep.subr.bf16.mxu0 %v6369_v34  ;;  %5075 = vmatprep.subr.bf16.mxu1 %v6375_v10 }
 0xeb5   :  { %5045 = vmatpush1.bf16.msra.mxu0 %v6373_v17  ;;  %5077 = vmatpush1.bf16.msra.mxu1 %v6379_v26 }
 0xeb6   :  { %5047 = vmatprep.subr.bf16.mxu0 %v6381_v41  ;;  %5079 = vmatprep.subr.bf16.mxu1 %v6384_v56 }
 0xeb9   :  { %5049 = vmatpush1.bf16.msra.mxu0 %v6387_v30  ;;  %5081 = vmatpush1.bf16.msra.mxu1 %v6391_v31  ;;  %v3708_v31 = vld [vmem:[#allocation11 + $0x10] sm:$0xff] }
 0xeba   :  { %5051 = vmatprep.subr.bf16.mxu0 %v6393_v39  ;;  %5083 = vmatprep.subr.bf16.mxu1 %v6399_v52  ;;  %v3709_v39 = vld [vmem:[#allocation11 + $0x18] sm:$0xff] }
 0xebb   :  { %v5090_v43 = vpack.c.bf16 %v3709_v39, %v3708_v31 }
 0xebd   :  { %5053 = vmatpush1.bf16.msra.mxu0 %v6401_v53  ;;  %5085 = vmatpush1.bf16.msra.mxu1 %v6404_v63 }
 0xebe   :  { %5087 = vmatprep.subr.bf16.mxu0 %v5086_v37 }
 0xf73   :  { %v3418_v40 = vpop.f32.mrb[28].mxu0  ;;  %v3489_v16 = vpop.f32.mrb[30].mxu1 }
 0xf74   :  { %v5164_v58 = vadd.f32 %v3418_v40, %v6458_v24  ;;  %v3420_v50 = vpop.f32.mrb[29].mxu0  ;;  %v3491_v18 = vpop.f32.mrb[31].mxu1  ;;  %v5180_v22 = vadd.f32 %v3489_v16, %v6473_v9 }
 0xf75   :  { %v5165_v33 = vadd.f32 %v3420_v50, %v6462_v51  ;;  %v5181_v62 = vadd.f32 %v3491_v18, %v6468_v5 }
 0xf76   :  { %v3923_v35 = vmul.f32 -1.442695, %v5164_v58 }
 0xf77   :  { %v3924_v48 = vmul.f32 -1.442695, %v5165_v33  ;;  %v3925_v14 = vmul.f32 -1.442695, %v5181_v62 }
 0xf78   :  { %5480 = vpow2.f32 %v3923_v35 }
 0xf79   :  { %5482 = vpow2.f32 %v3924_v48 }
 0xf7a   :  { %5484 = vpow2.f32 %v3925_v14 }
 0xf7b   :  { %5486 = vtanh.f32 %v5180_v22 }
 0xf82   :  { %v5481_v38 = vpop.eup %5480 }
 0xf83   :  { %v5483_v54 = vpop.eup %5482  ;;  %v3501_v27 = vadd.f32 1.0, %v5481_v38 }
 0xf84   :  { %v3507_v60 = vadd.f32 1.0, %v5483_v54  ;;  %v5485_v7 = vpop.eup %5484 }
 0xf85   :  { %5488 = vrcp.f32 %v3501_v27  ;;  %v5487_v34 = vpop.eup %5486  ;;  %v3514_v41 = vadd.f32 1.0, %v5485_v7 }
 0xf86   :  { %5490 = vrcp.f32 %v3507_v60 }
 0xf87   :  { %5492 = vrcp.f32 %v3514_v41 }
 0xf8f   :  { %v5489_v17 = vpop.eup %5488 }
 0xf90   :  { %v5491_v10 = vpop.eup %5490  ;;  %v3518_v26 = vmul.f32 %v5489_v17, %v5487_v34 }
 0xf91   :  { %v3517_v56 = vmul.f32 %v5491_v10, %v6706_v25  ;;  %v5493_v52 = vpop.eup %5492 }
 0xf93   :  { %v6750_v30 = vadd.f32 %v3518_v26, %v3517_v56 }
 0xf95   :  { %5494 = vtanh.f32 %v6750_v30 }
 0xf9f   :  { %v5495_v53 = vpop.eup %5494 }
 0xfa0   :  { %v3521_v63 = vmul.f32 %v5495_v53, %v5493_v52 }
 0xfa2   :  { %3592 = vmatmul.mubr.f32.vlgmr.msra.gmra.mrb[30].mxu0 %v3521_v63  ;;  %3663 = vmatmul.mubr.f32.vlgmr.msra.gmra.mrb[32].mxu1 %v3521_v63 }
 0xfa3   :  { %5089 = vmatpush3.bf16.msra.mxu0 %v5086_v37  ;;  %3986 = vmatprep.mubr.f32.mxu0 %v6479_v20  ;;  %v5110_v20 = vpack.c.bf16 %v3719_v61, %v3718_v59 }
 0xfa4   :  { %5091 = vmatprep.subr.bf16.mxu0 %v5090_v43 }
 0xfa7   :  { %5093 = vmatpush3.bf16.msra.mxu0 %v5090_v43 }
 0xfa8   :  { %5095 = vmatprep.subr.bf16.mxu0 %v5094_v13 }
 0xfab   :  { %5097 = vmatpush3.bf16.msra.mxu0 %v5094_v13 }
 0xfac   :  { %5099 = vmatprep.subr.bf16.mxu0 %v5098_v46 }
 0xfaf   :  { %5101 = vmatpush3.bf16.msra.mxu0 %v5098_v46 }
 0xfb0   :  { %5103 = vmatprep.subr.bf16.mxu0 %v5102_v21 }
 0xfb3   :  { %5105 = vmatpush3.bf16.msra.mxu0 %v5102_v21 }
 0xfb4   :  { %5107 = vmatprep.subr.bf16.mxu0 %v5106_v44 }
 0xfb7   :  { %5109 = vmatpush3.bf16.msra.mxu0 %v5106_v44 }
 0xfb8   :  { %5111 = vmatprep.subr.bf16.mxu0 %v5110_v20 }
 0xfbb   :  { %5113 = vmatpush3.bf16.msra.mxu0 %v5110_v20 }
 0xfbc   :  { %5115 = vmatprep.subr.bf16.mxu0 %v5114_v3 }
 0xfbf   :  { %5117 = vmatpush3.bf16.msra.mxu0 %v5114_v3 }
 0xfc2   :  { %3987 = vmatmul.mubr.f32.vlgmr.msra.gmra.mrb[32].mxu0 %v6525_v57 }
 0xfc3   :  { %3989 = vmatprep.mubr.f32.mxu0 %v6571_v2 }
 0xfc6   :  { %3990 = vmatmul.mubr.f32.gmra.mrb[34].mxu0 %v6617_v15 }
 0xfc7   :  { %3992 = vmatprep.mubr.f32.mxu0 %v6663_v42 }
 0xfca   :  { %3993 = vmatmul.mubr.f32.gmra.mrb[36].mxu0 %v6709_v55 }
 0xfcb   :  { %3995 = vmatprep.mubr.f32.mxu0 %v3521_v63 }
0x1075   :  { %v3593_v1 = vpop.f32.mrb[30].mxu0  ;;  %v3664_v19 = vpop.f32.mrb[32].mxu1 }
0x1076   :  { %v5166_v25 = vadd.f32 %v3593_v1, %v6458_v24  ;;  %v3595_v32 = vpop.f32.mrb[31].mxu0  ;;  %v3666_v49 = vpop.f32.mrb[33].mxu1  ;;  %v5182_v15 = vadd.f32 %v3664_v19, %v6473_v9 }
0x1077   :  { %v5167_v0 = vadd.f32 %v3595_v32, %v6462_v51  ;;  %v5183_v57 = vadd.f32 %v3666_v49, %v6468_v5  ;;  %v3929_v5 = vld [vmem:[%s6790_s8] ss:$0 sm:$0xff]  ;;  %s5639_s8 = smov [#allocation13]  }
0x1078   :  { %v3926_v29 = vmul.f32 -1.442695, %v5166_v25  ;;  %s3847_s20 = sshll.u32 %s5639_s8, 4  ;;  %s3848_s20 = int_to_ptr.vmem [resolvable:$true] %s3847_s20 }
0x1079   :  { %v3927_v37 = vmul.f32 -1.442695, %v5167_v0  ;;  %v3928_v2 = vmul.f32 -1.442695, %v5183_v57  ;;  %s5600_s7 = scalar_lea.vmem %s3848_s20, 1024  ;;  %p5605_p5 = scmp.lt.s32.totalorder %s3848_s20, %s3848_s20 }
0x107a   :  { %5496 = vpow2.f32 %v3926_v29  ;;  %p5601_p4 = scmp.ne.s32.totalorder %s3848_s20, %s5600_s7  ;;  %p5606_p6 = scmp.lt.s32.totalorder %s5600_s7, %s5600_s7 }
0x107b   :  { %5498 = vpow2.f32 %v3927_v37 }
0x107c   :  { %5500 = vpow2.f32 %v3928_v2  ;;  %p5607_p7 = por %p5606_p6, %p5605_p5 }
0x107d   :  { %5502 = vtanh.f32 %v5182_v15 }
0x107e   :  { %p5608_p8 = pnand %p5607_p7, %p5601_p4 }
0x1084   :  { %v5497_v42 = vpop.eup %5496 }
0x1085   :  { %v5499_v55 = vpop.eup %5498  ;;  %v3676_v40 = vadd.f32 1.0, %v5497_v42 }
0x1086   :  { %v3682_v16 = vadd.f32 1.0, %v5499_v55  ;;  %v5501_v24 = vpop.eup %5500 }
0x1087   :  { %5504 = vrcp.f32 %v3676_v40  ;;  %v5503_v58 = vpop.eup %5502  ;;  %v3689_v33 = vadd.f32 1.0, %v5501_v24 }
0x1088   :  { %5506 = vrcp.f32 %v3682_v16 }
0x1089   :  { %5508 = vrcp.f32 %v3689_v33 }
0x1091   :  { %v5505_v51 = vpop.eup %5504 }
0x1092   :  { %v5507_v50 = vpop.eup %5506  ;;  %v3693_v18 = vmul.f32 %v5505_v51, %v5503_v58 }
0x1093   :  { %v3692_v35 = vmul.f32 %v5507_v50, %v6750_v30  ;;  %v5509_v26 = vpop.eup %5508 }
0x1095   :  { %v3988_v9 = vpop.f32.mrb[32].mxu0  ;;  %v3694_v48 = vadd.f32 %v3693_v18, %v3692_v35 }
0x1096   :  { %v3801_v62 = vadd.f32 %v3988_v9, %v3929_v5  ;;  %v3795_v14 = vpop.f32.mrb[33].mxu0 }
0x1097   :  { %v3796_v22 = vadd.f32 %v3929_v5, %v3795_v14  ;;  %5510 = vtanh.f32 %v3694_v48 }
0x1098   :  { %3835 = vst [vmem:[#allocation13 + $0x8] sm:$0xff] %v3801_v62 }
0x1099   :  { %3834 = vst [vmem:[#allocation13] sm:$0xff] %v3796_v22  ;;  %v3991_v38 = vpop.f32.mrb[34].mxu0 }
0x109a   :  { %v3811_v54 = vadd.f32 %v3991_v38, %v3929_v5  ;;  %v3805_v27 = vpop.f32.mrb[35].mxu0 }
0x109b   :  { %v3806_v60 = vadd.f32 %v3929_v5, %v3805_v27 }
0x109c   :  { %3837 = vst [vmem:[#allocation13 + $0x18] sm:$0xff] %v3811_v54 }
0x109d   :  { %3836 = vst [vmem:[#allocation13 + $0x10] sm:$0xff] %v3806_v60  ;;  %v3994_v7 = vpop.f32.mrb[36].mxu0 }
0x109e   :  { %v3821_v34 = vadd.f32 %v3994_v7, %v3929_v5  ;;  %v3815_v17 = vpop.f32.mrb[37].mxu0 }
0x109f   :  { %v3816_v10 = vadd.f32 %v3929_v5, %v3815_v17 }
0x10a0   :  { %3839 = vst [vmem:[#allocation13 + $0x28] sm:$0xff] %v3821_v34 }
0x10a1   :  { %v5511_v41 = vpop.eup %5510  ;;  %3838 = vst [vmem:[#allocation13 + $0x20] sm:$0xff] %v3816_v10 }
0x10a2   :  { %v3696_v56 = vmul.f32 %v5511_v41, %v5509_v26 }
0x10a4   :  { %3996 = vmatmul.mubr.f32.gmra.mrb[38].mxu0 %v3696_v56 }
0x1177   :  { %v3997_v30 = vpop.f32.mrb[38].mxu0 }
0x1178   :  { %v3831_v31 = vadd.f32 %v3997_v30, %v3929_v5  ;;  %v3825_v39 = vpop.f32.mrb[39].mxu0 }
0x1179   :  { %v3826_v52 = vadd.f32 %v3929_v5, %v3825_v39 }
0x117a   :  { %3841 = vst [vmem:[#allocation13 + $0x38] sm:$0xff] %v3831_v31 }
0x117b   :  { %3840 = vst [vmem:[#allocation13 + $0x30] sm:$0xff] %v3826_v52 }
0x117c   :  { %5611 = shalt.err (!%p5608_p8)
}
0x117d   :  { %s5612_s24 = scalar_lea.hbm %s6791_s9, 1024 }
0x117e   :  { %p5613_p9 = scmp.ne.s32.totalorder %s6791_s9, %s5612_s24  ;;  %p5616_p10 = scmp.lt.u32.totalorder %s5612_s24, %s6791_s9 }
0x1180   :  { %p5618_p11 = pnand %p5616_p10, %p5613_p9 }
0x1182   :  { %5621 = shalt.err (!%p5618_p11)
}
0x1183   :  { %3853 = dma.vmem_to_hbm [thread:$0]  %s3848_s20, 1024, %s6791_s9, [#allocation7], %s5636_s5, %s5636_s5, %s5637_s21  }
0x1184   :  { %5628 = dma.done.wait [#allocation7], 1024  }
0x1185   :  { %5629 = vsyncadd [#allocation7], 4294966272 }
0x1186   :  { %3857 = vsyncpa [#allocation6], 1 }
0x1187   :  { %3858 = vsyncpa [#allocation9], 1 }
0x1188   :  { %3859 = vsyncpa [#allocation12], 1 }
0x1189   :  { %3860 = vsyncpa [#allocation7], 1 }

</bundles_post_ra>
